<compile_context>
chip_gen: v7x
topology: tpu7x:2x2x1
jax: 0.10.0
libtpu: 0.0.40
codegen_flags: <defaults>
</compile_context>

<pallas_src>
import math

import jax
import jax.numpy as jnp
from jax.experimental import pallas as pl
from jax.experimental.pallas import tpu as pltpu

# ------------------- configuration (mirrors SubtractiveVocoder.__init__) -------------------
DIM_PERIODICITY = 12
N_MELS = 80
SAMPLE_RATE = 24000
HOP_LENGTH = 256
N_FFT = 1024
FFT_BIN = N_FFT // 2 + 1                      # 513
PACK_W = N_FFT                                # packed [Re|Im] width: 513 Re + 511 Im = 1024
MIN_PHASE = False                             # module default


def _tile_budget():
    """(max_frame_tile, vmem_limit_bytes) tuned per TPU generation.

    v7x has only 64 MiB physical VMEM per TensorCore -> keep 256-frame tiles / 48 MiB.
    v5e / v6e (128 MiB) can take 512-frame tiles to halve per-grid-step overhead."""
    max_tile, vmem_limit = 256, 48 << 20
    try:
        if pltpu.get_tpu_info().vmem_capacity_bytes >= (100 << 20):
            max_tile, vmem_limit = 512, 80 << 20
    except Exception:
        pass
    return max_tile, vmem_limit


# ----------------------- deterministic parameter construction ------------------------------
def _hz_to_mel(f):
    return 2595.0 * jnp.log10(1.0 + f / 700.0)


def _mel_to_hz(m):
    return 700.0 * (10.0 ** (m / 2595.0) - 1.0)


def mel_filterbank(n_bands: int) -> jnp.ndarray:
    """Triangular mel filterbank, shape (n_bands, FFT_BIN)."""
    f_min, f_max = 0.0, SAMPLE_RATE / 2.0
    m_pts = jnp.linspace(_hz_to_mel(jnp.float32(f_min)), _hz_to_mel(jnp.float32(f_max)),
                         n_bands + 2)
    f_pts = _mel_to_hz(m_pts)                                   # (n_bands + 2,)
    freqs = jnp.linspace(0.0, SAMPLE_RATE / 2.0, FFT_BIN)       # (FFT_BIN,)
    slopes = f_pts[None, :] - freqs[:, None]                    # (FFT_BIN, n_bands + 2)
    down = -slopes[:, :-2] / (f_pts[1:-1] - f_pts[:-2])
    up = slopes[:, 2:] / (f_pts[2:] - f_pts[1:-1])
    fb = jnp.maximum(0.0, jnp.minimum(down, up))                # (FFT_BIN, n_bands)
    return fb.T.astype(jnp.float32)


def inverse_mel_matrix(n_bands: int) -> jnp.ndarray:
    """InverseMelScale stand-in: deterministic pseudo-inverse of the mel filterbank.

    Returns (n_bands, FFT_BIN) so that spec_frames = mel_frames @ inv  (frame-major).
    TODO(synk): torchaudio's InverseMelScale uses an iterative solve; pinv is a deterministic
    stand-in, so absolute values differ from the PyTorch module."""
    fb = mel_filterbank(n_bands)                 # (n_bands, FFT_BIN)
    inv = jnp.linalg.pinv(fb)                    # (FFT_BIN, n_bands)
    return inv.T.astype(jnp.float32)             # (n_bands, FFT_BIN)


def hann_window(n: int) -> jnp.ndarray:
    # periodic Hann (torch.hann_window default)
    t = jnp.arange(n, dtype=jnp.float32)
    return 0.5 - 0.5 * jnp.cos(2.0 * jnp.pi * t / n)


def dft_windowed_matrices():
    """Hann-windowed real DFT / inverse DFT as two fused (1024, 1024) bf16 matmul weights
    using the packed [Re(0..512) | Im(1..511)] frequency layout.

    W_fwd (N_FFT, PACK_W):  frames @ W_fwd = packed rfft(frame * hann)
    W_inv (PACK_W, N_FFT):  packed_spec @ W_inv = irfft(spec, N_FFT) * hann
    """
    n = jnp.arange(N_FFT)
    k = jnp.arange(FFT_BIN)
    prod = (n[:, None] * k[None, :]) % N_FFT                 # keep trig args small / exact
    ang = (2.0 * jnp.pi / N_FFT) * prod.astype(jnp.float32)  # (N_FFT, FFT_BIN)
    hann = hann_window(N_FFT)

    # forward: analysis window folded into the rows; Im[0]/Im[N/2] columns dropped
    fwd_re = hann[:, None] * jnp.cos(ang)                    # (N_FFT, 513)
    fwd_im = hann[:, None] * (-jnp.sin(ang))                 # (N_FFT, 513)
    w_fwd = jnp.concatenate([fwd_re, fwd_im[:, 1:N_FFT // 2]], axis=1)   # (N_FFT, 1024)

    # inverse (Hermitian irfft): synthesis window folded into the columns, -sin sign folded
    # in so the kernel uses the packed [Re | Im] rows directly.
    wc = jnp.where((k == 0) | (k == N_FFT // 2), 1.0, 2.0).astype(jnp.float32)[:, None]
    inv_cos = (wc * jnp.cos(ang.T) / N_FFT) * hann[None, :]              # (513, N_FFT)
    inv_sin = (2.0 * jnp.sin(ang.T) / N_FFT) * hann[None, :]             # (513, N_FFT)
    w_inv = jnp.concatenate([inv_cos, -inv_sin[1:N_FFT // 2, :]], axis=0)  # (1024, N_FFT)
    return w_fwd.astype(jnp.bfloat16), w_inv.astype(jnp.bfloat16)


def packed_bin_index() -> jnp.ndarray:
    """Bin index of each packed frequency column: [0..512, 1..511]."""
    return jnp.concatenate([jnp.arange(FFT_BIN), jnp.arange(1, N_FFT // 2)])


# ------------------------------------ glue helpers ------------------------------------------
def impulse_train(f0: jnp.ndarray) -> jnp.ndarray:
    """Phase-accumulation impulse train (standard DDSP formulation: unit impulse at each
    phase wrap, voiced regions only)."""
    b = f0.shape[0]
    f0_up = jnp.repeat(f0, HOP_LENGTH, axis=1)                       # nearest upsample
    voiced = (f0_up > 20.0).astype(jnp.float32)
    phase = jnp.cumsum(f0_up / SAMPLE_RATE, axis=1)
    prev = jnp.concatenate([jnp.zeros((b, 1), jnp.float32), phase[:, :-1]], axis=1)
    return (jnp.floor(phase) - jnp.floor(prev)) * voiced


def frame_signal(x: jnp.ndarray) -> jnp.ndarray:
    """torch.stft framing: center=True, reflect pad n_fft//2, hop = n_fft//4."""
    b, t = x.shape
    pad = N_FFT // 2
    xp = jnp.pad(x, ((0, 0), (pad, pad)), mode="reflect")
    n_frames = 1 + (t + 2 * pad - N_FFT) // HOP_LENGTH
    idx = jnp.arange(n_frames)[:, None] * HOP_LENGTH + jnp.arange(N_FFT)[None, :]
    return xp[:, idx]                                                # (B, n_frames, N_FFT)


def overlap_add(frames: jnp.ndarray) -> jnp.ndarray:
    b, fs, n = frames.shape
    out_len = (fs - 1) * HOP_LENGTH + n
    idx = (jnp.arange(fs)[:, None] * HOP_LENGTH + jnp.arange(n)[None, :]).reshape(-1)
    out = jnp.zeros((b, out_len), frames.dtype)
    return out.at[:, idx].add(frames.reshape(b, -1))


def _istft_tail(frames_out, hann, n_frames):
    """overlap-add + window-envelope normalization + center trim (torch.istft semantics)."""
    fs = frames_out.shape[1]
    wav = overlap_add(frames_out)
    wsq_frames = jnp.broadcast_to((hann ** 2)[None, None, :], (1, fs, N_FFT))
    wsq = overlap_add(wsq_frames)[0]
    wav = wav / jnp.where(wsq > 1e-11, wsq, 1.0)
    pad = N_FFT // 2
    return wav[:, pad:pad + n_frames * HOP_LENGTH]


def _prepare_common(f0, periodicity, spectral_envelope, noise_key):
    """Shared front-end: excitation synthesis, framing, frame-major filter inputs."""
    f0 = f0.astype(jnp.float32)
    per = periodicity.astype(jnp.float32)
    env = spectral_envelope.astype(jnp.float32)

    # excitation: impulse train * interpolated rsqrt(clamp_min(f0, 20)), plus uniform noise
    gain = jnp.repeat(jax.lax.rsqrt(jnp.maximum(f0, 20.0)), HOP_LENGTH, axis=1)
    imp = impulse_train(f0) * gain
    noi = (jax.random.uniform(noise_key, imp.shape, jnp.float32) - 0.5) * 2.0 / math.sqrt(SAMPLE_RATE)

    imp_frames = frame_signal(imp)            # (B, Fs, N_FFT),  Fs = n_frames + 1
    noi_frames = frame_signal(noi)

    # frame-major filter inputs, zero-padded by one leading frame (== F.pad(..., (1, 0)))
    zpad = lambda x: jnp.pad(jnp.transpose(x, (0, 2, 1)), ((0, 0), (1, 0), (0, 0)))
    per_pad = zpad(per)                       # (B, Fs, dim_periodicity)
    env_pad = zpad(env)                       # (B, Fs, n_mels)
    return imp_frames, noi_frames, per_pad, env_pad


def _frame_tiling(fs: int, max_tile: int):
    """Pick a frame-tile size (multiple of 16 for bf16 sublane packing) and padded length."""
    n_tiles = max(1, (fs + max_tile - 1) // max_tile)
    tf = (fs + n_tiles - 1) // n_tiles
    tf = ((tf + 15) // 16) * 16
    return tf, n_tiles * tf


# ------------------------------------ Pallas kernel -----------------------------------------
def _vocoder_kernel(xs_ref, per_ref, env_ref,
                    wfwd_ref, iper_ref, ipercs_ref, ienv_ref, winv_ref,
                    out_ref):
    f32 = jnp.float32
    bf16 = jnp.bfloat16
    tf = xs_ref.shape[2] // 2

    # Fused STFT of the pre-stacked [impulse; noise] excitation frames:
    # one (2*TF, N_FFT) @ (N_FFT, PACK_W) bf16 matmul (analysis Hann folded into wfwd),
    # f32 accumulation.  Packed layout: cols 0..512 = Re, cols 513..1023 = Im(1..511).
    stft = jnp.dot(xs_ref[0, 0], wfwd_ref[...], preferred_element_type=f32)  # (2*TF, PACK_W)

    # Inverse-mel expansion at full packed width (inverse-mel columns pre-duplicated for the
    # Re and Im halves host-side), bf16 operands, f32 accumulation.
    # q == (1 - periodicity) @ inv_per is obtained as column_sums(inv_per) - p (one less
    # matmul); the zero-padded leading / trailing frames stay correct because e == 0 there.
    p = jnp.dot(per_ref[0], iper_ref[...], preferred_element_type=f32)       # (TF, PACK_W)
    q = ipercs_ref[...] - p
    e = jnp.dot(env_ref[0], ienv_ref[...], preferred_element_type=f32)

    # Spectral filtering stays in f32 on the VPU; no frequency-axis slicing / concat needed.
    voi = ((stft[:tf] * p + stft[tf:] * q) * e).astype(bf16)                 # (TF, PACK_W)

    # Fused inverse real DFT (+ synthesis Hann and the -sin sign folded into winv),
    # stored as bf16 frames (halves output HBM traffic).
    out_ref[0] = jnp.dot(voi, winv_ref[...], preferred_element_type=f32).astype(bf16)


def run_spectral_kernel(xs, per_p, env_p, w_fwd, iper, ipercs, ienv, w_inv, tf, vmem_limit):
    b, n_tiles = xs.shape[0], xs.shape[1]
    fs_pad = n_tiles * tf

    # Whole-array VMEM residents: loaded once, single-buffered (not part of the pipeline).
    vmem_const = pl.BlockSpec(memory_space=pltpu.MemorySpace.VMEM)

    return pl.pallas_call(
        _vocoder_kernel,
        out_shape=jax.ShapeDtypeStruct((b, fs_pad, N_FFT), jnp.bfloat16),
        grid_spec=pltpu.PrefetchScalarGridSpec(
            num_scalar_prefetch=0,
            grid=(b, n_tiles),
            in_specs=[
                pl.BlockSpec((1, 1, 2 * tf, N_FFT), lambda i, j: (i, j, 0, 0)),  # [imp; noi] bf16
                pl.BlockSpec((1, tf, DIM_PERIODICITY), lambda i, j: (i, j, 0)),  # periodicity bf16
                pl.BlockSpec((1, tf, N_MELS), lambda i, j: (i, j, 0)),           # envelope bf16
                vmem_const,                                 # W_fwd   (N_FFT, PACK_W) bf16
                vmem_const,                                 # inv_per (12, PACK_W)    bf16
                vmem_const,                                 # colsum(inv_per) (1, PACK_W) f32
                vmem_const,                                 # inv_env (80, PACK_W)    bf16
                vmem_const,                                 # W_inv   (PACK_W, N_FFT) bf16
            ],
            out_specs=pl.BlockSpec((1, tf, N_FFT), lambda i, j: (i, j, 0)),
        ),
        compiler_params=pltpu.CompilerParams(
            # Sequential loop on v5e/v6e's single TensorCore; shards across v7x's 2 TCs.
            dimension_semantics=("parallel", "parallel"),
            vmem_limit_bytes=vmem_limit,
        ),
    )(xs, per_p, env_p, w_fwd, iper, ipercs, ienv, w_inv)


# ------------------------------------ forward pass ------------------------------------------
def subtractive_vocoder_forward(f0, periodicity, spectral_envelope, noise_key, post_filter=None):
    dtype = periodicity.dtype
    n_frames = f0.shape[1]
    imp_frames, noi_frames, per_pad, env_pad = _prepare_common(
        f0, periodicity, spectral_envelope, noise_key)
    b, fs, _ = imp_frames.shape

    # frame-axis tiling (pad with zero frames; they produce zero output and are trimmed)
    max_tile, vmem_limit = _tile_budget()
    tf, fs_pad = _frame_tiling(fs, max_tile)
    n_tiles = fs_pad // tf
    fpad = lambda x: jnp.pad(x, ((0, 0), (0, fs_pad - fs), (0, 0)))

    # pre-stack impulse + noise frames so the kernel's fused matmul operand arrives ready-made
    imp_t = fpad(imp_frames).astype(jnp.bfloat16).reshape(b, n_tiles, tf, N_FFT)
    noi_t = fpad(noi_frames).astype(jnp.bfloat16).reshape(b, n_tiles, tf, N_FFT)
    xs = jnp.concatenate([imp_t, noi_t], axis=2)               # (B, n_tiles, 2*TF, N_FFT)
    per_p = fpad(per_pad).astype(jnp.bfloat16)                 # (B, fs_pad, 12)
    env_p = fpad(env_pad).astype(jnp.bfloat16)                 # (B, fs_pad, 80)

    # constants: Hann-folded packed DFT/iDFT weights + full-width inverse-mel matrices
    w_fwd, w_inv = dft_windowed_matrices()
    inv_per = inverse_mel_matrix(DIM_PERIODICITY)
    inv_env = inverse_mel_matrix(N_MELS)
    cols = packed_bin_index()                                  # (PACK_W,)
    iper = inv_per[:, cols].astype(jnp.bfloat16)               # (12, PACK_W)
    ienv = inv_env[:, cols].astype(jnp.bfloat16)               # (80, PACK_W)
    ipercs = jnp.sum(inv_per, axis=0)[cols][None, :].astype(jnp.float32)   # (1, PACK_W)

    frames_out = run_spectral_kernel(xs, per_p, env_p,
                                     w_fwd, iper, ipercs, ienv, w_inv, tf, vmem_limit)
    frames_out = frames_out[:, :fs].astype(jnp.float32)        # drop zero-padded frame tiles

    hann = hann_window(N_FFT)
    wav = _istft_tail(frames_out, hann, n_frames)
    if post_filter is not None:
        raise NotImplementedError("fft_convolve post-filter not implemented")
    return wav.astype(dtype)


# pure-JAX reference of the spectral path (jnp.fft, f32) for a numerical sanity check
def subtractive_vocoder_reference(f0, periodicity, spectral_envelope, noise_key):
    dtype = periodicity.dtype
    n_frames = f0.shape[1]
    imp_frames, noi_frames, per_pad, env_pad = _prepare_common(
        f0, periodicity, spectral_envelope, noise_key)
    hann = hann_window(N_FFT)
    hi = jax.lax.Precision.HIGHEST
    inv_per = inverse_mel_matrix(DIM_PERIODICITY)
    inv_env = inverse_mel_matrix(N_MELS)

    imp_stft = jnp.fft.rfft(imp_frames * hann, axis=-1)
    noi_stft = jnp.fft.rfft(noi_frames * hann, axis=-1)
    omp_pad = (1.0 - per_pad).at[:, 0, :].set(0.0)     # F.pad after per2spec(1 - periodicity)
    p = jnp.matmul(per_pad, inv_per, precision=hi)
    q = jnp.matmul(omp_pad, inv_per, precision=hi)
    e = jnp.matmul(env_pad, inv_env, precision=hi)
    voi = (imp_stft * p + noi_stft * q) * e
    frames_out = jnp.fft.irfft(voi, N_FFT, axis=-1) * hann
    wav = _istft_tail(frames_out.astype(jnp.float32), hann, n_frames)
    return wav.astype(dtype)


# ------------------------------------------ main --------------------------------------------
if __name__ == "__main__":
    key = jax.random.PRNGKey(0)
    k1, k2, k3, k4 = jax.random.split(key, 4)

    B, n_frames = 2, 8
    f0 = jax.random.uniform(k1, (B, n_frames), minval=80.0, maxval=400.0)
    periodicity = jax.random.uniform(k2, (B, DIM_PERIODICITY, n_frames))
    spectral_envelope = jax.random.uniform(k3, (B, N_MELS, n_frames))

    wav = subtractive_vocoder_forward(f0, periodicity, spectral_envelope, noise_key=k4)
    wav = jax.block_until_ready(wav)
    assert wav.shape == (B, n_frames * HOP_LENGTH), wav.shape
    assert wav.dtype == periodicity.dtype

    # numerical sanity check against a pure-JAX (jnp.fft, f32) reference of the same forward
    ref = jax.block_until_ready(
        subtractive_vocoder_reference(f0, periodicity, spectral_envelope, noise_key=k4))
    rel_err = jnp.linalg.norm(wav - ref) / (jnp.linalg.norm(ref) + 1e-12)
    assert float(rel_err) < 5e-2, f"relative error too large: {float(rel_err)}"

    print("KERNEL_OK")
</pallas_src>

<mosaic_0001>
module attributes {stable_mosaic.version = 11 : i64} {
  func.func @_vocoder_kernel(%arg0: i32, %arg1: i32, %arg2: memref<1x1x32x1024xbf16, #tpu.memory_space<vmem>>, %arg3: memref<1x16x12xbf16, #tpu.memory_space<vmem>>, %arg4: memref<1x16x80xbf16, #tpu.memory_space<vmem>>, %arg5: memref<1024x1024xbf16, #tpu.memory_space<vmem>>, %arg6: memref<12x1024xbf16, #tpu.memory_space<vmem>>, %arg7: memref<1x1024xf32, #tpu.memory_space<vmem>>, %arg8: memref<80x1024xbf16, #tpu.memory_space<vmem>>, %arg9: memref<1024x1024xbf16, #tpu.memory_space<vmem>>, %arg10: memref<1x16x1024xbf16, #tpu.memory_space<vmem>>) attributes {dimension_semantics = [#tpu.dimension_semantics<parallel>, #tpu.dimension_semantics<parallel>], iteration_bounds = array<i64: 2, 1>, scalar_prefetch = 0 : i64, scratch_operands = 0 : i64, tpu.core_type = #tpu.core_type<tc>, window_params = [{transform_indices = @transform_0, window_bounds = array<i64: 1, 1, 32, 1024>}, {transform_indices = @transform_1, window_bounds = array<i64: 1, 16, 12>}, {transform_indices = @transform_2, window_bounds = array<i64: 1, 16, 80>}, {pipeline_mode = #tpu.pipeline_mode<synchronous>, transform_indices = @transform_3, window_bounds = array<i64: 1024, 1024>}, {pipeline_mode = #tpu.pipeline_mode<synchronous>, transform_indices = @transform_4, window_bounds = array<i64: 12, 1024>}, {pipeline_mode = #tpu.pipeline_mode<synchronous>, transform_indices = @transform_5, window_bounds = array<i64: 1, 1024>}, {pipeline_mode = #tpu.pipeline_mode<synchronous>, transform_indices = @transform_6, window_bounds = array<i64: 80, 1024>}, {pipeline_mode = #tpu.pipeline_mode<synchronous>, transform_indices = @transform_7, window_bounds = array<i64: 1024, 1024>}, {transform_indices = @transform_8, window_bounds = array<i64: 1, 16, 1024>}]} {
    %c0 = arith.constant 0 : index
    %c0_0 = arith.constant 0 : index
    %c0_1 = arith.constant 0 : index
    %c0_2 = arith.constant 0 : index
    %0 = vector.load %arg2[%c0, %c0_0, %c0_1, %c0_2] : memref<1x1x32x1024xbf16, #tpu.memory_space<vmem>>, vector<1x1x32x1024xbf16>
    %1 = vector.shape_cast %0 : vector<1x1x32x1024xbf16> to vector<32x1024xbf16>
    %c0_3 = arith.constant 0 : index
    %c0_4 = arith.constant 0 : index
    %2 = vector.load %arg5[%c0_3, %c0_4] : memref<1024x1024xbf16, #tpu.memory_space<vmem>>, vector<1024x1024xbf16>
    %cst = arith.constant dense<0.000000e+00> : vector<32x1024xf32>
    %3 = tpu.matmul %1, %2, %cst {dimension_numbers = #tpu.dot_dimension_numbers<[1], [0], [0], [1], [0, 0, 1, 1], [], []>} : vector<32x1024xbf16>, vector<1024x1024xbf16>, vector<32x1024xf32> -> vector<32x1024xf32>
    %c0_5 = arith.constant 0 : index
    %c0_6 = arith.constant 0 : index
    %c0_7 = arith.constant 0 : index
    %4 = vector.load %arg3[%c0_5, %c0_6, %c0_7] : memref<1x16x12xbf16, #tpu.memory_space<vmem>>, vector<1x16x12xbf16>
    %5 = vector.shape_cast %4 : vector<1x16x12xbf16> to vector<16x12xbf16>
    %c0_8 = arith.constant 0 : index
    %c0_9 = arith.constant 0 : index
    %6 = vector.load %arg6[%c0_8, %c0_9] : memref<12x1024xbf16, #tpu.memory_space<vmem>>, vector<12x1024xbf16>
    %cst_10 = arith.constant dense<0.000000e+00> : vector<16x1024xf32>
    %7 = tpu.matmul %5, %6, %cst_10 {dimension_numbers = #tpu.dot_dimension_numbers<[1], [0], [0], [1], [0, 0, 1, 1], [], []>} : vector<16x12xbf16>, vector<12x1024xbf16>, vector<16x1024xf32> -> vector<16x1024xf32>
    %c0_11 = arith.constant 0 : index
    %c0_12 = arith.constant 0 : index
    %8 = vector.load %arg7[%c0_11, %c0_12] : memref<1x1024xf32, #tpu.memory_space<vmem>>, vector<1x1024xf32>
    %9 = vector.broadcast %8 : vector<1x1024xf32> to vector<16x1024xf32>
    %10 = arith.subf %9, %7 : vector<16x1024xf32>
    %c0_13 = arith.constant 0 : index
    %c0_14 = arith.constant 0 : index
    %c0_15 = arith.constant 0 : index
    %11 = vector.load %arg4[%c0_13, %c0_14, %c0_15] : memref<1x16x80xbf16, #tpu.memory_space<vmem>>, vector<1x16x80xbf16>
    %12 = vector.shape_cast %11 : vector<1x16x80xbf16> to vector<16x80xbf16>
    %c0_16 = arith.constant 0 : index
    %c0_17 = arith.constant 0 : index
    %13 = vector.load %arg8[%c0_16, %c0_17] : memref<80x1024xbf16, #tpu.memory_space<vmem>>, vector<80x1024xbf16>
    %cst_18 = arith.constant dense<0.000000e+00> : vector<16x1024xf32>
    %14 = tpu.matmul %12, %13, %cst_18 {dimension_numbers = #tpu.dot_dimension_numbers<[1], [0], [0], [1], [0, 0, 1, 1], [], []>} : vector<16x80xbf16>, vector<80x1024xbf16>, vector<16x1024xf32> -> vector<16x1024xf32>
    %15 = vector.extract_strided_slice %3 {offsets = [0, 0], sizes = [16, 1024], strides = [1, 1]} : vector<32x1024xf32> to vector<16x1024xf32>
    %16 = arith.mulf %15, %7 : vector<16x1024xf32>
    %17 = vector.extract_strided_slice %3 {offsets = [16, 0], sizes = [16, 1024], strides = [1, 1]} : vector<32x1024xf32> to vector<16x1024xf32>
    %18 = arith.mulf %17, %10 : vector<16x1024xf32>
    %19 = arith.addf %16, %18 : vector<16x1024xf32>
    %20 = arith.mulf %19, %14 : vector<16x1024xf32>
    %21 = arith.truncf %20 : vector<16x1024xf32> to vector<16x1024xbf16>
    %c0_19 = arith.constant 0 : index
    %c0_20 = arith.constant 0 : index
    %22 = vector.load %arg9[%c0_19, %c0_20] : memref<1024x1024xbf16, #tpu.memory_space<vmem>>, vector<1024x1024xbf16>
    %cst_21 = arith.constant dense<0.000000e+00> : vector<16x1024xf32>
    %23 = tpu.matmul %21, %22, %cst_21 {dimension_numbers = #tpu.dot_dimension_numbers<[1], [0], [0], [1], [0, 0, 1, 1], [], []>} : vector<16x1024xbf16>, vector<1024x1024xbf16>, vector<16x1024xf32> -> vector<16x1024xf32>
    %24 = arith.truncf %23 : vector<16x1024xf32> to vector<16x1024xbf16>
    %c0_22 = arith.constant 0 : index
    %c0_23 = arith.constant 0 : index
    %c0_24 = arith.constant 0 : index
    %25 = vector.load %arg10[%c0_22, %c0_23, %c0_24] : memref<1x16x1024xbf16, #tpu.memory_space<vmem>>, vector<1x16x1024xbf16>
    %26 = vector.shape_cast %25 : vector<1x16x1024xbf16> to vector<16x1024xbf16>
    %27 = vector.shape_cast %24 : vector<16x1024xbf16> to vector<1x16x1024xbf16>
    tpu.vector_store %arg10[%c0_22, %c0_23, %c0_24], %27 {strides = array<i32>} : memref<1x16x1024xbf16, #tpu.memory_space<vmem>>, vector<1x16x1024xbf16>,
    return
  }
  func.func @transform_0(%arg0: i32, %arg1: i32) -> (i32, i32, i32, i32) {
    %c0_i32 = arith.constant 0 : i32
    %c0_i32_0 = arith.constant 0 : i32
    %c0_i32_1 = arith.constant 0 : i32
    return %arg0, %arg1, %c0_i32, %c0_i32_0 : i32, i32, i32, i32
  }
  func.func @transform_1(%arg0: i32, %arg1: i32) -> (i32, i32, i32) {
    %c0_i32 = arith.constant 0 : i32
    %c0_i32_0 = arith.constant 0 : i32
    return %arg0, %arg1, %c0_i32 : i32, i32, i32
  }
  func.func @transform_2(%arg0: i32, %arg1: i32) -> (i32, i32, i32) {
    %c0_i32 = arith.constant 0 : i32
    %c0_i32_0 = arith.constant 0 : i32
    return %arg0, %arg1, %c0_i32 : i32, i32, i32
  }
  func.func @transform_3(%arg0: i32, %arg1: i32) -> (i32, i32) {
    %c0_i32 = arith.constant 0 : i32
    %c0_i32_0 = arith.constant 0 : i32
    %c0_i32_1 = arith.constant 0 : i32
    return %c0_i32, %c0_i32_0 : i32, i32
  }
  func.func @transform_4(%arg0: i32, %arg1: i32) -> (i32, i32) {
    %c0_i32 = arith.constant 0 : i32
    %c0_i32_0 = arith.constant 0 : i32
    %c0_i32_1 = arith.constant 0 : i32
    return %c0_i32, %c0_i32_0 : i32, i32
  }
  func.func @transform_5(%arg0: i32, %arg1: i32) -> (i32, i32) {
    %c0_i32 = arith.constant 0 : i32
    %c0_i32_0 = arith.constant 0 : i32
    %c0_i32_1 = arith.constant 0 : i32
    return %c0_i32, %c0_i32_0 : i32, i32
  }
  func.func @transform_6(%arg0: i32, %arg1: i32) -> (i32, i32) {
    %c0_i32 = arith.constant 0 : i32
    %c0_i32_0 = arith.constant 0 : i32
    %c0_i32_1 = arith.constant 0 : i32
    return %c0_i32, %c0_i32_0 : i32, i32
  }
  func.func @transform_7(%arg0: i32, %arg1: i32) -> (i32, i32) {
    %c0_i32 = arith.constant 0 : i32
    %c0_i32_0 = arith.constant 0 : i32
    %c0_i32_1 = arith.constant 0 : i32
    return %c0_i32, %c0_i32_0 : i32, i32
  }
  func.func @transform_8(%arg0: i32, %arg1: i32) -> (i32, i32, i32) {
    %c0_i32 = arith.constant 0 : i32
    %c0_i32_0 = arith.constant 0 : i32
    return %arg0, %arg1, %c0_i32 : i32, i32, i32
  }
}

</mosaic_0001>

<bundles_post_ra>
// kernel: tpu_custom_call.1
= control target key start
LH: loop header
LB: loop body
LE: loop exit
PB: predicated region body
PF: predicated region fallthrough
CT: control target
= control target key end

     0   :  { %s11915_s0 = inlined_call_operand.hbm [shape: bf16[2,1,32,1024], index: 0, kind: input, shape index: {}]   ;;  %s11916_s1 = inlined_call_operand.vmem [shape: bf16[2,16,12], index: 1, kind: input, shape index: {}]   ;;  %s11917_s2 = inlined_call_operand.hbm [shape: bf16[2,16,80], index: 2, kind: input, shape index: {}]   ;;  %s11918_s3 = inlined_call_operand.hbm [shape: bf16[1024,1024], index: 3, kind: input, shape index: {}]   ;;  %s11919_s4 = inlined_call_operand.hbm [shape: bf16[12,1024], index: 4, kind: input, shape index: {}]   ;;  %s11920_s5 = inlined_call_operand.hbm [shape: f32[1,1024], index: 5, kind: input, shape index: {}]   ;;  %s11921_s6 = inlined_call_operand.hbm [shape: bf16[80,1024], index: 6, kind: input, shape index: {}]   ;;  %s11922_s7 = inlined_call_operand.hbm [shape: bf16[1024,1024], index: 7, kind: input, shape index: {}]   ;;  %s11923_s8 = inlined_call_operand.hbm [shape: bf16[2,16,1024], index: 8, kind: output, shape index: {}]  }
   0x1   :  { %11930 = sst [smem:[#allocation21_spill]] %s11915_s0 }
   0x2   :  { %11931 = sst [smem:[#allocation22_spill]] %s11916_s1 }
   0x3   :  { %11932 = sst [smem:[#allocation23_spill]] %s11918_s3 }
   0x4   :  { %11933 = sst [smem:[#allocation24_spill]] %s11919_s4 }
   0x5   :  { %11934 = sst [smem:[#allocation25_spill]] %s11920_s5 }
   0x6   :  { %11935 = sst [smem:[#allocation26_spill]] %s11921_s6 }
   0x7   :  { %11936 = sst [smem:[#allocation27_spill]] %s11922_s7 }
   0x8   :  { %11937 = sst [smem:[#allocation28_spill]] %s11923_s8 }
   0x9   :  { %13 = vsyncpa [#allocation3], 0 }
   0xa   :  { %15 = vsyncpa [#allocation3 + $0x1], 0 }
   0xb   :  { %16 = vsyncpa [#allocation6], 0 }
   0xc   :  { %18 = vsyncpa [#allocation6 + $0x1], 0 }
   0xd   :  { %19 = vsyncpa [#allocation9], 0 }
   0xe   :  { %20 = vsyncpa [#allocation12], 0 }
   0xf   :  { %21 = vsyncpa [#allocation4], 0 }
  0x10   :  { %23 = vsyncpa [#allocation4 + $0x1], 0  ;;  %s11107_s27 = smov 0   ;;  %s11109_s28 = smov 0  }
  0x11   :  { %s11111_s29 = smov 0   ;;  %s11113_s30 = smov 0  }
  0x12   :  { %s11115_s9 = smov 0   ;;  %s11117_s10 = smov 0  }
  0x13 LB: > { %s11138_s11 = sadd.s32 4294967295, %s11045_s10   ;;  %p9325_p0 = scmp.ge.s32.totalorder %s11045_s10, 1  ;;  %s11045_s10 = sphi %s11117_s10, %s29_s10   ;;  %s11041_s9 = sphi %s11115_s9, %s11972_s9   ;;  %s11037_s30 = sphi %s11113_s30, %s11971_s30   ;;  %s11033_s29 = sphi %s11111_s29, %s11970_s29   ;;  %s11029_s28 = sphi %s11109_s28, %s11969_s28   ;;  %s11025_s27 = sphi %s11107_s27, %s11968_s27  }
  0x14   : > { %p11925_p1 = scmp.eq.s32.totalorder %s11138_s11, 0  ;;  %p263_p2 = scmp.lt.s32.totalorder %s11045_s10, 3 }
  0x15   : > { %s11047_s13 = smov [#allocation7]   ;;  %s11048_s16 = smov [#allocation8]  }
  0x16   : > { %p11143_p3 = pnand %p9325_p0, %p263_p2  ;;  %s275_s14 = sshll.u32 %s11047_s13, 4  ;;  %s11147_s14 = int_to_ptr.vmem [resolvable:$true] %s275_s14 }
  0x17   : > { %s288_s17 = sshll.u32 %s11048_s16, 4  ;;  %s11049_s18 = smov [#allocation11]   ;;  %s11158_s17 = int_to_ptr.vmem [resolvable:$true] %s288_s17 }
  0x18   : > { %s11938_s12 = scalar_select %p11143_p3, 1, 0 }
  0x19   : > { %p10646_p4 = pneg %p11143_p3  ;;  %s11160_s19 = sshll.u32 %s11049_s18, 4  ;;  %s313_s19 = int_to_ptr.vmem [resolvable:$true] %s11160_s19 }
  0x1a   : > { %s11940_s3 = sld [smem:[#allocation23_spill]] }
  0x1b   : > { %p11154_p6 = pnand %p10646_p4, %p11925_p1 }
  0x1d   : > { %p11170_p8 = pneg %p11154_p6 }
  0x20   : > { %s10747_s22 = scalar_lea.hbm %s11940_s3, 65536 }
  0x21   : > { %p10748_p7 = scmp.ne.s32.totalorder %s11940_s3, %s10747_s22  ;;  %p10754_p11 = scmp.lt.u32.totalorder %s10747_s22, %s11940_s3 }
  0x23   : > { %p10750_p9 = pnand %p11170_p8, %p10748_p7 }
  0x25   : > { %p10751_p10 = pneg %p10750_p9 }
  0x27   : > { %p10756_p12 = pnand %p10754_p11, %p10751_p10 }
  0x29   : > { %10759 = shalt.err (!%p10756_p12)
}
  0x2a   : > { %s10760_s16 = scalar_lea.vmem %s11147_s14, 65536  ;;  %p10768_p4 = scmp.lt.s32.totalorder %s11147_s14, %s11147_s14 }
  0x2b   : > { %p10761_p13 = scmp.ne.s32.totalorder %s11147_s14, %s10760_s16  ;;  %p10769_p5 = scmp.lt.s32.totalorder %s10760_s16, %s10760_s16 }
  0x2d   : > { %p10763_p0 = pnand %p10761_p13, %p11170_p8  ;;  %p10770_p7 = por %p10769_p5, %p10768_p4 }
  0x2f   : > { %p10764_p2 = pneg %p10763_p0 }
  0x31   : > { %p10771_p9 = pnand %p10770_p7, %p10764_p2 }
  0x33   : > { %10774 = shalt.err (!%p10771_p9)
}
  0x34   : > { %s11927_s18 = smov 512   ;;  %s11928_s20 = smov 32  }
  0x35   : > { %10649 = dma.hbm_to_vmem [thread:$0]  (!%p11154_p6), %s11940_s3, 65536, %s11147_s14, [#allocation6], %s11927_s18, %s11927_s18, %s11928_s20  }
  0x36   : > { %s11942_s4 = sld [smem:[#allocation24_spill]] }
  0x3c   : > { %s10775_s26 = scalar_lea.hbm %s11942_s4, 1024 }
  0x3d   : > { %p10776_p5 = scmp.ne.s32.totalorder %s11942_s4, %s10775_s26  ;;  %p10782_p12 = scmp.lt.u32.totalorder %s10775_s26, %s11942_s4 }
  0x3f   : > { %p10778_p10 = pnand %p10776_p5, %p11170_p8 }
  0x41   : > { %p10779_p11 = pneg %p10778_p10 }
  0x43   : > { %p10784_p13 = pnand %p10782_p12, %p10779_p11 }
  0x45   : > { %10787 = shalt.err (!%p10784_p13)
}
  0x46   : > { %s10788_s14 = scalar_lea.vmem %s11158_s17, 1024  ;;  %p10796_p7 = scmp.lt.s32.totalorder %s11158_s17, %s11158_s17 }
  0x47   : > { %p10789_p0 = scmp.ne.s32.totalorder %s11158_s17, %s10788_s14  ;;  %p10797_p9 = scmp.lt.s32.totalorder %s10788_s14, %s10788_s14 }
  0x49   : > { %p10791_p2 = pnand %p10789_p0, %p11170_p8  ;;  %p10798_p5 = por %p10797_p9, %p10796_p7 }
  0x4b   : > { %p10792_p4 = pneg %p10791_p2 }
  0x4d   : > { %p10799_p10 = pnand %p10798_p5, %p10792_p4 }
  0x4f   : > { %10802 = shalt.err (!%p10799_p10)
}
  0x50   : > { %10652 = dma.hbm_to_vmem [thread:$0]  (!%p11154_p6), %s11942_s4, 1024, %s11158_s17, [#allocation9], %s11927_s18, %s11927_s18, %s11928_s20  }
  0x51   : > { %s11943_s6 = sld [smem:[#allocation26_spill]] }
  0x57   : > { %s10803_s23 = scalar_lea.hbm %s11943_s6, 5120 }
  0x58   : > { %p10804_p11 = scmp.ne.s32.totalorder %s11943_s6, %s10803_s23  ;;  %p10810_p0 = scmp.lt.u32.totalorder %s10803_s23, %s11943_s6 }
  0x5a   : > { %p10806_p12 = pnand %p10804_p11, %p11170_p8 }
  0x5c   : > { %p10807_p13 = pneg %p10806_p12 }
  0x5e   : > { %p10812_p2 = pnand %p10810_p0, %p10807_p13 }
  0x60   : > { %10815 = shalt.err (!%p10812_p2)
}
  0x61   : > { %s10816_s14 = scalar_lea.vmem %s313_s19, 5120  ;;  %p10824_p5 = scmp.lt.s32.totalorder %s313_s19, %s313_s19 }
  0x62   : > { %p10817_p4 = scmp.ne.s32.totalorder %s313_s19, %s10816_s14  ;;  %p10825_p10 = scmp.lt.s32.totalorder %s10816_s14, %s10816_s14 }
  0x64   : > { %p10819_p7 = pnand %p10817_p4, %p11170_p8  ;;  %p10826_p1 = por %p10825_p10, %p10824_p5 }
  0x66   : > { %p10820_p9 = pneg %p10819_p7 }
  0x68   : > { %p10827_p3 = pnand %p10826_p1, %p10820_p9 }
  0x6a   : > { %10830 = shalt.err (!%p10827_p3)
}
  0x6b   : > { %10658 = dma.hbm_to_vmem [thread:$0]  (!%p11154_p6), %s11943_s6, 5120, %s313_s19, [#allocation12], %s11927_s18, %s11927_s18, %s11928_s20  }
  0x6c   : > { %s11052_s8 = smov [#allocation10]   ;;  %s11053_s22 = smov [#allocation13]  }
  0x6d   : > { %s302_s21 = sshll.u32 %s11052_s8, 4  ;;  %s325_s23 = sshll.u32 %s11053_s22, 4  ;;  %s303_s21 = int_to_ptr.vmem [resolvable:$true] %s302_s21  ;;  %s326_s23 = int_to_ptr.vmem [resolvable:$true] %s325_s23 }
  0x6e   : > { %s11944_s5 = sld [smem:[#allocation25_spill]] }
  0x74   : > { %s10831_s13 = scalar_lea.hbm %s11944_s5, 128 }
  0x75   : > { %p10832_p1 = scmp.ne.s32.totalorder %s11944_s5, %s10831_s13  ;;  %p10838_p12 = scmp.lt.u32.totalorder %s10831_s13, %s11944_s5 }
  0x77   : > { %p10834_p3 = pnand %p10832_p1, %p11170_p8 }
  0x79   : > { %p10835_p11 = pneg %p10834_p3 }
  0x7b   : > { %p10840_p13 = pnand %p10838_p12, %p10835_p11 }
  0x7d   : > { %10843 = shalt.err (!%p10840_p13)
}
  0x7e   : > { %s10844_s19 = scalar_lea.vmem %s303_s21, 128  ;;  %p10852_p7 = scmp.lt.s32.totalorder %s303_s21, %s303_s21 }
  0x7f   : > { %p10845_p0 = scmp.ne.s32.totalorder %s303_s21, %s10844_s19  ;;  %p10853_p9 = scmp.lt.s32.totalorder %s10844_s19, %s10844_s19 }
  0x81   : > { %p10847_p2 = pnand %p10845_p0, %p11170_p8  ;;  %p10854_p5 = por %p10853_p9, %p10852_p7 }
  0x83   : > { %p10848_p4 = pneg %p10847_p2 }
  0x85   : > { %p10855_p10 = pnand %p10854_p5, %p10848_p4 }
  0x87   : > { %10858 = shalt.err (!%p10855_p10)
}
  0x88   : > { %10655 = dma.hbm_to_vmem [thread:$0]  (!%p11154_p6), %s11944_s5, 128, %s303_s21, [#allocation9]  }
  0x89   : > { %s11945_s7 = sld [smem:[#allocation27_spill]] }
  0x8f   : > { %s10859_s24 = scalar_lea.hbm %s11945_s7, 65536 }
  0x90   : > { %p10860_p1 = scmp.ne.s32.totalorder %s11945_s7, %s10859_s24  ;;  %p10866_p12 = scmp.lt.u32.totalorder %s10859_s24, %s11945_s7 }
  0x92   : > { %p10862_p3 = pnand %p10860_p1, %p11170_p8 }
  0x94   : > { %p10863_p11 = pneg %p10862_p3 }
  0x96   : > { %p10868_p13 = pnand %p10866_p12, %p10863_p11 }
  0x98   : > { %10871 = shalt.err (!%p10868_p13)
}
  0x99   : > { %s10872_s17 = scalar_lea.vmem %s326_s23, 65536  ;;  %p10880_p7 = scmp.lt.s32.totalorder %s326_s23, %s326_s23 }
  0x9a   : > { %p10873_p0 = scmp.ne.s32.totalorder %s326_s23, %s10872_s17  ;;  %p10881_p9 = scmp.lt.s32.totalorder %s10872_s17, %s10872_s17 }
  0x9c   : > { %p10875_p2 = pnand %p10873_p0, %p11170_p8  ;;  %p10882_p5 = por %p10881_p9, %p10880_p7 }
  0x9e   : > { %p10876_p4 = pneg %p10875_p2 }
  0xa0   : > { %p10883_p10 = pnand %p10882_p5, %p10876_p4 }
  0xa2   : > { %10886 = shalt.err (!%p10883_p10)
}
  0xa3   : > { %10661 = dma.hbm_to_vmem [thread:$0]  (!%p11154_p6), %s11945_s7, 65536, %s326_s23, [#allocation12], %s11927_s18, %s11927_s18, %s11928_s20  }
  0xa4   : > { %s9324_s15 = sadd.s32 4294967294, %s11045_s10   ;;  %s41_s25 = sadd.s32 1, %s11041_s9 }
  0xa5   : > { %s50_s1 = sadd.s32 1, %s11033_s29  ;;  %p43_p8 = scmp.ge.s32.totalorder %s41_s25, 2 }
  0xa6   : > { %p57_p1 = scmp.ne.s32.totalorder %s11033_s29, %s11029_s28  ;;  %p58_p3 = scmp.eq.s32.totalorder %s11045_s10, 0 }
  0xa7   : > { %p63_p11 = scmp.ne.s32.totalorder %s11029_s28, %s11025_s27  ;;  %s11974_s25 = smov (%p43_p8, %s41_s25), 0 }
  0xa8   : > { %p11291_p12 = por %p58_p3, %p57_p1  ;;  %p11947_p13 = scmp.eq.s32.totalorder %s11138_s11, 0 }
  0xa9   : > { %s45_s3 = ssub.s32 %s11041_s9, %s11974_s25  ;;  %p250_p0 = scmp.eq.s32.totalorder %s11138_s11, 1 }
  0xaa   : > { %p11297_p6 = por %p11947_p13, %p63_p11  ;;  %p48_p2 = scmp.eq.s32.totalorder %s45_s3, 0 }
  0xab   : > { %p256_p4 = scmp.eq.s32.totalorder %s9324_s15, 1  ;;  %p11304_p7 = por %p250_p0, %p57_p1 }
  0xac   : > { %p10678_p9 = scmp.lt.s32.totalorder %s11045_s10, 2  ;;  %s11317_s13 = sand.u32 1, %s11033_s29  }
  0xad   : > { %s11949_s22 = scalar_select %p11304_p7, 1, 0 }
  0xae   : > { %s11310_s24 = scalar_select %p48_p2, %s11033_s29, %s50_s1  }
  0xaf   : > { %p11312_p5 = por %p256_p4, %p63_p11  ;;  %s9332_s16 = sshll.u32 %s11317_s13, 7 }
  0xb0   : > { %s10464_s14 = sshll.u32 %s11041_s9, 11  ;;  %s11951_s0 = sld [smem:[#allocation21_spill]] }
  0xb1   : > { %s11950_s26 = scalar_select %p11312_p5, 1, 0 }
  0xb2   : > { %s343_s15 = scalar_lea.vmem [#allocation2], %s9332_s16  ;;  %p11330_p10 = pnand %p10678_p9, %p11291_p12 }
  0xb3   : > { %s352_s1 = sshll.u32 %s343_s15, 4  ;;  %s9335_s20 = sshll.u32 %s11317_s13, 3  ;;  %s11326_s1 = int_to_ptr.vmem [resolvable:$true] %s352_s1 }
  0xb4   : > { %s340_s17 = scalar_lea.sflag [#allocation3], %s11317_s13  ;;  %p10889_p1 = pneg %p11330_p10 }
  0xb6   : > { %s11324_s19 = scalar_lea.hbm %s11951_s0, %s10464_s14  ;;  %s10892_s8 = scalar_lea.hbm %s11951_s0, 4096 }
  0xb7   : > { %s10887_s14 = scalar_lea.hbm %s11324_s19, 2048  ;;  %p10893_p12 = scmp.lt.u32.totalorder %s11324_s19, %s11951_s0 }
  0xb8   : > { %p10888_p8 = scmp.ne.s32.totalorder %s11324_s19, %s10887_s14  ;;  %p10894_p13 = scmp.lt.u32.totalorder %s10892_s8, %s10887_s14 }
  0xb9   : > { %p10896_p2 = scmp.lt.u32.totalorder %s10887_s14, %s11324_s19 }
  0xba   : > { %p10890_p3 = pnand %p10889_p1, %p10888_p8  ;;  %p10895_p0 = por %p10894_p13, %p10893_p12 }
  0xbc   : > { %p10891_p11 = pneg %p10890_p3  ;;  %p10897_p4 = por %p10896_p2, %p10895_p0 }
  0xbe   : > { %p10898_p9 = pnand %p10897_p4, %p10891_p11 }
  0xc0   : > { %10901 = shalt.err (!%p10898_p9)
}
  0xc1   : > { %s10902_s18 = scalar_lea.vmem %s11326_s1, 2048  ;;  %s11054_s16 = smov [#allocation2]  }
  0xc2   : > { %p10903_p8 = scmp.ne.s32.totalorder %s11326_s1, %s10902_s18  ;;  %s10907_s21 = sshll.u32 %s11054_s16, 4  ;;  %s10908_s21 = int_to_ptr.vmem [resolvable:$false] %s10907_s21 }
  0xc3   : > { %s10909_s4 = scalar_lea.vmem %s10908_s21, 4096  ;;  %p10910_p7 = scmp.lt.s32.totalorder %s11326_s1, %s10908_s21 }
  0xc4   : > { %p10905_p3 = pnand %p10903_p8, %p10889_p1  ;;  %p10911_p12 = scmp.lt.s32.totalorder %s10909_s4, %s10902_s18 }
  0xc6   : > { %p10906_p5 = pneg %p10905_p3  ;;  %p10912_p13 = por %p10911_p12, %p10910_p7 }
  0xc8   : > { %p10913_p0 = pnand %p10912_p13, %p10906_p5 }
  0xca   : > { %10916 = shalt.err (!%p10913_p0)
}
  0xcb   : > { %s11953_s14 = smov 32   ;;  %s11954_s8 = smov 512  }
  0xcc   : > { %10665 = dma.hbm_to_vmem [thread:$0]  (!%p11330_p10), %s11324_s19, 2048, %s11326_s1, %s340_s17, %s11954_s8, %s11954_s8, %s11953_s14  }
  0xcd   : > { %s10465_s15 = sshll.u32 %s11041_s9, 7  ;;  %s379_s4 = scalar_lea.vmem [#allocation5], %s9335_s20 }
  0xce   : > { %s11371_s21 = scalar_lea.hbm %s11917_s2, %s10465_s15  ;;  %s388_s0 = sshll.u32 %s379_s4, 4  ;;  %s11375_s0 = int_to_ptr.vmem [resolvable:$true] %s388_s0 }
  0xcf   : > { %s11955_s5 = sand.u32 1, %s11045_s10   ;;  %s10917_s7 = scalar_lea.hbm %s11371_s21, 128 }
  0xd0   : > { %s11379_s6 = scalar_lea.sflag [#allocation6], %s11955_s5  ;;  %p10918_p7 = scmp.ne.s32.totalorder %s11371_s21, %s10917_s7 }
  0xd1   : > { %s10922_s13 = scalar_lea.hbm %s11917_s2, 256  ;;  %p10923_p2 = scmp.lt.u32.totalorder %s11371_s21, %s11917_s2 }
  0xd2   : > { %p10920_p5 = pnand %p10918_p7, %p10889_p1  ;;  %p10924_p4 = scmp.lt.u32.totalorder %s10922_s13, %s10917_s7 }
  0xd3   : > { %p10926_p8 = scmp.lt.u32.totalorder %s10917_s7, %s11371_s21 }
  0xd4   : > { %p10921_p11 = pneg %p10920_p5  ;;  %p10925_p9 = por %p10924_p4, %p10923_p2 }
  0xd6   : > { %p10927_p3 = por %p10926_p8, %p10925_p9 }
  0xd8   : > { %p10928_p12 = pnand %p10927_p3, %p10921_p11 }
  0xda   : > { %10931 = shalt.err (!%p10928_p12)
}
  0xdb   : > { %s10932_s5 = scalar_lea.vmem %s11375_s0, 128  ;;  %s11055_s20 = smov [#allocation5]  }
  0xdc   : > { %p10933_p13 = scmp.ne.s32.totalorder %s11375_s0, %s10932_s5  ;;  %s10937_s8 = sshll.u32 %s11055_s20, 4  ;;  %s10938_s8 = int_to_ptr.vmem [resolvable:$false] %s10937_s8 }
  0xdd   : > { %s10939_s15 = scalar_lea.vmem %s10938_s8, 256  ;;  %p10940_p5 = scmp.lt.s32.totalorder %s11375_s0, %s10938_s8 }
  0xde   : > { %p10935_p0 = pnand %p10933_p13, %p10889_p1  ;;  %p10941_p2 = scmp.lt.s32.totalorder %s10939_s15, %s10932_s5 }
  0xe0   : > { %p10936_p7 = pneg %p10935_p0  ;;  %p10942_p4 = por %p10941_p2, %p10940_p5 }
  0xe2   : > { %p10943_p9 = pnand %p10942_p4, %p10936_p7 }
  0xe4   : > { %10946 = shalt.err (!%p10943_p9)
}
  0xe5   : > { %s11056_s7 = smov 64   ;;  %s11057_s16 = smov 4  }
  0xe6   : > { %10668 = dma.hbm_to_vmem [thread:$0]  (!%p11330_p10), %s11371_s21, 128, %s11375_s0, %s11379_s6, %s11056_s7, %s11056_s7, %s11057_s16  }
  0xe7   : > { %p11956_p1 = scmp.ne.s32.totalorder %s11938_s12, 0 }
  0xe8   : > { %s11408_s18 = sand.u32 (!%p11956_p1), 1, %s11029_s28  }
  0xe9   : > { %400 = sbr.rel (%p11956_p1) target bundleno = 1715 (0x6b3), region = 52  ;;  %s9339_s4 = sshll.u32 (!%p11956_p1), %s11408_s18, 7 }
  0xea   : > { %s403_s19 = scalar_lea.sflag (!%p11956_p1), [#allocation3], %s11408_s18  ;;  %s11412_s1 = scalar_lea.vmem (!%p11956_p1), [#allocation2], %s9339_s4 }
  0xf0   : > { %11000 = dma.done.wait (%p11297_p6), %s403_s19, 2048  }
  0xf1   : > { %11002 = vsyncadd (%p11297_p6), %s403_s19, 4294965248  ;;  %s411_s0 = sand.u32 1, %s11138_s11   ;;  %s9340_s6 = sshll.u32 %s11408_s18, 3 }
  0xf2   : > { %s412_s12 = scalar_lea.sflag [#allocation6], %s411_s0  ;;  %s11420_s3 = scalar_lea.vmem [#allocation5], %s9340_s6 }
  0xf3   : > { %11004 = dma.done.wait (%p11297_p6), %s412_s12, 128  }
  0xf4   : > { %11006 = vsyncadd (%p11297_p6), %s412_s12, 4294967168  ;;  %p11957_p10 = scmp.eq.s32.totalorder %s11138_s11, 0 }
  0xf6   : > { %11008 = dma.done.wait (%p11957_p10), [#allocation6], 65536   ;;  %p11958_p11 = pmov %p11957_p10 }
  0xf7   : > { %p11959_p8 = pmov %p11957_p10 }
  0xf8   : > { %11010 = vsyncadd (%p11958_p11), [#allocation6], 4294901760 }
  0xf9   : > { %11012 = dma.done.wait (%p11959_p8), [#allocation9], 1152   ;;  %p11960_p3 = pmov %p11959_p8 }
  0xfb   : > { %11014 = vsyncadd (%p11960_p3), [#allocation9], 4294966144  ;;  %p11961_p12 = pmov %p11960_p3 }
  0xfc   : > { %p11962_p13 = pmov %p11960_p3 }
  0xfd   : > { %11016 = dma.done.wait (%p11961_p12), [#allocation12], 70656  }
  0xfe   : > { %11018 = vsyncadd (%p11962_p13), [#allocation12], 4294896640  ;;  %v511_v0 = vld [vmem:[#allocation7] sm:$0xff]  ;;  %v512_v2 = vld [vmem:[#allocation7 + $0x8] sm:$0xff]  ;;  %p483_p6 = scmp.lt.s32.totalorder %s11037_s30, 1  ;;  %s11963_s17 = sld [smem:[#allocation22_spill]] }
  0xff   : > { %v515_v1 = vld [vmem:[#allocation7 + $0x20] sm:$0xff]  ;;  %v516_v4 = vld [vmem:[#allocation7 + $0x28] sm:$0xff]  ;;  %v11439_v53 = vld [vmem:[%s11412_s1] sm:$0xff]  ;;  %vm4562_vm0 = vcmask 1045504   ;;  %vm4558_vm1 = vcmask 97280   ;;  %vm5064_vm2 = vcmask 654336  }
 0x100   : > { %v9366_v3 = vcombine.high %v511_v0, %v515_v1  ;;  %v9365_v5 = vcombine.low %v511_v0, %v515_v1  ;;  %v519_v6 = vld [vmem:[#allocation7 + $0x40] sm:$0xff]  ;;  %v9368_v8 = vcombine.high %v512_v2, %v516_v4  ;;  %v9367_v9 = vcombine.low %v512_v2, %v516_v4  ;;  %v520_v11 = vld [vmem:[#allocation7 + $0x48] sm:$0xff]  ;;  %v11442_v54 = vld [vmem:[%s11412_s1 + $0x20] sm:$0xff]  ;;  %s484_s11 = scalar_select %p483_p6, %s11037_s30, 1 }
 0x101   : > { %v523_v7 = vld [vmem:[#allocation7 + $0x60] sm:$0xff]  ;;  %v524_v12 = vld [vmem:[#allocation7 + $0x68] sm:$0xff]  ;;  %v11446_v58 = vcombine.high %v11439_v53, %v11442_v54  ;;  %s9346_s5 = sshll.u32 %s11408_s18, 6  ;;  %s10475_s15 = sshll.u32 %s11037_s30, 10 }
 0x102   : > { %v9374_v10 = vcombine.high %v519_v6, %v523_v7  ;;  %v527_v13 = vld [vmem:[#allocation7 + $0x80] sm:$0xff]  ;;  %3663 = vmatprep.subr.bf16.mxu0 %v9366_v3  ;;  %v9376_v14 = vcombine.high %v520_v11, %v524_v12  ;;  %v528_v16 = vld [vmem:[#allocation7 + $0x88] sm:$0xff]  ;;  %3875 = vmatprep.subr.bf16.mxu1 %v9368_v8  ;;  %v9373_v18 = vcombine.low %v519_v6, %v523_v7  ;;  %s10466_s23 = sshll.u32 %s484_s11, 3  ;;  %s11847_s20 = scalar_lea.vmem [#allocation14], %s9346_s5 }
 0x103   : > { %v531_v15 = vld [vmem:[#allocation7 + $0xa0] sm:$0xff]  ;;  %v532_v17 = vld [vmem:[#allocation7 + $0xa8] sm:$0xff]  ;;  %3664 = vmatpush1.bf16.msra.mxu0 %v9365_v5  ;;  %3876 = vmatpush1.bf16.msra.mxu1 %v9367_v9  ;;  %v9375_v19 = vcombine.low %v520_v11, %v524_v12  ;;  %s9145_s8 = sshll.u32 %s11847_s20, 4  ;;  %s11964_s4 = sld [smem:[#allocation28_spill]]  ;;  %s11857_s8 = int_to_ptr.vmem [resolvable:$true] %s9145_s8 }
 0x104   : > { %3665 = vmatprep.subr.bf16.mxu0 %v9374_v10  ;;  %v9382_v20 = vcombine.high %v527_v13, %v531_v15  ;;  %3877 = vmatprep.subr.bf16.mxu1 %v9376_v14  ;;  %v9384_v21 = vcombine.high %v528_v16, %v532_v17  ;;  %v535_v22 = vld [vmem:[#allocation7 + $0xc0] sm:$0xff]  ;;  %v536_v24 = vld [vmem:[#allocation7 + $0xc8] sm:$0xff]  ;;  %v9381_v26 = vcombine.low %v527_v13, %v531_v15  ;;  %s11573_s14 = scalar_lea.vmem %s11963_s17, %s10466_s23  ;;  %s9129_s19 = scalar_lea.sflag [#allocation4], %s11408_s18 }
 0x105   : > { %v539_v23 = vld [vmem:[#allocation7 + $0xe0] sm:$0xff]  ;;  %v540_v25 = vld [vmem:[#allocation7 + $0xe8] sm:$0xff]  ;;  %v9383_v27 = vcombine.low %v528_v16, %v532_v17  ;;  %3695 = vmatprep.mubr.bf16.mxu0 %v11446_v58  ;;  %3907 = vmatprep.mubr.bf16.mxu1 %v11446_v58  ;;  %p11965_p7 = scmp.ne.s32.totalorder %s11949_s22, 0  ;;  %s11059_s0 = smov [#allocation14]  }
 0x106   : > { %v9390_v28 = vcombine.high %v535_v22, %v539_v23  ;;  %v9392_v29 = vcombine.high %v536_v24, %v540_v25  ;;  %v543_v30 = vld [vmem:[#allocation7 + $0x100] sm:$0xff]  ;;  %v544_v32 = vld [vmem:[#allocation7 + $0x108] sm:$0xff]  ;;  %v9389_v34 = vcombine.low %v535_v22, %v539_v23  ;;  %v9391_v35 = vcombine.low %v536_v24, %v540_v25  ;;  %s10951_s6 = sshll.u32 %s11059_s0, 4  ;;  %s10952_s6 = int_to_ptr.vmem [resolvable:$false] %s10951_s6 }
 0x107   : > { %3666 = vmatpush1.bf16.msra.mxu0 %v9373_v18  ;;  %3878 = vmatpush1.bf16.msra.mxu1 %v9375_v19  ;;  %v547_v31 = vld [vmem:[#allocation7 + $0x120] sm:$0xff]  ;;  %v548_v33 = vld [vmem:[#allocation7 + $0x128] sm:$0xff]  ;;  %s10953_s12 = scalar_lea.vmem %s10952_s6, 2048  ;;  %p10954_p4 = scmp.lt.s32.totalorder %s11857_s8, %s10952_s6 }
 0x108   : > { %3667 = vmatprep.subr.bf16.mxu0 %v9382_v20  ;;  %3879 = vmatprep.subr.bf16.mxu1 %v9384_v21  ;;  %v9398_v36 = vcombine.high %v543_v30, %v547_v31  ;;  %v9400_v37 = vcombine.high %v544_v32, %v548_v33  ;;  %v551_v38 = vld [vmem:[#allocation7 + $0x140] sm:$0xff]  ;;  %v552_v40 = vld [vmem:[#allocation7 + $0x148] sm:$0xff]  ;;  %v9397_v42 = vcombine.low %v543_v30, %v547_v31 }
 0x109   : > { %v555_v39 = vld [vmem:[#allocation7 + $0x160] sm:$0xff]  ;;  %v556_v41 = vld [vmem:[#allocation7 + $0x168] sm:$0xff]  ;;  %v9399_v43 = vcombine.low %v544_v32, %v548_v33  ;;  %s11863_s30 = scalar_lea.hbm %s11964_s4, %s10475_s15 }
 0x10a   : > { %v9406_v44 = vcombine.high %v551_v38, %v555_v39  ;;  %v9408_v45 = vcombine.high %v552_v40, %v556_v41  ;;  %v559_v46 = vld [vmem:[#allocation7 + $0x180] sm:$0xff]  ;;  %v560_v48 = vld [vmem:[#allocation7 + $0x188] sm:$0xff]  ;;  %v9405_v50 = vcombine.low %v551_v38, %v555_v39  ;;  %v9407_v51 = vcombine.low %v552_v40, %v556_v41 }
 0x10b   : > { %3668 = vmatpush1.bf16.msra.mxu0 %v9381_v26  ;;  %3880 = vmatpush1.bf16.msra.mxu1 %v9383_v27  ;;  %v563_v47 = vld [vmem:[#allocation7 + $0x1a0] sm:$0xff]  ;;  %v564_v49 = vld [vmem:[#allocation7 + $0x1a8] sm:$0xff] }
 0x10c   : > { %3669 = vmatprep.subr.bf16.mxu0 %v9390_v28  ;;  %3881 = vmatprep.subr.bf16.mxu1 %v9392_v29  ;;  %v9414_v52 = vcombine.high %v559_v46, %v563_v47  ;;  %v9416_v55 = vcombine.high %v560_v48, %v564_v49  ;;  %v567_v56 = vld [vmem:[#allocation7 + $0x1c0] sm:$0xff]  ;;  %v568_v59 = vld [vmem:[#allocation7 + $0x1c8] sm:$0xff]  ;;  %v9413_v61 = vcombine.low %v559_v46, %v563_v47 }
 0x10d   : > { %v571_v57 = vld [vmem:[#allocation7 + $0x1e0] sm:$0xff]  ;;  %v572_v60 = vld [vmem:[#allocation7 + $0x1e8] sm:$0xff]  ;;  %v9415_v62 = vcombine.low %v560_v48, %v564_v49 }
 0x10e   : > { %v9422_v63 = vcombine.high %v567_v56, %v571_v57  ;;  %v9424_v0 = vcombine.high %v568_v59, %v572_v60  ;;  %v575_v1 = vld [vmem:[#allocation7 + $0x200] sm:$0xff]  ;;  %v576_v3 = vld [vmem:[#allocation7 + $0x208] sm:$0xff]  ;;  %v9421_v5 = vcombine.low %v567_v56, %v571_v57  ;;  %v9423_v6 = vcombine.low %v568_v59, %v572_v60 }
 0x10f   : > { %3670 = vmatpush1.bf16.msra.mxu0 %v9389_v34  ;;  %3882 = vmatpush1.bf16.msra.mxu1 %v9391_v35  ;;  %v579_v2 = vld [vmem:[#allocation7 + $0x220] sm:$0xff]  ;;  %v580_v4 = vld [vmem:[#allocation7 + $0x228] sm:$0xff] }
 0x110   : > { %3671 = vmatprep.subr.bf16.mxu0 %v9398_v36  ;;  %3883 = vmatprep.subr.bf16.mxu1 %v9400_v37  ;;  %v9430_v7 = vcombine.high %v575_v1, %v579_v2  ;;  %v9432_v8 = vcombine.high %v576_v3, %v580_v4  ;;  %v583_v9 = vld [vmem:[#allocation7 + $0x240] sm:$0xff]  ;;  %v584_v11 = vld [vmem:[#allocation7 + $0x248] sm:$0xff]  ;;  %v9429_v13 = vcombine.low %v575_v1, %v579_v2 }
 0x111   : > { %v587_v10 = vld [vmem:[#allocation7 + $0x260] sm:$0xff]  ;;  %v588_v12 = vld [vmem:[#allocation7 + $0x268] sm:$0xff]  ;;  %v9431_v14 = vcombine.low %v576_v3, %v580_v4 }
 0x112   : > { %v9438_v15 = vcombine.high %v583_v9, %v587_v10  ;;  %v9440_v16 = vcombine.high %v584_v11, %v588_v12  ;;  %v591_v17 = vld [vmem:[#allocation7 + $0x280] sm:$0xff]  ;;  %v592_v19 = vld [vmem:[#allocation7 + $0x288] sm:$0xff]  ;;  %v9437_v21 = vcombine.low %v583_v9, %v587_v10  ;;  %v9439_v22 = vcombine.low %v584_v11, %v588_v12 }
 0x113   : > { %3672 = vmatpush1.bf16.msra.mxu0 %v9397_v42  ;;  %3884 = vmatpush1.bf16.msra.mxu1 %v9399_v43  ;;  %v595_v18 = vld [vmem:[#allocation7 + $0x2a0] sm:$0xff]  ;;  %v596_v20 = vld [vmem:[#allocation7 + $0x2a8] sm:$0xff] }
 0x114   : > { %3673 = vmatprep.subr.bf16.mxu0 %v9406_v44  ;;  %3885 = vmatprep.subr.bf16.mxu1 %v9408_v45  ;;  %v9446_v23 = vcombine.high %v591_v17, %v595_v18  ;;  %v9448_v24 = vcombine.high %v592_v19, %v596_v20  ;;  %v599_v25 = vld [vmem:[#allocation7 + $0x2c0] sm:$0xff]  ;;  %v600_v27 = vld [vmem:[#allocation7 + $0x2c8] sm:$0xff]  ;;  %v9445_v29 = vcombine.low %v591_v17, %v595_v18  ;;  %v503_v17 = vld [vmem:[%s11412_s1 + $0x40] sm:$0xff] }
 0x115   : > { %v603_v26 = vld [vmem:[#allocation7 + $0x2e0] sm:$0xff]  ;;  %v604_v28 = vld [vmem:[#allocation7 + $0x2e8] sm:$0xff]  ;;  %v9447_v30 = vcombine.low %v592_v19, %v596_v20  ;;  %v507_v18 = vld [vmem:[%s11412_s1 + $0x60] sm:$0xff] }
 0x116   : > { %v9454_v31 = vcombine.high %v599_v25, %v603_v26  ;;  %v9456_v32 = vcombine.high %v600_v27, %v604_v28  ;;  %v607_v33 = vld [vmem:[#allocation7 + $0x300] sm:$0xff]  ;;  %v608_v35 = vld [vmem:[#allocation7 + $0x308] sm:$0xff]  ;;  %v9453_v37 = vcombine.low %v599_v25, %v603_v26  ;;  %v9455_v38 = vcombine.low %v600_v27, %v604_v28 }
 0x117   : > { %3674 = vmatpush1.bf16.msra.mxu0 %v9405_v50  ;;  %3886 = vmatpush1.bf16.msra.mxu1 %v9407_v51  ;;  %v611_v34 = vld [vmem:[#allocation7 + $0x320] sm:$0xff]  ;;  %v612_v36 = vld [vmem:[#allocation7 + $0x328] sm:$0xff]  ;;  %v11456_v25 = vcombine.high %v503_v17, %v507_v18 }
 0x118   : > { %3675 = vmatprep.subr.bf16.mxu0 %v9414_v52  ;;  %3887 = vmatprep.subr.bf16.mxu1 %v9416_v55  ;;  %v9462_v39 = vcombine.high %v607_v33, %v611_v34  ;;  %v9464_v40 = vcombine.high %v608_v35, %v612_v36  ;;  %v615_v41 = vld [vmem:[#allocation7 + $0x340] sm:$0xff]  ;;  %v616_v43 = vld [vmem:[#allocation7 + $0x348] sm:$0xff]  ;;  %v9461_v45 = vcombine.low %v607_v33, %v611_v34 }
 0x119   : > { %v619_v42 = vld [vmem:[#allocation7 + $0x360] sm:$0xff]  ;;  %v620_v44 = vld [vmem:[#allocation7 + $0x368] sm:$0xff]  ;;  %v9463_v46 = vcombine.low %v608_v35, %v612_v36  ;;  %v11462_v34 = vcombine.low %v503_v17, %v507_v18  ;;  %v11465_v35 = vld [vmem:[%s11412_s1 + $0x8] sm:$0xff] }
 0x11a   : > { %v9470_v47 = vcombine.high %v615_v41, %v619_v42  ;;  %v9472_v48 = vcombine.high %v616_v43, %v620_v44  ;;  %v623_v49 = vld [vmem:[#allocation7 + $0x380] sm:$0xff]  ;;  %v624_v51 = vld [vmem:[#allocation7 + $0x388] sm:$0xff]  ;;  %v9469_v55 = vcombine.low %v615_v41, %v619_v42  ;;  %v9471_v56 = vcombine.low %v616_v43, %v620_v44  ;;  %v11468_v36 = vld [vmem:[%s11412_s1 + $0x28] sm:$0xff] }
 0x11b   : > { %3676 = vmatpush1.bf16.msra.mxu0 %v9413_v61  ;;  %3888 = vmatpush1.bf16.msra.mxu1 %v9415_v62  ;;  %v627_v50 = vld [vmem:[#allocation7 + $0x3a0] sm:$0xff]  ;;  %v628_v52 = vld [vmem:[#allocation7 + $0x3a8] sm:$0xff]  ;;  %v11472_v43 = vcombine.high %v11465_v35, %v11468_v36 }
 0x11c   : > { %3677 = vmatprep.subr.bf16.mxu0 %v9422_v63  ;;  %3889 = vmatprep.subr.bf16.mxu1 %v9424_v0  ;;  %v9478_v57 = vcombine.high %v623_v49, %v627_v50  ;;  %v9480_v59 = vcombine.high %v624_v51, %v628_v52  ;;  %v631_v60 = vld [vmem:[#allocation7 + $0x3c0] sm:$0xff]  ;;  %v632_v62 = vld [vmem:[#allocation7 + $0x3c8] sm:$0xff]  ;;  %v9477_v0 = vcombine.low %v623_v49, %v627_v50 }
 0x11d   : > { %v635_v61 = vld [vmem:[#allocation7 + $0x3e0] sm:$0xff]  ;;  %v636_v63 = vld [vmem:[#allocation7 + $0x3e8] sm:$0xff]  ;;  %v9479_v1 = vcombine.low %v624_v51, %v628_v52 }
 0x11e   : > { %v9486_v2 = vcombine.high %v631_v60, %v635_v61  ;;  %v9488_v3 = vcombine.high %v632_v62, %v636_v63  ;;  %v639_v4 = vld [vmem:[#allocation7 + $0x400] sm:$0xff]  ;;  %v9487_v9 = vcombine.low %v632_v62, %v636_v63  ;;  %v656_v26 = vld [vmem:[#allocation7 + $0x488] sm:$0xff] }
 0x11f   : > { %3678 = vmatpush1.bf16.msra.mxu0 %v9421_v5  ;;  %3890 = vmatpush1.bf16.msra.mxu1 %v9423_v6  ;;  %v643_v5 = vld [vmem:[#allocation7 + $0x420] sm:$0xff]  ;;  %v640_v6 = vld [vmem:[#allocation7 + $0x408] sm:$0xff] }
 0x120   : > { %3679 = vmatprep.subr.bf16.mxu0 %v9430_v7  ;;  %3891 = vmatprep.subr.bf16.mxu1 %v9432_v8  ;;  %v644_v7 = vld [vmem:[#allocation7 + $0x428] sm:$0xff]  ;;  %v9485_v8 = vcombine.low %v631_v60, %v635_v61  ;;  %v9494_v10 = vcombine.high %v639_v4, %v643_v5  ;;  %v647_v12 = vld [vmem:[#allocation7 + $0x440] sm:$0xff]  ;;  %v9493_v19 = vcombine.low %v639_v4, %v643_v5 }
 0x121   : > { %v9496_v11 = vcombine.high %v640_v6, %v644_v7  ;;  %v9495_v20 = vcombine.low %v640_v6, %v644_v7  ;;  %v668_v33 = vld [vmem:[#allocation7 + $0x4e8] sm:$0xff]  ;;  %v671_v41 = vld [vmem:[#allocation7 + $0x500] sm:$0xff] }
 0x122   : > { %v675_v42 = vld [vmem:[#allocation7 + $0x520] sm:$0xff]  ;;  %v672_v44 = vld [vmem:[#allocation7 + $0x508] sm:$0xff] }
 0x123   : > { %3680 = vmatpush1.bf16.msra.mxu0 %v9429_v13  ;;  %3892 = vmatpush1.bf16.msra.mxu1 %v9431_v14  ;;  %v651_v13 = vld [vmem:[#allocation7 + $0x460] sm:$0xff]  ;;  %v648_v14 = vld [vmem:[#allocation7 + $0x448] sm:$0xff] }
 0x124   : > { %3681 = vmatprep.subr.bf16.mxu0 %v9438_v15  ;;  %3893 = vmatprep.subr.bf16.mxu1 %v9440_v16  ;;  %v11452_v15 = vcombine.low %v11439_v53, %v11442_v54  ;;  %v652_v16 = vld [vmem:[#allocation7 + $0x468] sm:$0xff]  ;;  %v9501_v54 = vcombine.low %v647_v12, %v651_v13  ;;  %v679_v50 = vld [vmem:[#allocation7 + $0x540] sm:$0xff] }
 0x125   : > { %v660_v53 = vld [vmem:[#allocation7 + $0x4a8] sm:$0xff]  ;;  %v9503_v27 = vcombine.low %v648_v14, %v652_v16  ;;  %v683_v51 = vld [vmem:[#allocation7 + $0x560] sm:$0xff] }
 0x126   : > { %v680_v52 = vld [vmem:[#allocation7 + $0x548] sm:$0xff]  ;;  %v687_v61 = vld [vmem:[#allocation7 + $0x580] sm:$0xff] }
 0x127   : > { %3682 = vmatpush1.bf16.msra.mxu0 %v9437_v21  ;;  %3894 = vmatpush1.bf16.msra.mxu1 %v9439_v22  ;;  %v9502_v21 = vcombine.high %v647_v12, %v651_v13  ;;  %v9504_v22 = vcombine.high %v648_v14, %v652_v16  ;;  %v691_v62 = vld [vmem:[#allocation7 + $0x5a0] sm:$0xff]  ;;  %v688_v63 = vld [vmem:[#allocation7 + $0x588] sm:$0xff] }
 0x128   : > { %3683 = vmatprep.subr.bf16.mxu0 %v9446_v23  ;;  %3895 = vmatprep.subr.bf16.mxu1 %v9448_v24  ;;  %v655_v23 = vld [vmem:[#allocation7 + $0x480] sm:$0xff]  ;;  %v696_v7 = vld [vmem:[#allocation7 + $0x5c8] sm:$0xff] }
 0x129   : > { %v659_v24 = vld [vmem:[#allocation7 + $0x4a0] sm:$0xff]  ;;  %v704_v16 = vld [vmem:[#allocation7 + $0x608] sm:$0xff] }
 0x12a   : > { %v9510_v28 = vcombine.high %v655_v23, %v659_v24  ;;  %v695_v5 = vld [vmem:[#allocation7 + $0x5c0] sm:$0xff]  ;;  %v708_v17 = vld [vmem:[#allocation7 + $0x628] sm:$0xff] }
 0x12b   : > { %3684 = vmatpush1.bf16.msra.mxu0 %v9445_v29  ;;  %3896 = vmatpush1.bf16.msra.mxu1 %v9447_v30  ;;  %v663_v29 = vld [vmem:[#allocation7 + $0x4c0] sm:$0xff]  ;;  %v9512_v30 = vcombine.high %v656_v26, %v660_v53 }
 0x12c   : > { %3685 = vmatprep.subr.bf16.mxu0 %v9454_v31  ;;  %3897 = vmatprep.subr.bf16.mxu1 %v9456_v32  ;;  %v667_v31 = vld [vmem:[#allocation7 + $0x4e0] sm:$0xff]  ;;  %v664_v32 = vld [vmem:[#allocation7 + $0x4c8] sm:$0xff] }
 0x12d   : > { %v699_v6 = vld [vmem:[#allocation7 + $0x5e0] sm:$0xff] }
 0x12e   : > { %v703_v13 = vld [vmem:[#allocation7 + $0x600] sm:$0xff]  ;;  %v9549_v18 = vcombine.low %v695_v5, %v699_v6 }
 0x12f   : > { %3686 = vmatpush1.bf16.msra.mxu0 %v9453_v37  ;;  %3898 = vmatpush1.bf16.msra.mxu1 %v9455_v38  ;;  %v9509_v37 = vcombine.low %v655_v23, %v659_v24  ;;  %v9511_v38 = vcombine.low %v656_v26, %v660_v53  ;;  %v707_v14 = vld [vmem:[#allocation7 + $0x620] sm:$0xff]  ;;  %v712_v24 = vld [vmem:[#allocation7 + $0x648] sm:$0xff] }
 0x130   : > { %3687 = vmatprep.subr.bf16.mxu0 %v9462_v39  ;;  %3899 = vmatprep.subr.bf16.mxu1 %v9464_v40  ;;  %v9518_v39 = vcombine.high %v663_v29, %v667_v31  ;;  %v9520_v40 = vcombine.high %v664_v32, %v668_v33  ;;  %v715_v23 = vld [vmem:[#allocation7 + $0x660] sm:$0xff]  ;;  %v716_v26 = vld [vmem:[#allocation7 + $0x668] sm:$0xff]  ;;  %v9557_v53 = vcombine.low %v703_v13, %v707_v14 }
 0x133   : > { %3688 = vmatpush1.bf16.msra.mxu0 %v9461_v45  ;;  %3900 = vmatpush1.bf16.msra.mxu1 %v9463_v46  ;;  %v676_v45 = vld [vmem:[#allocation7 + $0x528] sm:$0xff]  ;;  %v9517_v46 = vcombine.low %v663_v29, %v667_v31  ;;  %v719_v29 = vld [vmem:[#allocation7 + $0x680] sm:$0xff] }
 0x134   : > { %3689 = vmatprep.subr.bf16.mxu0 %v9470_v47  ;;  %3901 = vmatprep.subr.bf16.mxu1 %v9472_v48  ;;  %v9519_v47 = vcombine.low %v664_v32, %v668_v33  ;;  %v9526_v48 = vcombine.high %v671_v41, %v675_v42  ;;  %v9528_v49 = vcombine.high %v672_v44, %v676_v45  ;;  %v720_v31 = vld [vmem:[#allocation7 + $0x688] sm:$0xff] }
 0x135   : > { %v724_v32 = vld [vmem:[#allocation7 + $0x6a8] sm:$0xff] }
 0x137   : > { %3690 = vmatpush1.bf16.msra.mxu0 %v9469_v55  ;;  %3902 = vmatpush1.bf16.msra.mxu1 %v9471_v56  ;;  %v684_v55 = vld [vmem:[#allocation7 + $0x568] sm:$0xff]  ;;  %v9525_v56 = vcombine.low %v671_v41, %v675_v42  ;;  %v731_v41 = vld [vmem:[#allocation7 + $0x6e0] sm:$0xff] }
 0x138   : > { %3691 = vmatprep.subr.bf16.mxu0 %v9478_v57  ;;  %3903 = vmatprep.subr.bf16.mxu1 %v9480_v59  ;;  %v9527_v57 = vcombine.low %v672_v44, %v676_v45  ;;  %v9534_v59 = vcombine.high %v679_v50, %v683_v51  ;;  %v9536_v60 = vcombine.high %v680_v52, %v684_v55  ;;  %v728_v42 = vld [vmem:[#allocation7 + $0x6c8] sm:$0xff] }
 0x139   : > { %v732_v44 = vld [vmem:[#allocation7 + $0x6e8] sm:$0xff] }
 0x13b   : > { %3692 = vmatpush1.bf16.msra.mxu0 %v9477_v0  ;;  %3904 = vmatpush1.bf16.msra.mxu1 %v9479_v1  ;;  %v692_v0 = vld [vmem:[#allocation7 + $0x5a8] sm:$0xff]  ;;  %v9533_v1 = vcombine.low %v679_v50, %v683_v51  ;;  %v739_v50 = vld [vmem:[#allocation7 + $0x720] sm:$0xff] }
 0x13c   : > { %3693 = vmatprep.subr.bf16.mxu0 %v9486_v2  ;;  %3905 = vmatprep.subr.bf16.mxu1 %v9488_v3  ;;  %v9535_v2 = vcombine.low %v680_v52, %v684_v55  ;;  %v9542_v3 = vcombine.high %v687_v61, %v691_v62  ;;  %v9544_v4 = vcombine.high %v688_v63, %v692_v0  ;;  %v736_v51 = vld [vmem:[#allocation7 + $0x708] sm:$0xff] }
 0x13d   : > { %v740_v52 = vld [vmem:[#allocation7 + $0x728] sm:$0xff] }
 0x13f   : > { %3694 = vmatpush1.bf16.msra.mxu0 %v9485_v8  ;;  %3906 = vmatpush1.bf16.msra.mxu1 %v9487_v9  ;;  %v700_v8 = vld [vmem:[#allocation7 + $0x5e8] sm:$0xff]  ;;  %v9541_v9 = vcombine.low %v687_v61, %v691_v62  ;;  %v747_v61 = vld [vmem:[#allocation7 + $0x760] sm:$0xff] }
 0x140   : > { %3716 = vmatprep.subr.bf16.mxu0 %v9494_v10  ;;  %3928 = vmatprep.subr.bf16.mxu1 %v9496_v11  ;;  %v9543_v10 = vcombine.low %v688_v63, %v692_v0  ;;  %v9550_v11 = vcombine.high %v695_v5, %v699_v6  ;;  %v9552_v12 = vcombine.high %v696_v7, %v700_v8  ;;  %v744_v62 = vld [vmem:[#allocation7 + $0x748] sm:$0xff]  ;;  %v755_v5 = vld [vmem:[#allocation7 + $0x7a0] sm:$0xff] }
 0x141   : > { %v748_v63 = vld [vmem:[#allocation7 + $0x768] sm:$0xff] }
 0x142   : > { %3696 = vmatmul.mubr.bf16.vlgmr.msra.gmra.mrb[0].mxu0 %v11452_v15  ;;  %3908 = vmatmul.mubr.bf16.vlgmr.msra.gmra.mrb[0].mxu1 %v11452_v15  ;;  %v752_v6 = vld [vmem:[#allocation7 + $0x788] sm:$0xff] }
 0x143   : > { %3717 = vmatpush1.bf16.msra.mxu0 %v9493_v19  ;;  %3929 = vmatpush1.bf16.msra.mxu1 %v9495_v20  ;;  %v9551_v19 = vcombine.low %v696_v7, %v700_v8  ;;  %v9558_v20 = vcombine.high %v703_v13, %v707_v14  ;;  %v756_v7 = vld [vmem:[#allocation7 + $0x7a8] sm:$0xff]  ;;  %v763_v13 = vld [vmem:[#allocation7 + $0x7e0] sm:$0xff] }
 0x144   : > { %3718 = vmatprep.subr.bf16.mxu0 %v9502_v21  ;;  %3930 = vmatprep.subr.bf16.mxu1 %v9504_v22  ;;  %v9560_v21 = vcombine.high %v704_v16, %v708_v17  ;;  %v711_v22 = vld [vmem:[#allocation7 + $0x640] sm:$0xff]  ;;  %v760_v14 = vld [vmem:[#allocation7 + $0x7c8] sm:$0xff] }
 0x145   : > { %3705 = vmatprep.mubr.bf16.mxu0 %v11456_v25  ;;  %3917 = vmatprep.mubr.bf16.mxu1 %v11456_v25  ;;  %v9565_v33 = vcombine.low %v711_v22, %v715_v23 }
 0x147   : > { %3719 = vmatpush1.bf16.msra.mxu0 %v9501_v54  ;;  %3931 = vmatpush1.bf16.msra.mxu1 %v9503_v27  ;;  %v9559_v54 = vcombine.low %v704_v16, %v708_v17  ;;  %v9566_v27 = vcombine.high %v711_v22, %v715_v23  ;;  %v764_v16 = vld [vmem:[#allocation7 + $0x7e8] sm:$0xff]  ;;  %v771_v22 = vld [vmem:[#allocation7 + $0x820] sm:$0xff] }
 0x148   : > { %3720 = vmatprep.subr.bf16.mxu0 %v9510_v28  ;;  %3932 = vmatprep.subr.bf16.mxu1 %v9512_v30  ;;  %v9568_v28 = vcombine.high %v712_v24, %v716_v26  ;;  %v723_v30 = vld [vmem:[#allocation7 + $0x6a0] sm:$0xff]  ;;  %v768_v23 = vld [vmem:[#allocation7 + $0x808] sm:$0xff] }
 0x149   : > { %v9573_v45 = vcombine.low %v719_v29, %v723_v30 }
 0x14a   : > { %3706 = vmatmul.mubr.bf16.gmra.mrb[4].mxu0 %v11462_v34  ;;  %3918 = vmatmul.mubr.bf16.gmra.mrb[4].mxu1 %v11462_v34 }
 0x14b   : > { %3721 = vmatpush1.bf16.msra.mxu0 %v9509_v37  ;;  %3933 = vmatpush1.bf16.msra.mxu1 %v9511_v38  ;;  %v9567_v37 = vcombine.low %v712_v24, %v716_v26  ;;  %v9574_v38 = vcombine.high %v719_v29, %v723_v30  ;;  %v772_v24 = vld [vmem:[#allocation7 + $0x828] sm:$0xff]  ;;  %v779_v29 = vld [vmem:[#allocation7 + $0x860] sm:$0xff] }
 0x14c   : > { %3722 = vmatprep.subr.bf16.mxu0 %v9518_v39  ;;  %3934 = vmatprep.subr.bf16.mxu1 %v9520_v40  ;;  %v9576_v39 = vcombine.high %v720_v31, %v724_v32  ;;  %v727_v40 = vld [vmem:[#allocation7 + $0x6c0] sm:$0xff]  ;;  %v776_v30 = vld [vmem:[#allocation7 + $0x848] sm:$0xff] }
 0x14d   : > { %3748 = vmatprep.mubr.bf16.mxu0 %v11472_v43  ;;  %3960 = vmatprep.mubr.bf16.mxu1 %v11472_v43  ;;  %v9581_v55 = vcombine.low %v727_v40, %v731_v41 }
 0x14f   : > { %3723 = vmatpush1.bf16.msra.mxu0 %v9517_v46  ;;  %3935 = vmatpush1.bf16.msra.mxu1 %v9519_v47  ;;  %v9575_v46 = vcombine.low %v720_v31, %v724_v32  ;;  %v9582_v47 = vcombine.high %v727_v40, %v731_v41  ;;  %v11480_v31 = vcombine.low %v11465_v35, %v11468_v36  ;;  %v780_v32 = vld [vmem:[#allocation7 + $0x868] sm:$0xff] }
 0x150   : > { %3724 = vmatprep.subr.bf16.mxu0 %v9526_v48  ;;  %3936 = vmatprep.subr.bf16.mxu1 %v9528_v49  ;;  %v9584_v48 = vcombine.high %v728_v42, %v732_v44  ;;  %v735_v49 = vld [vmem:[#allocation7 + $0x700] sm:$0xff]  ;;  %v9632_v41 = vcombine.high %v776_v30, %v780_v32  ;;  %v788_v35 = vld [vmem:[#allocation7 + $0x8a8] sm:$0xff] }
 0x151   : > { %v9589_v0 = vcombine.low %v735_v49, %v739_v50 }
 0x153   : > { %3725 = vmatpush1.bf16.msra.mxu0 %v9525_v56  ;;  %3937 = vmatpush1.bf16.msra.mxu1 %v9527_v57  ;;  %v9583_v56 = vcombine.low %v728_v42, %v732_v44  ;;  %v9590_v57 = vcombine.high %v735_v49, %v739_v50  ;;  %v783_v42 = vld [vmem:[#allocation7 + $0x880] sm:$0xff] }
 0x154   : > { %3726 = vmatprep.subr.bf16.mxu0 %v9534_v59  ;;  %3938 = vmatprep.subr.bf16.mxu1 %v9536_v60  ;;  %v9592_v59 = vcombine.high %v736_v51, %v740_v52  ;;  %v743_v60 = vld [vmem:[#allocation7 + $0x740] sm:$0xff] }
 0x155   : > { %v9597_v8 = vcombine.low %v743_v60, %v747_v61  ;;  %v787_v44 = vld [vmem:[#allocation7 + $0x8a0] sm:$0xff] }
 0x156   : > { %v791_v50 = vld [vmem:[#allocation7 + $0x8c0] sm:$0xff] }
 0x157   : > { %3727 = vmatpush1.bf16.msra.mxu0 %v9533_v1  ;;  %3939 = vmatpush1.bf16.msra.mxu1 %v9535_v2  ;;  %v9591_v1 = vcombine.low %v736_v51, %v740_v52  ;;  %v9598_v2 = vcombine.high %v743_v60, %v747_v61  ;;  %v795_v51 = vld [vmem:[#allocation7 + $0x8e0] sm:$0xff]  ;;  %v792_v52 = vld [vmem:[#allocation7 + $0x8c8] sm:$0xff]  ;;  %v9637_v60 = vcombine.low %v783_v42, %v787_v44 }
 0x158   : > { %3728 = vmatprep.subr.bf16.mxu0 %v9542_v3  ;;  %3940 = vmatprep.subr.bf16.mxu1 %v9544_v4  ;;  %v9600_v3 = vcombine.high %v744_v62, %v748_v63  ;;  %v751_v4 = vld [vmem:[#allocation7 + $0x780] sm:$0xff] }
 0x159   : > { %v9605_v17 = vcombine.low %v751_v4, %v755_v5 }
 0x15b   : > { %3729 = vmatpush1.bf16.msra.mxu0 %v9541_v9  ;;  %3941 = vmatpush1.bf16.msra.mxu1 %v9543_v10  ;;  %v9599_v9 = vcombine.low %v744_v62, %v748_v63  ;;  %v9606_v10 = vcombine.high %v751_v4, %v755_v5  ;;  %v9646_v62 = vcombine.high %v791_v50, %v795_v51  ;;  %v804_v4 = vld [vmem:[#allocation7 + $0x928] sm:$0xff] }
 0x15c   : > { %3730 = vmatprep.subr.bf16.mxu0 %v9550_v11  ;;  %3942 = vmatprep.subr.bf16.mxu1 %v9552_v12  ;;  %v9608_v11 = vcombine.high %v752_v6, %v756_v7  ;;  %v759_v12 = vld [vmem:[#allocation7 + $0x7c0] sm:$0xff]  ;;  %v9645_v5 = vcombine.low %v791_v50, %v795_v51 }
 0x15d   : > { %v9613_v26 = vcombine.low %v759_v12, %v763_v13 }
 0x15f   : > { %3731 = vmatpush1.bf16.msra.mxu0 %v9549_v18  ;;  %3943 = vmatpush1.bf16.msra.mxu1 %v9551_v19  ;;  %v9607_v18 = vcombine.low %v752_v6, %v756_v7  ;;  %v9614_v19 = vcombine.high %v759_v12, %v763_v13  ;;  %v812_v12 = vld [vmem:[#allocation7 + $0x968] sm:$0xff] }
 0x160   : > { %3732 = vmatprep.subr.bf16.mxu0 %v9558_v20  ;;  %3944 = vmatprep.subr.bf16.mxu1 %v9560_v21  ;;  %v9616_v20 = vcombine.high %v760_v14, %v764_v16  ;;  %v767_v21 = vld [vmem:[#allocation7 + $0x800] sm:$0xff] }
 0x163   : > { %3733 = vmatpush1.bf16.msra.mxu0 %v9557_v53  ;;  %3945 = vmatpush1.bf16.msra.mxu1 %v9559_v54  ;;  %v9615_v53 = vcombine.low %v760_v14, %v764_v16  ;;  %v9622_v54 = vcombine.high %v767_v21, %v771_v22 }
 0x164   : > { %3734 = vmatprep.subr.bf16.mxu0 %v9566_v27  ;;  %3946 = vmatprep.subr.bf16.mxu1 %v9568_v28  ;;  %v9624_v27 = vcombine.high %v768_v23, %v772_v24  ;;  %v775_v28 = vld [vmem:[#allocation7 + $0x840] sm:$0xff] }
 0x165   : > { %v9630_v40 = vcombine.high %v775_v28, %v779_v29  ;;  %v9629_v36 = vcombine.low %v775_v28, %v779_v29  ;;  %v828_v28 = vld [vmem:[#allocation7 + $0x9e8] sm:$0xff] }
 0x167   : > { %3735 = vmatpush1.bf16.msra.mxu0 %v9565_v33  ;;  %3947 = vmatpush1.bf16.msra.mxu1 %v9567_v37  ;;  %v504_v33 = vld [vmem:[%s11412_s1 + $0x48] sm:$0xff] }
 0x168   : > { %3736 = vmatprep.subr.bf16.mxu0 %v9574_v38  ;;  %3948 = vmatprep.subr.bf16.mxu1 %v9576_v39  ;;  %v508_v37 = vld [vmem:[%s11412_s1 + $0x68] sm:$0xff]  ;;  %v9621_v38 = vcombine.low %v767_v21, %v771_v22  ;;  %v9623_v39 = vcombine.low %v768_v23, %v772_v24  ;;  %v820_v21 = vld [vmem:[#allocation7 + $0x9a8] sm:$0xff] }
 0x16b   : > { %3737 = vmatpush1.bf16.msra.mxu0 %v9573_v45  ;;  %3949 = vmatpush1.bf16.msra.mxu1 %v9575_v46  ;;  %v11484_v45 = vcombine.high %v504_v33, %v508_v37  ;;  %v784_v46 = vld [vmem:[#allocation7 + $0x888] sm:$0xff] }
 0x16c   : > { %3738 = vmatprep.subr.bf16.mxu0 %v9582_v47  ;;  %3950 = vmatprep.subr.bf16.mxu1 %v9584_v48  ;;  %v9631_v47 = vcombine.low %v776_v30, %v780_v32  ;;  %v9638_v48 = vcombine.high %v783_v42, %v787_v44  ;;  %v9640_v49 = vcombine.high %v784_v46, %v788_v35 }
 0x16d   : > { %v9639_v61 = vcombine.low %v784_v46, %v788_v35  ;;  %v839_v35 = vld [vmem:[#allocation7 + $0xa40] sm:$0xff] }
 0x16f   : > { %3739 = vmatpush1.bf16.msra.mxu0 %v9581_v55  ;;  %3951 = vmatpush1.bf16.msra.mxu1 %v9583_v56  ;;  %v796_v55 = vld [vmem:[#allocation7 + $0x8e8] sm:$0xff]  ;;  %v11490_v56 = vcombine.low %v504_v33, %v508_v37  ;;  %v831_v37 = vld [vmem:[#allocation7 + $0xa00] sm:$0xff] }
 0x170   : > { %3740 = vmatprep.subr.bf16.mxu0 %v9590_v57  ;;  %3952 = vmatprep.subr.bf16.mxu1 %v9592_v59  ;;  %v11493_v57 = vld [vmem:[%s11412_s1 + $0x10] sm:$0xff]  ;;  %v9648_v63 = vcombine.high %v792_v52, %v796_v55  ;;  %v9647_v6 = vcombine.low %v792_v52, %v796_v55 }
 0x171   : > { %v11496_v59 = vld [vmem:[%s11412_s1 + $0x30] sm:$0xff] }
 0x172   : > { %v847_v55 = vld [vmem:[#allocation7 + $0xa80] sm:$0xff] }
 0x173   : > { %3741 = vmatpush1.bf16.msra.mxu0 %v9589_v0  ;;  %3953 = vmatpush1.bf16.msra.mxu1 %v9591_v1  ;;  %v799_v0 = vld [vmem:[#allocation7 + $0x900] sm:$0xff] }
 0x174   : > { %3742 = vmatprep.subr.bf16.mxu0 %v9598_v2  ;;  %3954 = vmatprep.subr.bf16.mxu1 %v9600_v3  ;;  %v803_v1 = vld [vmem:[#allocation7 + $0x920] sm:$0xff]  ;;  %v11500_v2 = vcombine.high %v11493_v57, %v11496_v59  ;;  %v800_v3 = vld [vmem:[#allocation7 + $0x908] sm:$0xff] }
 0x175   : > { %v9654_v7 = vcombine.high %v799_v0, %v803_v1  ;;  %v9653_v13 = vcombine.low %v799_v0, %v803_v1  ;;  %v9655_v14 = vcombine.low %v800_v3, %v804_v4 }
 0x177   : > { %3743 = vmatpush1.bf16.msra.mxu0 %v9597_v8  ;;  %3955 = vmatpush1.bf16.msra.mxu1 %v9599_v9  ;;  %v9656_v8 = vcombine.high %v800_v3, %v804_v4  ;;  %v807_v9 = vld [vmem:[#allocation7 + $0x940] sm:$0xff] }
 0x178   : > { %3744 = vmatprep.subr.bf16.mxu0 %v9606_v10  ;;  %3956 = vmatprep.subr.bf16.mxu1 %v9608_v11  ;;  %v811_v10 = vld [vmem:[#allocation7 + $0x960] sm:$0xff]  ;;  %v808_v11 = vld [vmem:[#allocation7 + $0x948] sm:$0xff] }
 0x179   : > { %v9662_v16 = vcombine.high %v807_v9, %v811_v10  ;;  %v9661_v22 = vcombine.low %v807_v9, %v811_v10  ;;  %v9663_v23 = vcombine.low %v808_v11, %v812_v12  ;;  %v855_v4 = vld [vmem:[#allocation7 + $0xac0] sm:$0xff] }
 0x17b   : > { %3745 = vmatpush1.bf16.msra.mxu0 %v9605_v17  ;;  %3957 = vmatpush1.bf16.msra.mxu1 %v9607_v18  ;;  %v9664_v17 = vcombine.high %v808_v11, %v812_v12  ;;  %v815_v18 = vld [vmem:[#allocation7 + $0x980] sm:$0xff] }
 0x17c   : > { %3746 = vmatprep.subr.bf16.mxu0 %v9614_v19  ;;  %3958 = vmatprep.subr.bf16.mxu1 %v9616_v20  ;;  %v819_v19 = vld [vmem:[#allocation7 + $0x9a0] sm:$0xff]  ;;  %v816_v20 = vld [vmem:[#allocation7 + $0x988] sm:$0xff] }
 0x17d   : > { %v9670_v24 = vcombine.high %v815_v18, %v819_v19  ;;  %v9669_v29 = vcombine.low %v815_v18, %v819_v19  ;;  %v9671_v30 = vcombine.low %v816_v20, %v820_v21  ;;  %v863_v12 = vld [vmem:[#allocation7 + $0xb00] sm:$0xff] }
 0x17f   : > { %3747 = vmatpush1.bf16.msra.mxu0 %v9613_v26  ;;  %3959 = vmatpush1.bf16.msra.mxu1 %v9615_v53  ;;  %v9672_v26 = vcombine.high %v816_v20, %v820_v21  ;;  %v823_v53 = vld [vmem:[#allocation7 + $0x9c0] sm:$0xff] }
 0x180   : > { %3769 = vmatprep.subr.bf16.mxu0 %v9622_v54  ;;  %3981 = vmatprep.subr.bf16.mxu1 %v9624_v27  ;;  %v827_v54 = vld [vmem:[#allocation7 + $0x9e0] sm:$0xff]  ;;  %v824_v27 = vld [vmem:[#allocation7 + $0x9c8] sm:$0xff] }
 0x181   : > { %v9678_v32 = vcombine.high %v823_v53, %v827_v54  ;;  %v9680_v33 = vcombine.high %v824_v27, %v828_v28  ;;  %v9679_v42 = vcombine.low %v824_v27, %v828_v28  ;;  %v871_v21 = vld [vmem:[#allocation7 + $0xb40] sm:$0xff] }
 0x182   : > { %3749 = vmatmul.mubr.bf16.vlgmr.msra.gmra.mrb[0].mxu0 %v11480_v31  ;;  %3961 = vmatmul.mubr.bf16.vlgmr.msra.gmra.mrb[0].mxu1 %v11480_v31  ;;  %v879_v28 = vld [vmem:[#allocation7 + $0xb80] sm:$0xff] }
 0x183   : > { %3770 = vmatpush1.bf16.msra.mxu0 %v9621_v38  ;;  %3982 = vmatpush1.bf16.msra.mxu1 %v9623_v39  ;;  %v835_v38 = vld [vmem:[#allocation7 + $0xa20] sm:$0xff]  ;;  %v832_v39 = vld [vmem:[#allocation7 + $0xa08] sm:$0xff] }
 0x184   : > { %3771 = vmatprep.subr.bf16.mxu0 %v9630_v40  ;;  %3983 = vmatprep.subr.bf16.mxu1 %v9632_v41  ;;  %v836_v40 = vld [vmem:[#allocation7 + $0xa28] sm:$0xff]  ;;  %v9677_v41 = vcombine.low %v823_v53, %v827_v54  ;;  %v9686_v44 = vcombine.high %v831_v37, %v835_v38 }
 0x185   : > { %3758 = vmatprep.mubr.bf16.mxu0 %v11484_v45  ;;  %3970 = vmatprep.mubr.bf16.mxu1 %v11484_v45  ;;  %v9688_v46 = vcombine.high %v832_v39, %v836_v40  ;;  %v9687_v50 = vcombine.low %v832_v39, %v836_v40  ;;  %v887_v40 = vld [vmem:[#allocation7 + $0xbc0] sm:$0xff] }
 0x187   : > { %3772 = vmatpush1.bf16.msra.mxu0 %v9629_v36  ;;  %3984 = vmatpush1.bf16.msra.mxu1 %v9631_v47  ;;  %v843_v36 = vld [vmem:[#allocation7 + $0xa60] sm:$0xff]  ;;  %v840_v47 = vld [vmem:[#allocation7 + $0xa48] sm:$0xff] }
 0x188   : > { %3773 = vmatprep.subr.bf16.mxu0 %v9638_v48  ;;  %3985 = vmatprep.subr.bf16.mxu1 %v9640_v49  ;;  %v844_v48 = vld [vmem:[#allocation7 + $0xa68] sm:$0xff]  ;;  %v9685_v49 = vcombine.low %v831_v37, %v835_v38  ;;  %v9694_v51 = vcombine.high %v839_v35, %v843_v36 }
 0x189   : > { %v9696_v52 = vcombine.high %v840_v47, %v844_v48  ;;  %v9695_v0 = vcombine.low %v840_v47, %v844_v48  ;;  %v895_v48 = vld [vmem:[#allocation7 + $0xc00] sm:$0xff] }
 0x18a   : > { %3759 = vmatmul.mubr.bf16.gmra.mrb[4].mxu0 %v11490_v56  ;;  %3971 = vmatmul.mubr.bf16.gmra.mrb[4].mxu1 %v11490_v56 }
 0x18b   : > { %3774 = vmatpush1.bf16.msra.mxu0 %v9637_v60  ;;  %3986 = vmatpush1.bf16.msra.mxu1 %v9639_v61  ;;  %v851_v60 = vld [vmem:[#allocation7 + $0xaa0] sm:$0xff]  ;;  %v848_v61 = vld [vmem:[#allocation7 + $0xa88] sm:$0xff] }
 0x18c   : > { %3775 = vmatprep.subr.bf16.mxu0 %v9646_v62  ;;  %3987 = vmatprep.subr.bf16.mxu1 %v9648_v63  ;;  %v852_v62 = vld [vmem:[#allocation7 + $0xaa8] sm:$0xff]  ;;  %v9693_v63 = vcombine.low %v839_v35, %v843_v36  ;;  %v9702_v1 = vcombine.high %v847_v55, %v851_v60 }
 0x18d   : > { %3801 = vmatprep.mubr.bf16.mxu0 %v11500_v2  ;;  %4013 = vmatprep.mubr.bf16.mxu1 %v11500_v2  ;;  %v9704_v3 = vcombine.high %v848_v61, %v852_v62  ;;  %v9703_v9 = vcombine.low %v848_v61, %v852_v62  ;;  %v903_v62 = vld [vmem:[#allocation7 + $0xc40] sm:$0xff] }
 0x18f   : > { %3776 = vmatpush1.bf16.msra.mxu0 %v9645_v5  ;;  %3988 = vmatpush1.bf16.msra.mxu1 %v9647_v6  ;;  %v859_v5 = vld [vmem:[#allocation7 + $0xae0] sm:$0xff]  ;;  %v856_v6 = vld [vmem:[#allocation7 + $0xac8] sm:$0xff] }
 0x190   : > { %3777 = vmatprep.subr.bf16.mxu0 %v9654_v7  ;;  %3989 = vmatprep.subr.bf16.mxu1 %v9656_v8  ;;  %v860_v7 = vld [vmem:[#allocation7 + $0xae8] sm:$0xff]  ;;  %v9701_v8 = vcombine.low %v847_v55, %v851_v60  ;;  %v9710_v10 = vcombine.high %v855_v4, %v859_v5 }
 0x191   : > { %v9712_v11 = vcombine.high %v856_v6, %v860_v7  ;;  %v9711_v18 = vcombine.low %v856_v6, %v860_v7 }
 0x193   : > { %3778 = vmatpush1.bf16.msra.mxu0 %v9653_v13  ;;  %3990 = vmatpush1.bf16.msra.mxu1 %v9655_v14  ;;  %v867_v13 = vld [vmem:[#allocation7 + $0xb20] sm:$0xff]  ;;  %v864_v14 = vld [vmem:[#allocation7 + $0xb08] sm:$0xff] }
 0x194   : > { %3779 = vmatprep.subr.bf16.mxu0 %v9662_v16  ;;  %3991 = vmatprep.subr.bf16.mxu1 %v9664_v17  ;;  %v868_v16 = vld [vmem:[#allocation7 + $0xb28] sm:$0xff]  ;;  %v9709_v17 = vcombine.low %v855_v4, %v859_v5  ;;  %v9718_v19 = vcombine.high %v863_v12, %v867_v13  ;;  %v505_v4 = vld [vmem:[%s11412_s1 + $0x50] sm:$0xff] }
 0x195   : > { %v9720_v20 = vcombine.high %v864_v14, %v868_v16  ;;  %v9719_v53 = vcombine.low %v864_v14, %v868_v16  ;;  %v509_v5 = vld [vmem:[%s11412_s1 + $0x70] sm:$0xff] }
 0x197   : > { %3780 = vmatpush1.bf16.msra.mxu0 %v9661_v22  ;;  %3992 = vmatpush1.bf16.msra.mxu1 %v9663_v23  ;;  %v875_v22 = vld [vmem:[#allocation7 + $0xb60] sm:$0xff]  ;;  %v872_v23 = vld [vmem:[#allocation7 + $0xb48] sm:$0xff] }
 0x198   : > { %3781 = vmatprep.subr.bf16.mxu0 %v9670_v24  ;;  %3993 = vmatprep.subr.bf16.mxu1 %v9672_v26  ;;  %v876_v24 = vld [vmem:[#allocation7 + $0xb68] sm:$0xff]  ;;  %v9717_v26 = vcombine.low %v863_v12, %v867_v13  ;;  %v9726_v54 = vcombine.high %v871_v21, %v875_v22  ;;  %v11512_v12 = vcombine.high %v505_v4, %v509_v5 }
 0x199   : > { %v9728_v27 = vcombine.high %v872_v23, %v876_v24  ;;  %v9727_v37 = vcombine.low %v872_v23, %v876_v24  ;;  %v912_v13 = vld [vmem:[#allocation7 + $0xc88] sm:$0xff] }
 0x19a   : > { %v11521_v23 = vld [vmem:[%s11412_s1 + $0x18] sm:$0xff] }
 0x19b   : > { %3782 = vmatpush1.bf16.msra.mxu0 %v9669_v29  ;;  %3994 = vmatpush1.bf16.msra.mxu1 %v9671_v30  ;;  %v883_v29 = vld [vmem:[#allocation7 + $0xba0] sm:$0xff]  ;;  %v880_v30 = vld [vmem:[#allocation7 + $0xb88] sm:$0xff] }
 0x19c   : > { %3783 = vmatprep.subr.bf16.mxu0 %v9678_v32  ;;  %3995 = vmatprep.subr.bf16.mxu1 %v9680_v33  ;;  %v884_v32 = vld [vmem:[#allocation7 + $0xba8] sm:$0xff]  ;;  %v9725_v33 = vcombine.low %v871_v21, %v875_v22  ;;  %v9734_v38 = vcombine.high %v879_v28, %v883_v29  ;;  %v11518_v22 = vcombine.low %v505_v4, %v509_v5 }
 0x19d   : > { %v9736_v39 = vcombine.high %v880_v30, %v884_v32  ;;  %v9735_v35 = vcombine.low %v880_v30, %v884_v32  ;;  %v924_v21 = vld [vmem:[#allocation7 + $0xce8] sm:$0xff] }
 0x19e   : > { %v11524_v24 = vld [vmem:[%s11412_s1 + $0x38] sm:$0xff] }
 0x19f   : > { %3784 = vmatpush1.bf16.msra.mxu0 %v9677_v41  ;;  %3996 = vmatpush1.bf16.msra.mxu1 %v9679_v42  ;;  %v891_v41 = vld [vmem:[#allocation7 + $0xbe0] sm:$0xff]  ;;  %v888_v42 = vld [vmem:[#allocation7 + $0xbc8] sm:$0xff]  ;;  %v11528_v30 = vcombine.high %v11521_v23, %v11524_v24 }
 0x1a0   : > { %3785 = vmatprep.subr.bf16.mxu0 %v9686_v44  ;;  %3997 = vmatprep.subr.bf16.mxu1 %v9688_v46  ;;  %v892_v44 = vld [vmem:[#allocation7 + $0xbe8] sm:$0xff]  ;;  %v9733_v46 = vcombine.low %v879_v28, %v883_v29  ;;  %v9742_v36 = vcombine.high %v887_v40, %v891_v41  ;;  %v927_v28 = vld [vmem:[#allocation7 + $0xd00] sm:$0xff] }
 0x1a1   : > { %v9744_v47 = vcombine.high %v888_v42, %v892_v44  ;;  %v9743_v55 = vcombine.low %v888_v42, %v892_v44  ;;  %v931_v29 = vld [vmem:[#allocation7 + $0xd20] sm:$0xff]  ;;  %v928_v32 = vld [vmem:[#allocation7 + $0xd08] sm:$0xff] }
 0x1a2   : > { %v939_v42 = vld [vmem:[#allocation7 + $0xd60] sm:$0xff]  ;;  %v936_v44 = vld [vmem:[#allocation7 + $0xd48] sm:$0xff] }
 0x1a3   : > { %3786 = vmatpush1.bf16.msra.mxu0 %v9685_v49  ;;  %3998 = vmatpush1.bf16.msra.mxu1 %v9687_v50  ;;  %v899_v49 = vld [vmem:[#allocation7 + $0xc20] sm:$0xff]  ;;  %v896_v50 = vld [vmem:[#allocation7 + $0xc08] sm:$0xff] }
 0x1a4   : > { %3787 = vmatprep.subr.bf16.mxu0 %v9694_v51  ;;  %3999 = vmatprep.subr.bf16.mxu1 %v9696_v52  ;;  %v900_v51 = vld [vmem:[#allocation7 + $0xc28] sm:$0xff]  ;;  %v9741_v52 = vcombine.low %v887_v40, %v891_v41  ;;  %v9750_v60 = vcombine.high %v895_v48, %v899_v49  ;;  %v9749_v6 = vcombine.low %v895_v48, %v899_v49  ;;  %v935_v41 = vld [vmem:[#allocation7 + $0xd40] sm:$0xff] }
 0x1a5   : > { %v9752_v61 = vcombine.high %v896_v50, %v900_v51  ;;  %v9751_v7 = vcombine.low %v896_v50, %v900_v51  ;;  %v943_v49 = vld [vmem:[#allocation7 + $0xd80] sm:$0xff]  ;;  %v944_v51 = vld [vmem:[#allocation7 + $0xd88] sm:$0xff] }
 0x1a6   : > { %v947_v50 = vld [vmem:[#allocation7 + $0xda0] sm:$0xff]  ;;  %v956_v4 = vld [vmem:[#allocation7 + $0xde8] sm:$0xff] }
 0x1a7   : > { %3788 = vmatpush1.bf16.msra.mxu0 %v9693_v63  ;;  %4000 = vmatpush1.bf16.msra.mxu1 %v9695_v0  ;;  %v907_v63 = vld [vmem:[#allocation7 + $0xc60] sm:$0xff]  ;;  %v904_v0 = vld [vmem:[#allocation7 + $0xc48] sm:$0xff]  ;;  %v9797_v5 = vcombine.low %v943_v49, %v947_v50 }
 0x1a8   : > { %3789 = vmatprep.subr.bf16.mxu0 %v9702_v1  ;;  %4001 = vmatprep.subr.bf16.mxu1 %v9704_v3  ;;  %v11508_v1 = vcombine.low %v11493_v57, %v11496_v59  ;;  %v908_v3 = vld [vmem:[#allocation7 + $0xc68] sm:$0xff]  ;;  %v9757_v59 = vcombine.low %v903_v62, %v907_v63 }
 0x1a9   : > { %v916_v57 = vld [vmem:[#allocation7 + $0xca8] sm:$0xff]  ;;  %v9759_v14 = vcombine.low %v904_v0, %v908_v3 }
 0x1ab   : > { %3790 = vmatpush1.bf16.msra.mxu0 %v9701_v8  ;;  %4002 = vmatpush1.bf16.msra.mxu1 %v9703_v9  ;;  %v9758_v8 = vcombine.high %v903_v62, %v907_v63  ;;  %v9760_v9 = vcombine.high %v904_v0, %v908_v3  ;;  %v951_v63 = vld [vmem:[#allocation7 + $0xdc0] sm:$0xff]  ;;  %v952_v3 = vld [vmem:[#allocation7 + $0xdc8] sm:$0xff] }
 0x1ac   : > { %3791 = vmatprep.subr.bf16.mxu0 %v9710_v10  ;;  %4003 = vmatprep.subr.bf16.mxu1 %v9712_v11  ;;  %v911_v10 = vld [vmem:[#allocation7 + $0xc80] sm:$0xff] }
 0x1ad   : > { %v915_v11 = vld [vmem:[#allocation7 + $0xca0] sm:$0xff] }
 0x1ae   : > { %v9766_v16 = vcombine.high %v911_v10, %v915_v11  ;;  %v955_v0 = vld [vmem:[#allocation7 + $0xde0] sm:$0xff] }
 0x1af   : > { %3792 = vmatpush1.bf16.msra.mxu0 %v9709_v17  ;;  %4004 = vmatpush1.bf16.msra.mxu1 %v9711_v18  ;;  %v9768_v17 = vcombine.high %v912_v13, %v916_v57  ;;  %v919_v18 = vld [vmem:[#allocation7 + $0xcc0] sm:$0xff] }
 0x1b0   : > { %3793 = vmatprep.subr.bf16.mxu0 %v9718_v19  ;;  %4005 = vmatprep.subr.bf16.mxu1 %v9720_v20  ;;  %v923_v19 = vld [vmem:[#allocation7 + $0xce0] sm:$0xff]  ;;  %v920_v20 = vld [vmem:[#allocation7 + $0xcc8] sm:$0xff] }
 0x1b3   : > { %3794 = vmatpush1.bf16.msra.mxu0 %v9717_v26  ;;  %4006 = vmatpush1.bf16.msra.mxu1 %v9719_v53  ;;  %v9765_v26 = vcombine.low %v911_v10, %v915_v11  ;;  %v9767_v53 = vcombine.low %v912_v13, %v916_v57  ;;  %v963_v10 = vld [vmem:[#allocation7 + $0xe20] sm:$0xff]  ;;  %v960_v11 = vld [vmem:[#allocation7 + $0xe08] sm:$0xff]  ;;  %v9805_v57 = vcombine.low %v951_v63, %v955_v0 }
 0x1b4   : > { %3795 = vmatprep.subr.bf16.mxu0 %v9726_v54  ;;  %4007 = vmatprep.subr.bf16.mxu1 %v9728_v27  ;;  %v9774_v54 = vcombine.high %v919_v18, %v923_v19  ;;  %v9776_v27 = vcombine.high %v920_v20, %v924_v21  ;;  %v964_v13 = vld [vmem:[#allocation7 + $0xe28] sm:$0xff] }
 0x1b7   : > { %3796 = vmatpush1.bf16.msra.mxu0 %v9725_v33  ;;  %4008 = vmatpush1.bf16.msra.mxu1 %v9727_v37  ;;  %v932_v33 = vld [vmem:[#allocation7 + $0xd28] sm:$0xff]  ;;  %v9773_v37 = vcombine.low %v919_v18, %v923_v19  ;;  %v971_v18 = vld [vmem:[#allocation7 + $0xe60] sm:$0xff] }
 0x1b8   : > { %3797 = vmatprep.subr.bf16.mxu0 %v9734_v38  ;;  %4009 = vmatprep.subr.bf16.mxu1 %v9736_v39  ;;  %v9775_v38 = vcombine.low %v920_v20, %v924_v21  ;;  %v9782_v39 = vcombine.high %v927_v28, %v931_v29  ;;  %v9784_v40 = vcombine.high %v928_v32, %v932_v33  ;;  %v968_v19 = vld [vmem:[#allocation7 + $0xe48] sm:$0xff] }
 0x1b9   : > { %v972_v20 = vld [vmem:[#allocation7 + $0xe68] sm:$0xff] }
 0x1bb   : > { %3798 = vmatpush1.bf16.msra.mxu0 %v9733_v46  ;;  %4010 = vmatpush1.bf16.msra.mxu1 %v9735_v35  ;;  %v940_v46 = vld [vmem:[#allocation7 + $0xd68] sm:$0xff]  ;;  %v9781_v35 = vcombine.low %v927_v28, %v931_v29  ;;  %v979_v28 = vld [vmem:[#allocation7 + $0xea0] sm:$0xff] }
 0x1bc   : > { %3799 = vmatprep.subr.bf16.mxu0 %v9742_v36  ;;  %4011 = vmatprep.subr.bf16.mxu1 %v9744_v47  ;;  %v9783_v36 = vcombine.low %v928_v32, %v932_v33  ;;  %v9790_v47 = vcombine.high %v935_v41, %v939_v42  ;;  %v9792_v48 = vcombine.high %v936_v44, %v940_v46  ;;  %v976_v29 = vld [vmem:[#allocation7 + $0xe88] sm:$0xff] }
 0x1bd   : > { %v980_v32 = vld [vmem:[#allocation7 + $0xea8] sm:$0xff] }
 0x1bf   : > { %3800 = vmatpush1.bf16.msra.mxu0 %v9741_v52  ;;  %4012 = vmatpush1.bf16.msra.mxu1 %v9743_v55  ;;  %v948_v52 = vld [vmem:[#allocation7 + $0xda8] sm:$0xff]  ;;  %v9789_v55 = vcombine.low %v935_v41, %v939_v42  ;;  %v987_v41 = vld [vmem:[#allocation7 + $0xee0] sm:$0xff] }
 0x1c0   : > { %3822 = vmatprep.subr.bf16.mxu0 %v9750_v60  ;;  %4034 = vmatprep.subr.bf16.mxu1 %v9752_v61  ;;  %v9791_v60 = vcombine.low %v936_v44, %v940_v46  ;;  %v9798_v61 = vcombine.high %v943_v49, %v947_v50  ;;  %v9800_v62 = vcombine.high %v944_v51, %v948_v52  ;;  %v984_v42 = vld [vmem:[#allocation7 + $0xec8] sm:$0xff]  ;;  %v995_v49 = vld [vmem:[#allocation7 + $0xf20] sm:$0xff] }
 0x1c1   : > { %v988_v44 = vld [vmem:[#allocation7 + $0xee8] sm:$0xff] }
 0x1c2   : > { %3802 = vmatmul.mubr.bf16.vlgmr.msra.gmra.mrb[0].mxu0 %v11508_v1  ;;  %4014 = vmatmul.mubr.bf16.vlgmr.msra.gmra.mrb[0].mxu1 %v11508_v1  ;;  %v992_v50 = vld [vmem:[#allocation7 + $0xf08] sm:$0xff] }
 0x1c3   : > { %3823 = vmatpush1.bf16.msra.mxu0 %v9749_v6  ;;  %4035 = vmatpush1.bf16.msra.mxu1 %v9751_v7  ;;  %v9799_v6 = vcombine.low %v944_v51, %v948_v52  ;;  %v9806_v7 = vcombine.high %v951_v63, %v955_v0  ;;  %v996_v51 = vld [vmem:[#allocation7 + $0xf28] sm:$0xff]  ;;  %v1003_v63 = vld [vmem:[#allocation7 + $0xf60] sm:$0xff] }
 0x1c4   : > { %3824 = vmatprep.subr.bf16.mxu0 %v9758_v8  ;;  %4036 = vmatprep.subr.bf16.mxu1 %v9760_v9  ;;  %v9808_v8 = vcombine.high %v952_v3, %v956_v4  ;;  %v959_v9 = vld [vmem:[#allocation7 + $0xe00] sm:$0xff]  ;;  %v1000_v0 = vld [vmem:[#allocation7 + $0xf48] sm:$0xff] }
 0x1c5   : > { %3811 = vmatprep.mubr.bf16.mxu0 %v11512_v12  ;;  %4023 = vmatprep.mubr.bf16.mxu1 %v11512_v12  ;;  %v9813_v21 = vcombine.low %v959_v9, %v963_v10 }
 0x1c7   : > { %3825 = vmatpush1.bf16.msra.mxu0 %v9757_v59  ;;  %4037 = vmatpush1.bf16.msra.mxu1 %v9759_v14  ;;  %v9807_v59 = vcombine.low %v952_v3, %v956_v4  ;;  %v9814_v14 = vcombine.high %v959_v9, %v963_v10  ;;  %v1004_v3 = vld [vmem:[#allocation7 + $0xf68] sm:$0xff]  ;;  %v1011_v9 = vld [vmem:[#allocation7 + $0xfa0] sm:$0xff] }
 0x1c8   : > { %3826 = vmatprep.subr.bf16.mxu0 %v9766_v16  ;;  %4038 = vmatprep.subr.bf16.mxu1 %v9768_v17  ;;  %v9816_v16 = vcombine.high %v960_v11, %v964_v13  ;;  %v967_v17 = vld [vmem:[#allocation7 + $0xe40] sm:$0xff]  ;;  %v1008_v10 = vld [vmem:[#allocation7 + $0xf88] sm:$0xff] }
 0x1c9   : > { %v9821_v33 = vcombine.low %v967_v17, %v971_v18 }
 0x1ca   : > { %3812 = vmatmul.mubr.bf16.gmra.mrb[4].mxu0 %v11518_v22  ;;  %4024 = vmatmul.mubr.bf16.gmra.mrb[4].mxu1 %v11518_v22 }
 0x1cb   : > { %3827 = vmatpush1.bf16.msra.mxu0 %v9765_v26  ;;  %4039 = vmatpush1.bf16.msra.mxu1 %v9767_v53  ;;  %v9815_v26 = vcombine.low %v960_v11, %v964_v13  ;;  %v9822_v53 = vcombine.high %v967_v17, %v971_v18  ;;  %v1012_v11 = vld [vmem:[#allocation7 + $0xfa8] sm:$0xff]  ;;  %v1019_v17 = vld [vmem:[#allocation7 + $0xfe0] sm:$0xff] }
 0x1cc   : > { %3828 = vmatprep.subr.bf16.mxu0 %v9774_v54  ;;  %4040 = vmatprep.subr.bf16.mxu1 %v9776_v27  ;;  %v9824_v54 = vcombine.high %v968_v19, %v972_v20  ;;  %v975_v27 = vld [vmem:[#allocation7 + $0xe80] sm:$0xff]  ;;  %v1016_v18 = vld [vmem:[#allocation7 + $0xfc8] sm:$0xff] }
 0x1cd   : > { %3854 = vmatprep.mubr.bf16.mxu0 %v11528_v30  ;;  %4066 = vmatprep.mubr.bf16.mxu1 %v11528_v30  ;;  %v9829_v46 = vcombine.low %v975_v27, %v979_v28 }
 0x1cf   : > { %3829 = vmatpush1.bf16.msra.mxu0 %v9773_v37  ;;  %4041 = vmatpush1.bf16.msra.mxu1 %v9775_v38  ;;  %v9823_v37 = vcombine.low %v968_v19, %v972_v20  ;;  %v9830_v38 = vcombine.high %v975_v27, %v979_v28  ;;  %v1020_v19 = vld [vmem:[#allocation7 + $0xfe8] sm:$0xff]  ;;  %v517_v27 = vld [vmem:[#allocation7 + $0x30] sm:$0xff]  ;;  %v514_v28 = vld [vmem:[#allocation7 + $0x18] sm:$0xff] }
 0x1d0   : > { %3830 = vmatprep.subr.bf16.mxu0 %v9782_v39  ;;  %4042 = vmatprep.subr.bf16.mxu1 %v9784_v40  ;;  %v9832_v39 = vcombine.high %v976_v29, %v980_v32  ;;  %v983_v40 = vld [vmem:[#allocation7 + $0xec0] sm:$0xff] }
 0x1d1   : > { %v9837_v52 = vcombine.low %v983_v40, %v987_v41 }
 0x1d3   : > { %3831 = vmatpush1.bf16.msra.mxu0 %v9781_v35  ;;  %4043 = vmatpush1.bf16.msra.mxu1 %v9783_v36  ;;  %v9831_v35 = vcombine.low %v976_v29, %v980_v32  ;;  %v9838_v36 = vcombine.high %v983_v40, %v987_v41  ;;  %v518_v29 = vld [vmem:[#allocation7 + $0x38] sm:$0xff]  ;;  %v525_v40 = vld [vmem:[#allocation7 + $0x70] sm:$0xff] }
 0x1d4   : > { %3832 = vmatprep.subr.bf16.mxu0 %v9790_v47  ;;  %4044 = vmatprep.subr.bf16.mxu1 %v9792_v48  ;;  %v9840_v47 = vcombine.high %v984_v42, %v988_v44  ;;  %v991_v48 = vld [vmem:[#allocation7 + $0xf00] sm:$0xff]  ;;  %v522_v41 = vld [vmem:[#allocation7 + $0x58] sm:$0xff] }
 0x1d5   : > { %v9845_v4 = vcombine.low %v991_v48, %v995_v49 }
 0x1d7   : > { %3833 = vmatpush1.bf16.msra.mxu0 %v9789_v55  ;;  %4045 = vmatpush1.bf16.msra.mxu1 %v9791_v60  ;;  %v9839_v55 = vcombine.low %v984_v42, %v988_v44  ;;  %v9846_v60 = vcombine.high %v991_v48, %v995_v49  ;;  %v11536_v42 = vcombine.low %v11521_v23, %v11524_v24  ;;  %v526_v44 = vld [vmem:[#allocation7 + $0x78] sm:$0xff] }
 0x1d8   : > { %3834 = vmatprep.subr.bf16.mxu0 %v9798_v61  ;;  %4046 = vmatprep.subr.bf16.mxu1 %v9800_v62  ;;  %v9848_v61 = vcombine.high %v992_v50, %v996_v51  ;;  %v999_v62 = vld [vmem:[#allocation7 + $0xf40] sm:$0xff]  ;;  %v9380_v49 = vcombine.high %v522_v41, %v526_v44  ;;  %v534_v23 = vld [vmem:[#allocation7 + $0xb8] sm:$0xff] }
 0x1d9   : > { %v9853_v13 = vcombine.low %v999_v62, %v1003_v63 }
 0x1db   : > { %3835 = vmatpush1.bf16.msra.mxu0 %v9797_v5  ;;  %4047 = vmatpush1.bf16.msra.mxu1 %v9799_v6  ;;  %v9847_v5 = vcombine.low %v992_v50, %v996_v51  ;;  %v9854_v6 = vcombine.high %v999_v62, %v1003_v63  ;;  %v529_v51 = vld [vmem:[#allocation7 + $0x90] sm:$0xff] }
 0x1dc   : > { %3836 = vmatprep.subr.bf16.mxu0 %v9806_v7  ;;  %4048 = vmatprep.subr.bf16.mxu1 %v9808_v8  ;;  %v9856_v7 = vcombine.high %v1000_v0, %v1004_v3  ;;  %v1007_v8 = vld [vmem:[#allocation7 + $0xf80] sm:$0xff]  ;;  %v537_v63 = vld [vmem:[#allocation7 + $0xd0] sm:$0xff] }
 0x1dd   : > { %v9861_v20 = vcombine.low %v1007_v8, %v1011_v9 }
 0x1df   : > { %3837 = vmatpush1.bf16.msra.mxu0 %v9805_v57  ;;  %4049 = vmatpush1.bf16.msra.mxu1 %v9807_v59  ;;  %v9855_v57 = vcombine.low %v1000_v0, %v1004_v3  ;;  %v9862_v59 = vcombine.high %v1007_v8, %v1011_v9  ;;  %v541_v0 = vld [vmem:[#allocation7 + $0xf0] sm:$0xff] }
 0x1e0   : > { %3838 = vmatprep.subr.bf16.mxu0 %v9814_v14  ;;  %4050 = vmatprep.subr.bf16.mxu1 %v9816_v16  ;;  %v9864_v14 = vcombine.high %v1008_v10, %v1012_v11  ;;  %v1015_v16 = vld [vmem:[#allocation7 + $0xfc0] sm:$0xff]  ;;  %v9394_v8 = vcombine.high %v537_v63, %v541_v0 }
 0x1e1   : > { %v9869_v32 = vcombine.low %v1015_v16, %v1019_v17 }
 0x1e3   : > { %3839 = vmatpush1.bf16.msra.mxu0 %v9813_v21  ;;  %4051 = vmatpush1.bf16.msra.mxu1 %v9815_v26  ;;  %v9863_v21 = vcombine.low %v1008_v10, %v1012_v11  ;;  %v9870_v26 = vcombine.high %v1015_v16, %v1019_v17  ;;  %v545_v10 = vld [vmem:[#allocation7 + $0x110] sm:$0xff] }
 0x1e4   : > { %3840 = vmatprep.subr.bf16.mxu0 %v9822_v53  ;;  %4052 = vmatprep.subr.bf16.mxu1 %v9824_v54  ;;  %v9872_v53 = vcombine.high %v1016_v18, %v1020_v19  ;;  %v513_v54 = vld [vmem:[#allocation7 + $0x10] sm:$0xff] }
 0x1e5   : > { %v549_v11 = vld [vmem:[#allocation7 + $0x130] sm:$0xff] }
 0x1e6   : > { %v9402_v16 = vcombine.high %v545_v10, %v549_v11 }
 0x1e7   : > { %3841 = vmatpush1.bf16.msra.mxu0 %v9821_v33  ;;  %4053 = vmatpush1.bf16.msra.mxu1 %v9823_v37  ;;  %v9871_v33 = vcombine.low %v1016_v18, %v1020_v19  ;;  %v9370_v37 = vcombine.high %v513_v54, %v517_v27  ;;  %v553_v18 = vld [vmem:[#allocation7 + $0x150] sm:$0xff] }
 0x1e8   : > { %3842 = vmatprep.subr.bf16.mxu0 %v9830_v38  ;;  %4054 = vmatprep.subr.bf16.mxu1 %v9832_v39  ;;  %v9372_v38 = vcombine.high %v514_v28, %v518_v29  ;;  %v521_v39 = vld [vmem:[#allocation7 + $0x50] sm:$0xff] }
 0x1e9   : > { %v9378_v48 = vcombine.high %v521_v39, %v525_v40  ;;  %v9377_v24 = vcombine.low %v521_v39, %v525_v40  ;;  %v557_v19 = vld [vmem:[#allocation7 + $0x170] sm:$0xff] }
 0x1ea   : > { %v569_v40 = vld [vmem:[#allocation7 + $0x1d0] sm:$0xff] }
 0x1eb   : > { %3843 = vmatpush1.bf16.msra.mxu0 %v9829_v46  ;;  %4055 = vmatpush1.bf16.msra.mxu1 %v9831_v35  ;;  %v506_v46 = vld [vmem:[%s11412_s1 + $0x58] sm:$0xff] }
 0x1ec   : > { %3844 = vmatprep.subr.bf16.mxu0 %v9838_v36  ;;  %4056 = vmatprep.subr.bf16.mxu1 %v9840_v47  ;;  %v510_v35 = vld [vmem:[%s11412_s1 + $0x78] sm:$0xff]  ;;  %v9369_v36 = vcombine.low %v513_v54, %v517_v27  ;;  %v9371_v47 = vcombine.low %v514_v28, %v518_v29  ;;  %v9410_v54 = vcombine.high %v553_v18, %v557_v19  ;;  %v561_v28 = vld [vmem:[#allocation7 + $0x190] sm:$0xff]  ;;  %s10947_s1 = scalar_lea.vmem %s11857_s8, 1024 }
 0x1ed   : > { %v11540_v50 = vcombine.high %v506_v46, %v510_v35  ;;  %v11546_v3 = vcombine.low %v506_v46, %v510_v35  ;;  %v565_v29 = vld [vmem:[#allocation7 + $0x1b0] sm:$0xff]  ;;  %v574_v46 = vld [vmem:[#allocation7 + $0x1f8] sm:$0xff]  ;;  %p10948_p0 = scmp.ne.s32.totalorder %s11857_s8, %s10947_s1  ;;  %p10955_p9 = scmp.lt.s32.totalorder %s10953_s12, %s10947_s1 }
 0x1ee   : > { %v9418_v39 = vcombine.high %v561_v28, %v565_v29  ;;  %v9417_v35 = vcombine.low %v561_v28, %v565_v29  ;;  %v613_v28 = vld [vmem:[#allocation7 + $0x330] sm:$0xff]  ;;  %v610_v29 = vld [vmem:[#allocation7 + $0x318] sm:$0xff] }
 0x1ef   : > { %3845 = vmatpush1.bf16.msra.mxu0 %v9837_v52  ;;  %4057 = vmatpush1.bf16.msra.mxu1 %v9839_v55  ;;  %v533_v52 = vld [vmem:[#allocation7 + $0xb0] sm:$0xff]  ;;  %v530_v55 = vld [vmem:[#allocation7 + $0x98] sm:$0xff]  ;;  %p10949_p5 = pnand %p10948_p0, %p11965_p7  ;;  %p10956_p1 = por %p10955_p9, %p10954_p4 }
 0x1f0   : > { %3846 = vmatprep.subr.bf16.mxu0 %v9846_v60  ;;  %4058 = vmatprep.subr.bf16.mxu1 %v9848_v61  ;;  %v9379_v60 = vcombine.low %v522_v41, %v526_v44  ;;  %v9386_v61 = vcombine.high %v529_v51, %v533_v52  ;;  %v9388_v62 = vcombine.high %v530_v55, %v534_v23  ;;  %v573_v41 = vld [vmem:[#allocation7 + $0x1f0] sm:$0xff]  ;;  %v570_v44 = vld [vmem:[#allocation7 + $0x1d8] sm:$0xff] }
 0x1f1   : > { %p10950_p2 = pneg %p10949_p5 }
 0x1f3   : > { %3847 = vmatpush1.bf16.msra.mxu0 %v9845_v4  ;;  %4059 = vmatpush1.bf16.msra.mxu1 %v9847_v5  ;;  %v538_v4 = vld [vmem:[#allocation7 + $0xd8] sm:$0xff]  ;;  %p10957_p10 = pnand %p10956_p1, %p10950_p2 }
 0x1f4   : > { %3848 = vmatprep.subr.bf16.mxu0 %v9854_v6  ;;  %4060 = vmatprep.subr.bf16.mxu1 %v9856_v7  ;;  %v542_v5 = vld [vmem:[#allocation7 + $0xf8] sm:$0xff]  ;;  %v9385_v6 = vcombine.low %v529_v51, %v533_v52  ;;  %v9387_v7 = vcombine.low %v530_v55, %v534_v23  ;;  %v581_v51 = vld [vmem:[#allocation7 + $0x230] sm:$0xff]  ;;  %v9425_v23 = vcombine.low %v569_v40, %v573_v41 }
 0x1f5   : > { %v9396_v9 = vcombine.high %v538_v4, %v542_v5  ;;  %v578_v52 = vld [vmem:[#allocation7 + $0x218] sm:$0xff] }
 0x1f6   : > { %v582_v55 = vld [vmem:[#allocation7 + $0x238] sm:$0xff] }
 0x1f7   : > { %3849 = vmatpush1.bf16.msra.mxu0 %v9853_v13  ;;  %4061 = vmatpush1.bf16.msra.mxu1 %v9855_v57  ;;  %v546_v13 = vld [vmem:[#allocation7 + $0x118] sm:$0xff] }
 0x1f8   : > { %3850 = vmatprep.subr.bf16.mxu0 %v9862_v59  ;;  %4062 = vmatprep.subr.bf16.mxu1 %v9864_v14  ;;  %v550_v57 = vld [vmem:[#allocation7 + $0x138] sm:$0xff]  ;;  %v9393_v59 = vcombine.low %v537_v63, %v541_v0  ;;  %v9395_v14 = vcombine.low %v538_v4, %v542_v5  ;;  %v589_v63 = vld [vmem:[#allocation7 + $0x270] sm:$0xff] }
 0x1f9   : > { %v9404_v17 = vcombine.high %v546_v13, %v550_v57  ;;  %v586_v0 = vld [vmem:[#allocation7 + $0x258] sm:$0xff] }
 0x1fa   : > { %v590_v4 = vld [vmem:[#allocation7 + $0x278] sm:$0xff] }
 0x1fb   : > { %3851 = vmatpush1.bf16.msra.mxu0 %v9861_v20  ;;  %4063 = vmatpush1.bf16.msra.mxu1 %v9863_v21  ;;  %v554_v20 = vld [vmem:[#allocation7 + $0x158] sm:$0xff] }
 0x1fc   : > { %3852 = vmatprep.subr.bf16.mxu0 %v9870_v26  ;;  %4064 = vmatprep.subr.bf16.mxu1 %v9872_v53  ;;  %v558_v21 = vld [vmem:[#allocation7 + $0x178] sm:$0xff]  ;;  %v9401_v26 = vcombine.low %v545_v10, %v549_v11  ;;  %v9403_v53 = vcombine.low %v546_v13, %v550_v57  ;;  %v597_v10 = vld [vmem:[#allocation7 + $0x2b0] sm:$0xff] }
 0x1fd   : > { %v9412_v27 = vcombine.high %v554_v20, %v558_v21  ;;  %v594_v11 = vld [vmem:[#allocation7 + $0x298] sm:$0xff] }
 0x1fe   : > { %v598_v13 = vld [vmem:[#allocation7 + $0x2b8] sm:$0xff] }
 0x1ff   : > { %3853 = vmatpush1.bf16.msra.mxu0 %v9869_v32  ;;  %4065 = vmatpush1.bf16.msra.mxu1 %v9871_v33  ;;  %v562_v32 = vld [vmem:[#allocation7 + $0x198] sm:$0xff] }
 0x200   : > { %4087 = vmatprep.subr.bf16.mxu0 %v9370_v37  ;;  %4299 = vmatprep.subr.bf16.mxu1 %v9372_v38  ;;  %v566_v33 = vld [vmem:[#allocation7 + $0x1b8] sm:$0xff]  ;;  %v9409_v37 = vcombine.low %v553_v18, %v557_v19  ;;  %v9411_v38 = vcombine.low %v554_v20, %v558_v21  ;;  %v605_v18 = vld [vmem:[#allocation7 + $0x2f0] sm:$0xff] }
 0x201   : > { %v602_v19 = vld [vmem:[#allocation7 + $0x2d8] sm:$0xff] }
 0x202   : > { %3855 = vmatmul.mubr.bf16.vlgmr.msra.gmra.mrb[0].mxu0 %v11536_v42  ;;  %4067 = vmatmul.mubr.bf16.vlgmr.msra.gmra.mrb[0].mxu1 %v11536_v42  ;;  %v606_v20 = vld [vmem:[#allocation7 + $0x2f8] sm:$0xff] }
 0x203   : > { %4088 = vmatpush1.bf16.msra.mxu0 %v9369_v36  ;;  %4300 = vmatpush1.bf16.msra.mxu1 %v9371_v47  ;;  %v9419_v36 = vcombine.low %v562_v32, %v566_v33  ;;  %v9426_v47 = vcombine.high %v569_v40, %v573_v41  ;;  %v621_v40 = vld [vmem:[#allocation7 + $0x370] sm:$0xff]  ;;  %v618_v41 = vld [vmem:[#allocation7 + $0x358] sm:$0xff] }
 0x204   : > { %4089 = vmatprep.subr.bf16.mxu0 %v9378_v48  ;;  %4301 = vmatprep.subr.bf16.mxu1 %v9380_v49  ;;  %v9428_v48 = vcombine.high %v570_v44, %v574_v46  ;;  %v577_v49 = vld [vmem:[#allocation7 + $0x210] sm:$0xff] }
 0x205   : > { %3864 = vmatprep.mubr.bf16.mxu0 %v11540_v50  ;;  %4076 = vmatprep.mubr.bf16.mxu1 %v11540_v50  ;;  %v9433_v5 = vcombine.low %v577_v49, %v581_v51 }
 0x207   : > { %4090 = vmatpush1.bf16.msra.mxu0 %v9377_v24  ;;  %4302 = vmatpush1.bf16.msra.mxu1 %v9379_v60  ;;  %v9427_v24 = vcombine.low %v570_v44, %v574_v46  ;;  %v9434_v60 = vcombine.high %v577_v49, %v581_v51  ;;  %v622_v44 = vld [vmem:[#allocation7 + $0x378] sm:$0xff]  ;;  %v629_v49 = vld [vmem:[#allocation7 + $0x3b0] sm:$0xff] }
 0x208   : > { %4091 = vmatprep.subr.bf16.mxu0 %v9386_v61  ;;  %4303 = vmatprep.subr.bf16.mxu1 %v9388_v62  ;;  %v9436_v61 = vcombine.high %v578_v52, %v582_v55  ;;  %v585_v62 = vld [vmem:[#allocation7 + $0x250] sm:$0xff]  ;;  %v626_v51 = vld [vmem:[#allocation7 + $0x398] sm:$0xff] }
 0x209   : > { %v9441_v57 = vcombine.low %v585_v62, %v589_v63 }
 0x20a   : > { %3865 = vmatmul.mubr.bf16.gmra.mrb[4].mxu0 %v11546_v3  ;;  %4077 = vmatmul.mubr.bf16.gmra.mrb[4].mxu1 %v11546_v3 }
 0x20b   : > { %4092 = vmatpush1.bf16.msra.mxu0 %v9385_v6  ;;  %4304 = vmatpush1.bf16.msra.mxu1 %v9387_v7  ;;  %v9435_v6 = vcombine.low %v578_v52, %v582_v55  ;;  %v9442_v7 = vcombine.high %v585_v62, %v589_v63  ;;  %v630_v52 = vld [vmem:[#allocation7 + $0x3b8] sm:$0xff]  ;;  %v637_v62 = vld [vmem:[#allocation7 + $0x3f0] sm:$0xff] }
 0x20c   : > { %4093 = vmatprep.subr.bf16.mxu0 %v9394_v8  ;;  %4305 = vmatprep.subr.bf16.mxu1 %v9396_v9  ;;  %v9444_v8 = vcombine.high %v586_v0, %v590_v4  ;;  %v593_v9 = vld [vmem:[#allocation7 + $0x290] sm:$0xff]  ;;  %v634_v63 = vld [vmem:[#allocation7 + $0x3d8] sm:$0xff] }
 0x20d   : > { %4119 = vmatprep.mubr.bf16.mxu0 %v11446_v58  ;;  %4331 = vmatprep.mubr.bf16.mxu1 %v11446_v58  ;;  %v9420_v58 = vcombine.high %v562_v32, %v566_v33  ;;  %v9449_v21 = vcombine.low %v593_v9, %v597_v10  ;;  %v614_v32 = vld [vmem:[#allocation7 + $0x338] sm:$0xff] }
 0x20f   : > { %4094 = vmatpush1.bf16.msra.mxu0 %v9393_v59  ;;  %4306 = vmatpush1.bf16.msra.mxu1 %v9395_v14  ;;  %v9443_v59 = vcombine.low %v586_v0, %v590_v4  ;;  %v9450_v14 = vcombine.high %v593_v9, %v597_v10  ;;  %v638_v0 = vld [vmem:[#allocation7 + $0x3f8] sm:$0xff]  ;;  %v645_v9 = vld [vmem:[#allocation7 + $0x430] sm:$0xff] }
 0x210   : > { %4095 = vmatprep.subr.bf16.mxu0 %v9402_v16  ;;  %4307 = vmatprep.subr.bf16.mxu1 %v9404_v17  ;;  %v9452_v16 = vcombine.high %v594_v11, %v598_v13  ;;  %v601_v17 = vld [vmem:[#allocation7 + $0x2d0] sm:$0xff]  ;;  %v642_v10 = vld [vmem:[#allocation7 + $0x418] sm:$0xff] }
 0x211   : > { %v9457_v33 = vcombine.low %v601_v17, %v605_v18 }
 0x213   : > { %4096 = vmatpush1.bf16.msra.mxu0 %v9401_v26  ;;  %4308 = vmatpush1.bf16.msra.mxu1 %v9403_v53  ;;  %v9451_v26 = vcombine.low %v594_v11, %v598_v13  ;;  %v9458_v53 = vcombine.high %v601_v17, %v605_v18  ;;  %v646_v11 = vld [vmem:[#allocation7 + $0x438] sm:$0xff]  ;;  %v653_v17 = vld [vmem:[#allocation7 + $0x470] sm:$0xff] }
 0x214   : > { %4097 = vmatprep.subr.bf16.mxu0 %v9410_v54  ;;  %4309 = vmatprep.subr.bf16.mxu1 %v9412_v27  ;;  %v9460_v54 = vcombine.high %v602_v19, %v606_v20  ;;  %v609_v27 = vld [vmem:[#allocation7 + $0x310] sm:$0xff]  ;;  %v650_v18 = vld [vmem:[#allocation7 + $0x458] sm:$0xff] }
 0x215   : > { %v9465_v46 = vcombine.low %v609_v27, %v613_v28 }
 0x217   : > { %4098 = vmatpush1.bf16.msra.mxu0 %v9409_v37  ;;  %4310 = vmatpush1.bf16.msra.mxu1 %v9411_v38  ;;  %v9459_v37 = vcombine.low %v602_v19, %v606_v20  ;;  %v9466_v38 = vcombine.high %v609_v27, %v613_v28  ;;  %v654_v19 = vld [vmem:[#allocation7 + $0x478] sm:$0xff]  ;;  %v661_v27 = vld [vmem:[#allocation7 + $0x4b0] sm:$0xff] }
 0x218   : > { %4099 = vmatprep.subr.bf16.mxu0 %v9418_v39  ;;  %4311 = vmatprep.subr.bf16.mxu1 %v9420_v58  ;;  %v9468_v39 = vcombine.high %v610_v29, %v614_v32  ;;  %v617_v58 = vld [vmem:[#allocation7 + $0x350] sm:$0xff]  ;;  %v658_v28 = vld [vmem:[#allocation7 + $0x498] sm:$0xff] }
 0x219   : > { %v9473_v55 = vcombine.low %v617_v58, %v621_v40 }
 0x21b   : > { %4100 = vmatpush1.bf16.msra.mxu0 %v9417_v35  ;;  %4312 = vmatpush1.bf16.msra.mxu1 %v9419_v36  ;;  %v9467_v35 = vcombine.low %v610_v29, %v614_v32  ;;  %v9474_v36 = vcombine.high %v617_v58, %v621_v40  ;;  %v662_v29 = vld [vmem:[#allocation7 + $0x4b8] sm:$0xff]  ;;  %v669_v58 = vld [vmem:[#allocation7 + $0x4f0] sm:$0xff] }
 0x21c   : > { %4101 = vmatprep.subr.bf16.mxu0 %v9426_v47  ;;  %4313 = vmatprep.subr.bf16.mxu1 %v9428_v48  ;;  %v9476_v47 = vcombine.high %v618_v41, %v622_v44  ;;  %v625_v48 = vld [vmem:[#allocation7 + $0x390] sm:$0xff]  ;;  %v666_v40 = vld [vmem:[#allocation7 + $0x4d8] sm:$0xff] }
 0x21d   : > { %v9481_v4 = vcombine.low %v625_v48, %v629_v49 }
 0x21f   : > { %4102 = vmatpush1.bf16.msra.mxu0 %v9425_v23  ;;  %4314 = vmatpush1.bf16.msra.mxu1 %v9427_v24  ;;  %v9475_v23 = vcombine.low %v618_v41, %v622_v44  ;;  %v9482_v24 = vcombine.high %v625_v48, %v629_v49  ;;  %v670_v41 = vld [vmem:[#allocation7 + $0x4f8] sm:$0xff] }
 0x220   : > { %4103 = vmatprep.subr.bf16.mxu0 %v9434_v60  ;;  %4315 = vmatprep.subr.bf16.mxu1 %v9436_v61  ;;  %v9484_v60 = vcombine.high %v626_v51, %v630_v52  ;;  %v633_v61 = vld [vmem:[#allocation7 + $0x3d0] sm:$0xff]  ;;  %v674_v48 = vld [vmem:[#allocation7 + $0x518] sm:$0xff] }
 0x221   : > { %v9489_v13 = vcombine.low %v633_v61, %v637_v62  ;;  %v678_v49 = vld [vmem:[#allocation7 + $0x538] sm:$0xff] }
 0x223   : > { %4104 = vmatpush1.bf16.msra.mxu0 %v9433_v5  ;;  %4316 = vmatpush1.bf16.msra.mxu1 %v9435_v6  ;;  %v9483_v5 = vcombine.low %v626_v51, %v630_v52  ;;  %v9490_v6 = vcombine.high %v633_v61, %v637_v62  ;;  %v686_v61 = vld [vmem:[#allocation7 + $0x578] sm:$0xff] }
 0x224   : > { %4105 = vmatprep.subr.bf16.mxu0 %v9442_v7  ;;  %4317 = vmatprep.subr.bf16.mxu1 %v9444_v8  ;;  %v9492_v7 = vcombine.high %v634_v63, %v638_v0  ;;  %v641_v8 = vld [vmem:[#allocation7 + $0x410] sm:$0xff] }
 0x225   : > { %v9497_v20 = vcombine.low %v641_v8, %v645_v9 }
 0x227   : > { %4106 = vmatpush1.bf16.msra.mxu0 %v9441_v57  ;;  %4318 = vmatpush1.bf16.msra.mxu1 %v9443_v59  ;;  %v9491_v57 = vcombine.low %v634_v63, %v638_v0  ;;  %v9498_v59 = vcombine.high %v641_v8, %v645_v9  ;;  %v9531_v63 = vcombine.low %v674_v48, %v678_v49 }
 0x228   : > { %4107 = vmatprep.subr.bf16.mxu0 %v9450_v14  ;;  %4319 = vmatprep.subr.bf16.mxu1 %v9452_v16  ;;  %v9500_v14 = vcombine.high %v642_v10, %v646_v11  ;;  %v649_v16 = vld [vmem:[#allocation7 + $0x450] sm:$0xff] }
 0x229   : > { %v9505_v32 = vcombine.low %v649_v16, %v653_v17 }
 0x22b   : > { %4108 = vmatpush1.bf16.msra.mxu0 %v9449_v21  ;;  %4320 = vmatpush1.bf16.msra.mxu1 %v9451_v26  ;;  %v9499_v21 = vcombine.low %v642_v10, %v646_v11  ;;  %v9506_v26 = vcombine.high %v649_v16, %v653_v17  ;;  %v697_v11 = vld [vmem:[#allocation7 + $0x5d0] sm:$0xff] }
 0x22c   : > { %4109 = vmatprep.subr.bf16.mxu0 %v9458_v53  ;;  %4321 = vmatprep.subr.bf16.mxu1 %v9460_v54  ;;  %v9508_v53 = vcombine.high %v650_v18, %v654_v19  ;;  %v657_v54 = vld [vmem:[#allocation7 + $0x490] sm:$0xff] }
 0x22d   : > { %v9513_v44 = vcombine.low %v657_v54, %v661_v27 }
 0x22f   : > { %4110 = vmatpush1.bf16.msra.mxu0 %v9457_v33  ;;  %4322 = vmatpush1.bf16.msra.mxu1 %v9459_v37  ;;  %v9507_v33 = vcombine.low %v650_v18, %v654_v19  ;;  %v9514_v37 = vcombine.high %v657_v54, %v661_v27  ;;  %v705_v19 = vld [vmem:[#allocation7 + $0x610] sm:$0xff] }
 0x230   : > { %4111 = vmatprep.subr.bf16.mxu0 %v9466_v38  ;;  %4323 = vmatprep.subr.bf16.mxu1 %v9468_v39  ;;  %v9516_v38 = vcombine.high %v658_v28, %v662_v29  ;;  %v665_v39 = vld [vmem:[#allocation7 + $0x4d0] sm:$0xff] }
 0x231   : > { %v9521_v51 = vcombine.low %v665_v39, %v669_v58 }
 0x233   : > { %4112 = vmatpush1.bf16.msra.mxu0 %v9465_v46  ;;  %4324 = vmatpush1.bf16.msra.mxu1 %v9467_v35  ;;  %v9522_v46 = vcombine.high %v665_v39, %v669_v58  ;;  %v9524_v35 = vcombine.high %v666_v40, %v670_v41 }
 0x234   : > { %4113 = vmatprep.subr.bf16.mxu0 %v9474_v36  ;;  %4325 = vmatprep.subr.bf16.mxu1 %v9476_v47  ;;  %v673_v36 = vld [vmem:[#allocation7 + $0x510] sm:$0xff] }
 0x235   : > { %v677_v47 = vld [vmem:[#allocation7 + $0x530] sm:$0xff] }
 0x236   : > { %v9530_v52 = vcombine.high %v673_v36, %v677_v47  ;;  %v9529_v62 = vcombine.low %v673_v36, %v677_v47 }
 0x237   : > { %4114 = vmatpush1.bf16.msra.mxu0 %v9473_v55  ;;  %4326 = vmatpush1.bf16.msra.mxu1 %v9475_v23  ;;  %v9532_v55 = vcombine.high %v674_v48, %v678_v49  ;;  %v681_v23 = vld [vmem:[#allocation7 + $0x550] sm:$0xff] }
 0x238   : > { %4115 = vmatprep.subr.bf16.mxu0 %v9482_v24  ;;  %4327 = vmatprep.subr.bf16.mxu1 %v9484_v60  ;;  %v685_v24 = vld [vmem:[#allocation7 + $0x570] sm:$0xff]  ;;  %v682_v60 = vld [vmem:[#allocation7 + $0x558] sm:$0xff] }
 0x239   : > { %v9540_v0 = vcombine.high %v682_v60, %v686_v61  ;;  %v9537_v8 = vcombine.low %v681_v23, %v685_v24  ;;  %v9539_v9 = vcombine.low %v682_v60, %v686_v61  ;;  %v729_v49 = vld [vmem:[#allocation7 + $0x6d0] sm:$0xff] }
 0x23a   : > { %v737_v61 = vld [vmem:[#allocation7 + $0x710] sm:$0xff] }
 0x23b   : > { %4116 = vmatpush1.bf16.msra.mxu0 %v9481_v4  ;;  %4328 = vmatpush1.bf16.msra.mxu1 %v9483_v5  ;;  %v689_v4 = vld [vmem:[#allocation7 + $0x590] sm:$0xff] }
 0x23c   : > { %4117 = vmatprep.subr.bf16.mxu0 %v9490_v6  ;;  %4329 = vmatprep.subr.bf16.mxu1 %v9492_v7  ;;  %v693_v5 = vld [vmem:[#allocation7 + $0x5b0] sm:$0xff]  ;;  %v690_v6 = vld [vmem:[#allocation7 + $0x598] sm:$0xff] }
 0x23d   : > { %v694_v7 = vld [vmem:[#allocation7 + $0x5b8] sm:$0xff]  ;;  %v9546_v10 = vcombine.high %v689_v4, %v693_v5 }
 0x23e   : > { %v9547_v16 = vcombine.low %v690_v6, %v694_v7 }
 0x23f   : > { %4118 = vmatpush1.bf16.msra.mxu0 %v9489_v13  ;;  %4330 = vmatpush1.bf16.msra.mxu1 %v9491_v57  ;;  %v701_v13 = vld [vmem:[#allocation7 + $0x5f0] sm:$0xff]  ;;  %v698_v57 = vld [vmem:[#allocation7 + $0x5d8] sm:$0xff] }
 0x240   : > { %4140 = vmatprep.subr.bf16.mxu0 %v9498_v59  ;;  %4352 = vmatprep.subr.bf16.mxu1 %v9500_v14  ;;  %v702_v59 = vld [vmem:[#allocation7 + $0x5f8] sm:$0xff]  ;;  %v9545_v14 = vcombine.low %v689_v4, %v693_v5  ;;  %v9554_v17 = vcombine.high %v697_v11, %v701_v13 }
 0x241   : > { %v9556_v18 = vcombine.high %v698_v57, %v702_v59  ;;  %v9555_v54 = vcombine.low %v698_v57, %v702_v59  ;;  %v753_v59 = vld [vmem:[#allocation7 + $0x790] sm:$0xff] }
 0x242   : > { %4120 = vmatmul.mubr.bf16.vlgmr.msra.gmra.mrb[8].mxu0 %v11452_v15  ;;  %4332 = vmatmul.mubr.bf16.vlgmr.msra.gmra.mrb[8].mxu1 %v11452_v15  ;;  %v9515_v15 = vcombine.low %v658_v28, %v662_v29  ;;  %v713_v29 = vld [vmem:[#allocation7 + $0x650] sm:$0xff] }
 0x243   : > { %4141 = vmatpush1.bf16.msra.mxu0 %v9497_v20  ;;  %4353 = vmatpush1.bf16.msra.mxu1 %v9499_v21  ;;  %v709_v20 = vld [vmem:[#allocation7 + $0x630] sm:$0xff]  ;;  %v706_v21 = vld [vmem:[#allocation7 + $0x618] sm:$0xff] }
 0x244   : > { %4142 = vmatprep.subr.bf16.mxu0 %v9506_v26  ;;  %4354 = vmatprep.subr.bf16.mxu1 %v9508_v53  ;;  %v710_v26 = vld [vmem:[#allocation7 + $0x638] sm:$0xff]  ;;  %v9553_v53 = vcombine.low %v697_v11, %v701_v13  ;;  %v9562_v27 = vcombine.high %v705_v19, %v709_v20 }
 0x245   : > { %4129 = vmatprep.mubr.bf16.mxu0 %v11456_v25  ;;  %4341 = vmatprep.mubr.bf16.mxu1 %v11456_v25  ;;  %v9523_v25 = vcombine.low %v666_v40, %v670_v41  ;;  %v9564_v28 = vcombine.high %v706_v21, %v710_v26  ;;  %v9563_v39 = vcombine.low %v706_v21, %v710_v26  ;;  %v721_v41 = vld [vmem:[#allocation7 + $0x690] sm:$0xff] }
 0x246   : > { %v761_v26 = vld [vmem:[#allocation7 + $0x7d0] sm:$0xff] }
 0x247   : > { %4143 = vmatpush1.bf16.msra.mxu0 %v9505_v32  ;;  %4355 = vmatpush1.bf16.msra.mxu1 %v9507_v33  ;;  %v717_v32 = vld [vmem:[#allocation7 + $0x670] sm:$0xff]  ;;  %v714_v33 = vld [vmem:[#allocation7 + $0x658] sm:$0xff] }
 0x248   : > { %4144 = vmatprep.subr.bf16.mxu0 %v9514_v37  ;;  %4356 = vmatprep.subr.bf16.mxu1 %v9516_v38  ;;  %v718_v37 = vld [vmem:[#allocation7 + $0x678] sm:$0xff]  ;;  %v9561_v38 = vcombine.low %v705_v19, %v709_v20  ;;  %v9570_v58 = vcombine.high %v713_v29, %v717_v32 }
 0x249   : > { %v9572_v40 = vcombine.high %v714_v33, %v718_v37  ;;  %v9571_v36 = vcombine.low %v714_v33, %v718_v37  ;;  %v769_v37 = vld [vmem:[#allocation7 + $0x810] sm:$0xff] }
 0x24a   : > { %4130 = vmatmul.mubr.bf16.gmra.mrb[12].mxu0 %v11462_v34  ;;  %4342 = vmatmul.mubr.bf16.gmra.mrb[12].mxu1 %v11462_v34  ;;  %v9538_v34 = vcombine.high %v681_v23, %v685_v24 }
 0x24b   : > { %4145 = vmatpush1.bf16.msra.mxu0 %v9513_v44  ;;  %4357 = vmatpush1.bf16.msra.mxu1 %v9515_v15  ;;  %v725_v44 = vld [vmem:[#allocation7 + $0x6b0] sm:$0xff]  ;;  %v722_v15 = vld [vmem:[#allocation7 + $0x698] sm:$0xff] }
 0x24c   : > { %4146 = vmatprep.subr.bf16.mxu0 %v9522_v46  ;;  %4358 = vmatprep.subr.bf16.mxu1 %v9524_v35  ;;  %v726_v46 = vld [vmem:[#allocation7 + $0x6b8] sm:$0xff]  ;;  %v9569_v35 = vcombine.low %v713_v29, %v717_v32  ;;  %v9578_v47 = vcombine.high %v721_v41, %v725_v44 }
 0x24d   : > { %4172 = vmatprep.mubr.bf16.mxu0 %v11472_v43  ;;  %4384 = vmatprep.mubr.bf16.mxu1 %v11472_v43  ;;  %v9548_v43 = vcombine.high %v690_v6, %v694_v7  ;;  %v9580_v48 = vcombine.high %v722_v15, %v726_v46  ;;  %v9579_v23 = vcombine.low %v722_v15, %v726_v46  ;;  %v745_v7 = vld [vmem:[#allocation7 + $0x750] sm:$0xff] }
 0x24e   : > { %v777_v46 = vld [vmem:[#allocation7 + $0x850] sm:$0xff] }
 0x24f   : > { %4147 = vmatpush1.bf16.msra.mxu0 %v9521_v51  ;;  %4359 = vmatpush1.bf16.msra.mxu1 %v9523_v25  ;;  %v733_v51 = vld [vmem:[#allocation7 + $0x6f0] sm:$0xff]  ;;  %v730_v25 = vld [vmem:[#allocation7 + $0x6d8] sm:$0xff] }
 0x250   : > { %4148 = vmatprep.subr.bf16.mxu0 %v9530_v52  ;;  %4360 = vmatprep.subr.bf16.mxu1 %v9532_v55  ;;  %v734_v52 = vld [vmem:[#allocation7 + $0x6f8] sm:$0xff]  ;;  %v9577_v55 = vcombine.low %v721_v41, %v725_v44  ;;  %v9586_v24 = vcombine.high %v729_v49, %v733_v51 }
 0x251   : > { %v9588_v60 = vcombine.high %v730_v25, %v734_v52  ;;  %v9587_v4 = vcombine.low %v730_v25, %v734_v52  ;;  %v785_v52 = vld [vmem:[#allocation7 + $0x890] sm:$0xff] }
 0x253   : > { %4149 = vmatpush1.bf16.msra.mxu0 %v9529_v62  ;;  %4361 = vmatpush1.bf16.msra.mxu1 %v9531_v63  ;;  %v741_v62 = vld [vmem:[#allocation7 + $0x730] sm:$0xff]  ;;  %v738_v63 = vld [vmem:[#allocation7 + $0x718] sm:$0xff] }
 0x254   : > { %4150 = vmatprep.subr.bf16.mxu0 %v9538_v34  ;;  %4362 = vmatprep.subr.bf16.mxu1 %v9540_v0  ;;  %v742_v34 = vld [vmem:[#allocation7 + $0x738] sm:$0xff]  ;;  %v9585_v0 = vcombine.low %v729_v49, %v733_v51  ;;  %v9594_v5 = vcombine.high %v737_v61, %v741_v62 }
 0x255   : > { %v9596_v6 = vcombine.high %v738_v63, %v742_v34  ;;  %v9595_v11 = vcombine.low %v738_v63, %v742_v34  ;;  %v793_v34 = vld [vmem:[#allocation7 + $0x8d0] sm:$0xff] }
 0x257   : > { %4151 = vmatpush1.bf16.msra.mxu0 %v9537_v8  ;;  %4363 = vmatpush1.bf16.msra.mxu1 %v9539_v9  ;;  %v749_v8 = vld [vmem:[#allocation7 + $0x770] sm:$0xff]  ;;  %v746_v9 = vld [vmem:[#allocation7 + $0x758] sm:$0xff] }
 0x258   : > { %4152 = vmatprep.subr.bf16.mxu0 %v9546_v10  ;;  %4364 = vmatprep.subr.bf16.mxu1 %v9548_v43  ;;  %v750_v10 = vld [vmem:[#allocation7 + $0x778] sm:$0xff]  ;;  %v9593_v43 = vcombine.low %v737_v61, %v741_v62  ;;  %v9602_v13 = vcombine.high %v745_v7, %v749_v8 }
 0x259   : > { %v9604_v57 = vcombine.high %v746_v9, %v750_v10  ;;  %v9603_v19 = vcombine.low %v746_v9, %v750_v10  ;;  %v801_v9 = vld [vmem:[#allocation7 + $0x910] sm:$0xff] }
 0x25a   : > { %v805_v10 = vld [vmem:[#allocation7 + $0x930] sm:$0xff] }
 0x25b   : > { %4153 = vmatpush1.bf16.msra.mxu0 %v9545_v14  ;;  %4365 = vmatpush1.bf16.msra.mxu1 %v9547_v16  ;;  %v757_v14 = vld [vmem:[#allocation7 + $0x7b0] sm:$0xff]  ;;  %v754_v16 = vld [vmem:[#allocation7 + $0x798] sm:$0xff] }
 0x25c   : > { %4154 = vmatprep.subr.bf16.mxu0 %v9554_v17  ;;  %4366 = vmatprep.subr.bf16.mxu1 %v9556_v18  ;;  %v758_v17 = vld [vmem:[#allocation7 + $0x7b8] sm:$0xff]  ;;  %v9601_v18 = vcombine.low %v745_v7, %v749_v8  ;;  %v9610_v20 = vcombine.high %v753_v59, %v757_v14 }
 0x25d   : > { %v9612_v21 = vcombine.high %v754_v16, %v758_v17  ;;  %v9611_v29 = vcombine.low %v754_v16, %v758_v17  ;;  %v813_v16 = vld [vmem:[#allocation7 + $0x970] sm:$0xff]  ;;  %v810_v17 = vld [vmem:[#allocation7 + $0x958] sm:$0xff] }
 0x25f   : > { %4155 = vmatpush1.bf16.msra.mxu0 %v9553_v53  ;;  %4367 = vmatpush1.bf16.msra.mxu1 %v9555_v54  ;;  %v765_v53 = vld [vmem:[#allocation7 + $0x7f0] sm:$0xff]  ;;  %v762_v54 = vld [vmem:[#allocation7 + $0x7d8] sm:$0xff] }
 0x260   : > { %4156 = vmatprep.subr.bf16.mxu0 %v9562_v27  ;;  %4368 = vmatprep.subr.bf16.mxu1 %v9564_v28  ;;  %v766_v27 = vld [vmem:[#allocation7 + $0x7f8] sm:$0xff]  ;;  %v9609_v28 = vcombine.low %v753_v59, %v757_v14  ;;  %v9618_v32 = vcombine.high %v761_v26, %v765_v53  ;;  %v809_v14 = vld [vmem:[#allocation7 + $0x950] sm:$0xff] }
 0x261   : > { %v9620_v33 = vcombine.high %v762_v54, %v766_v27  ;;  %v9619_v41 = vcombine.low %v762_v54, %v766_v27  ;;  %v818_v54 = vld [vmem:[#allocation7 + $0x998] sm:$0xff] }
 0x262   : > { %v822_v27 = vld [vmem:[#allocation7 + $0x9b8] sm:$0xff] }
 0x263   : > { %4157 = vmatpush1.bf16.msra.mxu0 %v9561_v38  ;;  %4369 = vmatpush1.bf16.msra.mxu1 %v9563_v39  ;;  %v773_v38 = vld [vmem:[#allocation7 + $0x830] sm:$0xff]  ;;  %v770_v39 = vld [vmem:[#allocation7 + $0x818] sm:$0xff] }
 0x264   : > { %4158 = vmatprep.subr.bf16.mxu0 %v9570_v58  ;;  %4370 = vmatprep.subr.bf16.mxu1 %v9572_v40  ;;  %v774_v58 = vld [vmem:[#allocation7 + $0x838] sm:$0xff]  ;;  %v9617_v40 = vcombine.low %v761_v26, %v765_v53  ;;  %v9626_v44 = vcombine.high %v769_v37, %v773_v38  ;;  %v821_v53 = vld [vmem:[#allocation7 + $0x9b0] sm:$0xff] }
 0x265   : > { %v9628_v15 = vcombine.high %v770_v39, %v774_v58  ;;  %v9627_v49 = vcombine.low %v770_v39, %v774_v58  ;;  %v830_v39 = vld [vmem:[#allocation7 + $0x9f8] sm:$0xff] }
 0x267   : > { %4159 = vmatpush1.bf16.msra.mxu0 %v9569_v35  ;;  %4371 = vmatpush1.bf16.msra.mxu1 %v9571_v36  ;;  %v781_v35 = vld [vmem:[#allocation7 + $0x870] sm:$0xff]  ;;  %v778_v36 = vld [vmem:[#allocation7 + $0x858] sm:$0xff] }
 0x268   : > { %4160 = vmatprep.subr.bf16.mxu0 %v9578_v47  ;;  %4372 = vmatprep.subr.bf16.mxu1 %v9580_v48  ;;  %v782_v47 = vld [vmem:[#allocation7 + $0x878] sm:$0xff]  ;;  %v9625_v48 = vcombine.low %v769_v37, %v773_v38  ;;  %v9634_v51 = vcombine.high %v777_v46, %v781_v35  ;;  %v829_v37 = vld [vmem:[#allocation7 + $0x9f0] sm:$0xff] }
 0x269   : > { %v9636_v25 = vcombine.high %v778_v36, %v782_v47  ;;  %v9635_v61 = vcombine.low %v778_v36, %v782_v47  ;;  %v826_v38 = vld [vmem:[#allocation7 + $0x9d8] sm:$0xff] }
 0x26a   : > { %v838_v36 = vld [vmem:[#allocation7 + $0xa38] sm:$0xff] }
 0x26b   : > { %4161 = vmatpush1.bf16.msra.mxu0 %v9577_v55  ;;  %4373 = vmatpush1.bf16.msra.mxu1 %v9579_v23  ;;  %v789_v55 = vld [vmem:[#allocation7 + $0x8b0] sm:$0xff]  ;;  %v786_v23 = vld [vmem:[#allocation7 + $0x898] sm:$0xff] }
 0x26c   : > { %4162 = vmatprep.subr.bf16.mxu0 %v9586_v24  ;;  %4374 = vmatprep.subr.bf16.mxu1 %v9588_v60  ;;  %v790_v24 = vld [vmem:[#allocation7 + $0x8b8] sm:$0xff]  ;;  %v9633_v60 = vcombine.low %v777_v46, %v781_v35  ;;  %v9642_v62 = vcombine.high %v785_v52, %v789_v55  ;;  %v837_v46 = vld [vmem:[#allocation7 + $0xa30] sm:$0xff] }
 0x26d   : > { %v9644_v63 = vcombine.high %v786_v23, %v790_v24  ;;  %v834_v35 = vld [vmem:[#allocation7 + $0xa18] sm:$0xff] }
 0x26f   : > { %4163 = vmatpush1.bf16.msra.mxu0 %v9585_v0  ;;  %4375 = vmatpush1.bf16.msra.mxu1 %v9587_v4  ;;  %v797_v0 = vld [vmem:[#allocation7 + $0x8f0] sm:$0xff]  ;;  %v794_v4 = vld [vmem:[#allocation7 + $0x8d8] sm:$0xff] }
 0x270   : > { %4164 = vmatprep.subr.bf16.mxu0 %v9594_v5  ;;  %4376 = vmatprep.subr.bf16.mxu1 %v9596_v6  ;;  %v798_v5 = vld [vmem:[#allocation7 + $0x8f8] sm:$0xff]  ;;  %v9641_v6 = vcombine.low %v785_v52, %v789_v55  ;;  %v9650_v7 = vcombine.high %v793_v34, %v797_v0  ;;  %v845_v52 = vld [vmem:[#allocation7 + $0xa70] sm:$0xff] }
 0x271   : > { %v9652_v8 = vcombine.high %v794_v4, %v798_v5  ;;  %v842_v55 = vld [vmem:[#allocation7 + $0xa58] sm:$0xff] }
 0x273   : > { %4165 = vmatpush1.bf16.msra.mxu0 %v9593_v43  ;;  %4377 = vmatpush1.bf16.msra.mxu1 %v9595_v11  ;;  %v802_v43 = vld [vmem:[#allocation7 + $0x918] sm:$0xff] }
 0x274   : > { %4166 = vmatprep.subr.bf16.mxu0 %v9602_v13  ;;  %4378 = vmatprep.subr.bf16.mxu1 %v9604_v57  ;;  %v806_v11 = vld [vmem:[#allocation7 + $0x938] sm:$0xff]  ;;  %v9649_v13 = vcombine.low %v793_v34, %v797_v0  ;;  %v9658_v57 = vcombine.high %v801_v9, %v805_v10  ;;  %v853_v34 = vld [vmem:[#allocation7 + $0xab0] sm:$0xff] }
 0x275   : > { %v9660_v59 = vcombine.high %v802_v43, %v806_v11  ;;  %v850_v0 = vld [vmem:[#allocation7 + $0xa98] sm:$0xff] }
 0x277   : > { %4167 = vmatpush1.bf16.msra.mxu0 %v9601_v18  ;;  %4379 = vmatpush1.bf16.msra.mxu1 %v9603_v19  ;;  %v814_v18 = vld [vmem:[#allocation7 + $0x978] sm:$0xff]  ;;  %v9657_v19 = vcombine.low %v801_v9, %v805_v10  ;;  %v861_v9 = vld [vmem:[#allocation7 + $0xaf0] sm:$0xff] }
 0x278   : > { %4168 = vmatprep.subr.bf16.mxu0 %v9610_v20  ;;  %4380 = vmatprep.subr.bf16.mxu1 %v9612_v21  ;;  %v9666_v20 = vcombine.high %v809_v14, %v813_v16  ;;  %v817_v21 = vld [vmem:[#allocation7 + $0x990] sm:$0xff]  ;;  %v9668_v26 = vcombine.high %v810_v17, %v814_v18  ;;  %v858_v10 = vld [vmem:[#allocation7 + $0xad8] sm:$0xff] }
 0x279   : > { %v9673_v58 = vcombine.low %v817_v21, %v821_v53 }
 0x27b   : > { %4169 = vmatpush1.bf16.msra.mxu0 %v9609_v28  ;;  %4381 = vmatpush1.bf16.msra.mxu1 %v9611_v29  ;;  %v9667_v28 = vcombine.low %v810_v17, %v814_v18  ;;  %v9674_v29 = vcombine.high %v817_v21, %v821_v53  ;;  %v870_v17 = vld [vmem:[#allocation7 + $0xb38] sm:$0xff]  ;;  %v873_v21 = vld [vmem:[#allocation7 + $0xb50] sm:$0xff] }
 0x27c   : > { %4170 = vmatprep.subr.bf16.mxu0 %v9618_v32  ;;  %4382 = vmatprep.subr.bf16.mxu1 %v9620_v33  ;;  %v9676_v32 = vcombine.high %v818_v54, %v822_v27  ;;  %v825_v33 = vld [vmem:[#allocation7 + $0x9d0] sm:$0xff]  ;;  %v874_v53 = vld [vmem:[#allocation7 + $0xb58] sm:$0xff] }
 0x27d   : > { %v9681_v47 = vcombine.low %v825_v33, %v829_v37 }
 0x27f   : > { %4171 = vmatpush1.bf16.msra.mxu0 %v9617_v40  ;;  %4383 = vmatpush1.bf16.msra.mxu1 %v9619_v41  ;;  %v9675_v40 = vcombine.low %v818_v54, %v822_v27  ;;  %v9682_v41 = vcombine.high %v825_v33, %v829_v37  ;;  %v878_v54 = vld [vmem:[#allocation7 + $0xb78] sm:$0xff]  ;;  %v885_v33 = vld [vmem:[#allocation7 + $0xbb0] sm:$0xff] }
 0x280   : > { %4193 = vmatprep.subr.bf16.mxu0 %v9626_v44  ;;  %4405 = vmatprep.subr.bf16.mxu1 %v9628_v15  ;;  %v9684_v44 = vcombine.high %v826_v38, %v830_v39  ;;  %v833_v15 = vld [vmem:[#allocation7 + $0xa10] sm:$0xff]  ;;  %v882_v37 = vld [vmem:[#allocation7 + $0xb98] sm:$0xff] }
 0x282   : > { %4173 = vmatmul.mubr.bf16.vlgmr.msra.gmra.mrb[8].mxu0 %v11480_v31  ;;  %4385 = vmatmul.mubr.bf16.vlgmr.msra.gmra.mrb[8].mxu1 %v11480_v31  ;;  %v9643_v31 = vcombine.low %v786_v23, %v790_v24  ;;  %v846_v23 = vld [vmem:[#allocation7 + $0xa78] sm:$0xff]  ;;  %v9689_v24 = vcombine.low %v833_v15, %v837_v46 }
 0x283   : > { %4194 = vmatpush1.bf16.msra.mxu0 %v9625_v48  ;;  %4406 = vmatpush1.bf16.msra.mxu1 %v9627_v49  ;;  %v9683_v48 = vcombine.low %v826_v38, %v830_v39  ;;  %v9690_v49 = vcombine.high %v833_v15, %v837_v46  ;;  %v886_v38 = vld [vmem:[#allocation7 + $0xbb8] sm:$0xff]  ;;  %v893_v15 = vld [vmem:[#allocation7 + $0xbf0] sm:$0xff] }
 0x284   : > { %4195 = vmatprep.subr.bf16.mxu0 %v9634_v51  ;;  %4407 = vmatprep.subr.bf16.mxu1 %v9636_v25  ;;  %v9692_v51 = vcombine.high %v834_v35, %v838_v36  ;;  %v841_v25 = vld [vmem:[#allocation7 + $0xa50] sm:$0xff]  ;;  %v890_v46 = vld [vmem:[#allocation7 + $0xbd8] sm:$0xff] }
 0x285   : > { %4182 = vmatprep.mubr.bf16.mxu0 %v11484_v45  ;;  %4394 = vmatprep.mubr.bf16.mxu1 %v11484_v45  ;;  %v9651_v45 = vcombine.low %v794_v4, %v798_v5  ;;  %v854_v4 = vld [vmem:[#allocation7 + $0xab8] sm:$0xff]  ;;  %v9697_v5 = vcombine.low %v841_v25, %v845_v52 }
 0x287   : > { %4196 = vmatpush1.bf16.msra.mxu0 %v9633_v60  ;;  %4408 = vmatpush1.bf16.msra.mxu1 %v9635_v61  ;;  %v9691_v60 = vcombine.low %v834_v35, %v838_v36  ;;  %v9698_v61 = vcombine.high %v841_v25, %v845_v52  ;;  %v894_v35 = vld [vmem:[#allocation7 + $0xbf8] sm:$0xff]  ;;  %v901_v25 = vld [vmem:[#allocation7 + $0xc30] sm:$0xff] }
 0x288   : > { %4197 = vmatprep.subr.bf16.mxu0 %v9642_v62  ;;  %4409 = vmatprep.subr.bf16.mxu1 %v9644_v63  ;;  %v9700_v62 = vcombine.high %v842_v55, %v846_v23  ;;  %v849_v63 = vld [vmem:[#allocation7 + $0xa90] sm:$0xff]  ;;  %v898_v52 = vld [vmem:[#allocation7 + $0xc18] sm:$0xff] }
 0x28a   : > { %4183 = vmatmul.mubr.bf16.gmra.mrb[12].mxu0 %v11490_v56  ;;  %4395 = vmatmul.mubr.bf16.gmra.mrb[12].mxu1 %v11490_v56  ;;  %v9659_v56 = vcombine.low %v802_v43, %v806_v11  ;;  %v862_v43 = vld [vmem:[#allocation7 + $0xaf8] sm:$0xff]  ;;  %v9705_v11 = vcombine.low %v849_v63, %v853_v34 }
 0x28b   : > { %4198 = vmatpush1.bf16.msra.mxu0 %v9641_v6  ;;  %4410 = vmatpush1.bf16.msra.mxu1 %v9643_v31  ;;  %v9699_v6 = vcombine.low %v842_v55, %v846_v23  ;;  %v9706_v31 = vcombine.high %v849_v63, %v853_v34  ;;  %v902_v55 = vld [vmem:[#allocation7 + $0xc38] sm:$0xff]  ;;  %v909_v63 = vld [vmem:[#allocation7 + $0xc70] sm:$0xff] }
 0x28c   : > { %4199 = vmatprep.subr.bf16.mxu0 %v9650_v7  ;;  %4411 = vmatprep.subr.bf16.mxu1 %v9652_v8  ;;  %v9708_v7 = vcombine.high %v850_v0, %v854_v4  ;;  %v857_v8 = vld [vmem:[#allocation7 + $0xad0] sm:$0xff]  ;;  %v906_v34 = vld [vmem:[#allocation7 + $0xc58] sm:$0xff] }
 0x28d   : > { %4225 = vmatprep.mubr.bf16.mxu0 %v11500_v2  ;;  %4437 = vmatprep.mubr.bf16.mxu1 %v11500_v2  ;;  %v9665_v2 = vcombine.low %v809_v14, %v813_v16  ;;  %v869_v14 = vld [vmem:[#allocation7 + $0xb30] sm:$0xff]  ;;  %v866_v16 = vld [vmem:[#allocation7 + $0xb18] sm:$0xff]  ;;  %v9713_v18 = vcombine.low %v857_v8, %v861_v9 }
 0x28f   : > { %4200 = vmatpush1.bf16.msra.mxu0 %v9649_v13  ;;  %4412 = vmatpush1.bf16.msra.mxu1 %v9651_v45  ;;  %v9707_v13 = vcombine.low %v850_v0, %v854_v4  ;;  %v9714_v45 = vcombine.high %v857_v8, %v861_v9  ;;  %v910_v0 = vld [vmem:[#allocation7 + $0xc78] sm:$0xff]  ;;  %v917_v8 = vld [vmem:[#allocation7 + $0xcb0] sm:$0xff] }
 0x290   : > { %4201 = vmatprep.subr.bf16.mxu0 %v9658_v57  ;;  %4413 = vmatprep.subr.bf16.mxu1 %v9660_v59  ;;  %v9716_v57 = vcombine.high %v858_v10, %v862_v43  ;;  %v865_v59 = vld [vmem:[#allocation7 + $0xb10] sm:$0xff]  ;;  %v914_v9 = vld [vmem:[#allocation7 + $0xc98] sm:$0xff] }
 0x291   : > { %v9721_v27 = vcombine.low %v865_v59, %v869_v14 }
 0x293   : > { %4202 = vmatpush1.bf16.msra.mxu0 %v9657_v19  ;;  %4414 = vmatpush1.bf16.msra.mxu1 %v9659_v56  ;;  %v9715_v19 = vcombine.low %v858_v10, %v862_v43  ;;  %v9722_v56 = vcombine.high %v865_v59, %v869_v14  ;;  %v918_v10 = vld [vmem:[#allocation7 + $0xcb8] sm:$0xff]  ;;  %v925_v59 = vld [vmem:[#allocation7 + $0xcf0] sm:$0xff] }
 0x294   : > { %4203 = vmatprep.subr.bf16.mxu0 %v9666_v20  ;;  %4415 = vmatprep.subr.bf16.mxu1 %v9668_v26  ;;  %v9724_v20 = vcombine.high %v866_v16, %v870_v17  ;;  %v877_v26 = vld [vmem:[#allocation7 + $0xb70] sm:$0xff]  ;;  %v922_v14 = vld [vmem:[#allocation7 + $0xcd8] sm:$0xff] }
 0x295   : > { %v9729_v39 = vcombine.low %v873_v21, %v877_v26 }
 0x297   : > { %4204 = vmatpush1.bf16.msra.mxu0 %v9665_v2  ;;  %4416 = vmatpush1.bf16.msra.mxu1 %v9667_v28  ;;  %v9723_v2 = vcombine.low %v866_v16, %v870_v17  ;;  %v9730_v28 = vcombine.high %v873_v21, %v877_v26  ;;  %v926_v16 = vld [vmem:[#allocation7 + $0xcf8] sm:$0xff] }
 0x298   : > { %4205 = vmatprep.subr.bf16.mxu0 %v9674_v29  ;;  %4417 = vmatprep.subr.bf16.mxu1 %v9676_v32  ;;  %v9732_v29 = vcombine.high %v874_v53, %v878_v54  ;;  %v881_v32 = vld [vmem:[#allocation7 + $0xb90] sm:$0xff]  ;;  %v930_v21 = vld [vmem:[#allocation7 + $0xd18] sm:$0xff] }
 0x299   : > { %v9737_v36 = vcombine.low %v881_v32, %v885_v33  ;;  %v934_v26 = vld [vmem:[#allocation7 + $0xd38] sm:$0xff] }
 0x29b   : > { %4206 = vmatpush1.bf16.msra.mxu0 %v9673_v58  ;;  %4418 = vmatpush1.bf16.msra.mxu1 %v9675_v40  ;;  %v9731_v58 = vcombine.low %v874_v53, %v878_v54  ;;  %v9738_v40 = vcombine.high %v881_v32, %v885_v33  ;;  %v942_v32 = vld [vmem:[#allocation7 + $0xd78] sm:$0xff] }
 0x29c   : > { %4207 = vmatprep.subr.bf16.mxu0 %v9682_v41  ;;  %4419 = vmatprep.subr.bf16.mxu1 %v9684_v44  ;;  %v9740_v41 = vcombine.high %v882_v37, %v886_v38  ;;  %v889_v44 = vld [vmem:[#allocation7 + $0xbd0] sm:$0xff] }
 0x29d   : > { %v9745_v23 = vcombine.low %v889_v44, %v893_v15 }
 0x29f   : > { %4208 = vmatpush1.bf16.msra.mxu0 %v9681_v47  ;;  %4420 = vmatpush1.bf16.msra.mxu1 %v9683_v48  ;;  %v9739_v47 = vcombine.low %v882_v37, %v886_v38  ;;  %v9746_v48 = vcombine.high %v889_v44, %v893_v15  ;;  %v9787_v37 = vcombine.low %v930_v21, %v934_v26 }
 0x2a0   : > { %4209 = vmatprep.subr.bf16.mxu0 %v9690_v49  ;;  %4421 = vmatprep.subr.bf16.mxu1 %v9692_v51  ;;  %v9748_v49 = vcombine.high %v890_v46, %v894_v35  ;;  %v897_v51 = vld [vmem:[#allocation7 + $0xc10] sm:$0xff] }
 0x2a1   : > { %v9753_v4 = vcombine.low %v897_v51, %v901_v25 }
 0x2a3   : > { %4210 = vmatpush1.bf16.msra.mxu0 %v9689_v24  ;;  %4422 = vmatpush1.bf16.msra.mxu1 %v9691_v60  ;;  %v9747_v24 = vcombine.low %v890_v46, %v894_v35  ;;  %v9754_v60 = vcombine.high %v897_v51, %v901_v25  ;;  %v954_v51 = vld [vmem:[#allocation7 + $0xdd8] sm:$0xff] }
 0x2a4   : > { %4211 = vmatprep.subr.bf16.mxu0 %v9698_v61  ;;  %4423 = vmatprep.subr.bf16.mxu1 %v9700_v62  ;;  %v9756_v61 = vcombine.high %v898_v52, %v902_v55  ;;  %v905_v62 = vld [vmem:[#allocation7 + $0xc50] sm:$0xff]  ;;  %v958_v25 = vld [vmem:[#allocation7 + $0xdf8] sm:$0xff] }
 0x2a5   : > { %v9761_v43 = vcombine.low %v905_v62, %v909_v63 }
 0x2a7   : > { %4212 = vmatpush1.bf16.msra.mxu0 %v9697_v5  ;;  %4424 = vmatpush1.bf16.msra.mxu1 %v9699_v6  ;;  %v9755_v5 = vcombine.low %v898_v52, %v902_v55  ;;  %v9762_v6 = vcombine.high %v905_v62, %v909_v63 }
 0x2a8   : > { %4213 = vmatprep.subr.bf16.mxu0 %v9706_v31  ;;  %4425 = vmatprep.subr.bf16.mxu1 %v9708_v7  ;;  %v9764_v31 = vcombine.high %v906_v34, %v910_v0  ;;  %v913_v7 = vld [vmem:[#allocation7 + $0xc90] sm:$0xff] }
 0x2a9   : > { %v9769_v17 = vcombine.low %v913_v7, %v917_v8 }
 0x2ab   : > { %4214 = vmatpush1.bf16.msra.mxu0 %v9705_v11  ;;  %4426 = vmatpush1.bf16.msra.mxu1 %v9707_v13  ;;  %v9763_v11 = vcombine.low %v906_v34, %v910_v0  ;;  %v9770_v13 = vcombine.high %v913_v7, %v917_v8  ;;  %v9812_v34 = vcombine.high %v954_v51, %v958_v25  ;;  %v961_v0 = vld [vmem:[#allocation7 + $0xe10] sm:$0xff] }
 0x2ac   : > { %4215 = vmatprep.subr.bf16.mxu0 %v9714_v45  ;;  %4427 = vmatprep.subr.bf16.mxu1 %v9716_v57  ;;  %v9772_v45 = vcombine.high %v914_v9, %v918_v10  ;;  %v921_v57 = vld [vmem:[#allocation7 + $0xcd0] sm:$0xff]  ;;  %v9811_v7 = vcombine.low %v954_v51, %v958_v25 }
 0x2ad   : > { %v9777_v53 = vcombine.low %v921_v57, %v925_v59  ;;  %v1001_v25 = vld [vmem:[#allocation7 + $0xf50] sm:$0xff] }
 0x2af   : > { %4216 = vmatpush1.bf16.msra.mxu0 %v9713_v18  ;;  %4428 = vmatpush1.bf16.msra.mxu1 %v9715_v19  ;;  %v9778_v18 = vcombine.high %v921_v57, %v925_v59  ;;  %v9780_v19 = vcombine.high %v922_v14, %v926_v16  ;;  %v970_v57 = vld [vmem:[#allocation7 + $0xe58] sm:$0xff] }
 0x2b0   : > { %4217 = vmatprep.subr.bf16.mxu0 %v9722_v56  ;;  %4429 = vmatprep.subr.bf16.mxu1 %v9724_v20  ;;  %v929_v56 = vld [vmem:[#allocation7 + $0xd10] sm:$0xff]  ;;  %v974_v59 = vld [vmem:[#allocation7 + $0xe78] sm:$0xff] }
 0x2b1   : > { %v933_v20 = vld [vmem:[#allocation7 + $0xd30] sm:$0xff] }
 0x2b2   : > { %v9786_v54 = vcombine.high %v929_v56, %v933_v20  ;;  %v9785_v33 = vcombine.low %v929_v56, %v933_v20 }
 0x2b3   : > { %4218 = vmatpush1.bf16.msra.mxu0 %v9721_v27  ;;  %4430 = vmatpush1.bf16.msra.mxu1 %v9723_v2  ;;  %v9788_v27 = vcombine.high %v930_v21, %v934_v26  ;;  %v937_v2 = vld [vmem:[#allocation7 + $0xd50] sm:$0xff]  ;;  %v9828_v21 = vcombine.high %v970_v57, %v974_v59 }
 0x2b4   : > { %4219 = vmatprep.subr.bf16.mxu0 %v9730_v28  ;;  %4431 = vmatprep.subr.bf16.mxu1 %v9732_v29  ;;  %v941_v28 = vld [vmem:[#allocation7 + $0xd70] sm:$0xff]  ;;  %v938_v29 = vld [vmem:[#allocation7 + $0xd58] sm:$0xff] }
 0x2b5   : > { %v9796_v38 = vcombine.high %v938_v29, %v942_v32  ;;  %v9793_v44 = vcombine.low %v937_v2, %v941_v28  ;;  %v9795_v15 = vcombine.low %v938_v29, %v942_v32  ;;  %v977_v26 = vld [vmem:[#allocation7 + $0xe90] sm:$0xff] }
 0x2b6   : > { %v985_v32 = vld [vmem:[#allocation7 + $0xed0] sm:$0xff] }
 0x2b7   : > { %4220 = vmatpush1.bf16.msra.mxu0 %v9729_v39  ;;  %4432 = vmatpush1.bf16.msra.mxu1 %v9731_v58  ;;  %v945_v39 = vld [vmem:[#allocation7 + $0xd90] sm:$0xff] }
 0x2b8   : > { %4221 = vmatprep.subr.bf16.mxu0 %v9738_v40  ;;  %4433 = vmatprep.subr.bf16.mxu1 %v9740_v41  ;;  %v949_v58 = vld [vmem:[#allocation7 + $0xdb0] sm:$0xff]  ;;  %v946_v40 = vld [vmem:[#allocation7 + $0xd98] sm:$0xff] }
 0x2b9   : > { %v950_v41 = vld [vmem:[#allocation7 + $0xdb8] sm:$0xff]  ;;  %v9802_v46 = vcombine.high %v945_v39, %v949_v58 }
 0x2bb   : > { %4222 = vmatpush1.bf16.msra.mxu0 %v9737_v36  ;;  %4434 = vmatpush1.bf16.msra.mxu1 %v9739_v47  ;;  %v953_v36 = vld [vmem:[#allocation7 + $0xdd0] sm:$0xff] }
 0x2bc   : > { %4223 = vmatprep.subr.bf16.mxu0 %v9746_v48  ;;  %4435 = vmatprep.subr.bf16.mxu1 %v9748_v49  ;;  %v957_v47 = vld [vmem:[#allocation7 + $0xdf0] sm:$0xff] }
 0x2bd   : > { %v9810_v62 = vcombine.high %v953_v36, %v957_v47 }
 0x2bf   : > { %4224 = vmatpush1.bf16.msra.mxu0 %v9745_v23  ;;  %4436 = vmatpush1.bf16.msra.mxu1 %v9747_v24  ;;  %v9801_v23 = vcombine.low %v945_v39, %v949_v58 }
 0x2c0   : > { %4246 = vmatprep.subr.bf16.mxu0 %v9754_v60  ;;  %4458 = vmatprep.subr.bf16.mxu1 %v9756_v61  ;;  %v9803_v61 = vcombine.low %v946_v40, %v950_v41 }
 0x2c2   : > { %4226 = vmatmul.mubr.bf16.vlgmr.msra.gmra.mrb[8].mxu0 %v11508_v1  ;;  %4438 = vmatmul.mubr.bf16.vlgmr.msra.gmra.mrb[8].mxu1 %v11508_v1  ;;  %v9771_v1 = vcombine.low %v914_v9, %v918_v10 }
 0x2c3   : > { %4247 = vmatpush1.bf16.msra.mxu0 %v9753_v4  ;;  %4459 = vmatpush1.bf16.msra.mxu1 %v9755_v5  ;;  %v965_v4 = vld [vmem:[#allocation7 + $0xe30] sm:$0xff]  ;;  %v962_v5 = vld [vmem:[#allocation7 + $0xe18] sm:$0xff] }
 0x2c4   : > { %4248 = vmatprep.subr.bf16.mxu0 %v9762_v6  ;;  %4460 = vmatprep.subr.bf16.mxu1 %v9764_v31  ;;  %v966_v6 = vld [vmem:[#allocation7 + $0xe38] sm:$0xff]  ;;  %v9809_v31 = vcombine.low %v953_v36, %v957_v47  ;;  %v9818_v8 = vcombine.high %v961_v0, %v965_v4 }
 0x2c5   : > { %4235 = vmatprep.mubr.bf16.mxu0 %v11512_v12  ;;  %4447 = vmatprep.mubr.bf16.mxu1 %v11512_v12  ;;  %v9779_v12 = vcombine.low %v922_v14, %v926_v16  ;;  %v9820_v10 = vcombine.high %v962_v5, %v966_v6 }
 0x2c7   : > { %4249 = vmatpush1.bf16.msra.mxu0 %v9761_v43  ;;  %4461 = vmatpush1.bf16.msra.mxu1 %v9763_v11  ;;  %v969_v43 = vld [vmem:[#allocation7 + $0xe50] sm:$0xff] }
 0x2c8   : > { %4250 = vmatprep.subr.bf16.mxu0 %v9770_v13  ;;  %4462 = vmatprep.subr.bf16.mxu1 %v9772_v45  ;;  %v973_v11 = vld [vmem:[#allocation7 + $0xe70] sm:$0xff] }
 0x2c9   : > { %v9826_v56 = vcombine.high %v969_v43, %v973_v11 }
 0x2ca   : > { %4236 = vmatmul.mubr.bf16.gmra.mrb[12].mxu0 %v11518_v22  ;;  %4448 = vmatmul.mubr.bf16.gmra.mrb[12].mxu1 %v11518_v22  ;;  %v9794_v22 = vcombine.high %v937_v2, %v941_v28  ;;  %v9827_v2 = vcombine.low %v970_v57, %v974_v59  ;;  %v1017_v59 = vld [vmem:[#allocation7 + $0xfd0] sm:$0xff] }
 0x2cb   : > { %4251 = vmatpush1.bf16.msra.mxu0 %v9769_v17  ;;  %4463 = vmatpush1.bf16.msra.mxu1 %v9771_v1  ;;  %v9817_v17 = vcombine.low %v961_v0, %v965_v4 }
 0x2cc   : > { %4252 = vmatprep.subr.bf16.mxu0 %v9778_v18  ;;  %4464 = vmatprep.subr.bf16.mxu1 %v9780_v19  ;;  %v9819_v19 = vcombine.low %v962_v5, %v966_v6  ;;  %v1009_v6 = vld [vmem:[#allocation7 + $0xf90] sm:$0xff] }
 0x2cd   : > { %4278 = vmatprep.mubr.bf16.mxu0 %v11528_v30  ;;  %4490 = vmatprep.mubr.bf16.mxu1 %v11528_v30  ;;  %v9804_v30 = vcombine.high %v946_v40, %v950_v41  ;;  %v993_v41 = vld [vmem:[#allocation7 + $0xf10] sm:$0xff] }
 0x2cf   : > { %4253 = vmatpush1.bf16.msra.mxu0 %v9777_v53  ;;  %4465 = vmatpush1.bf16.msra.mxu1 %v9779_v12  ;;  %v981_v53 = vld [vmem:[#allocation7 + $0xeb0] sm:$0xff]  ;;  %v978_v12 = vld [vmem:[#allocation7 + $0xe98] sm:$0xff] }
 0x2d0   : > { %4254 = vmatprep.subr.bf16.mxu0 %v9786_v54  ;;  %4466 = vmatprep.subr.bf16.mxu1 %v9788_v27  ;;  %v982_v54 = vld [vmem:[#allocation7 + $0xeb8] sm:$0xff]  ;;  %v9825_v27 = vcombine.low %v969_v43, %v973_v11  ;;  %v9834_v28 = vcombine.high %v977_v26, %v981_v53 }
 0x2d1   : > { %v9836_v29 = vcombine.high %v978_v12, %v982_v54  ;;  %v9835_v39 = vcombine.low %v978_v12, %v982_v54  ;;  %v4513_v54 = vld [vmem:[#allocation8] sm:$0xff] }
 0x2d3   : > { %4255 = vmatpush1.bf16.msra.mxu0 %v9785_v33  ;;  %4467 = vmatpush1.bf16.msra.mxu1 %v9787_v37  ;;  %v989_v33 = vld [vmem:[#allocation7 + $0xef0] sm:$0xff]  ;;  %v986_v37 = vld [vmem:[#allocation7 + $0xed8] sm:$0xff] }
 0x2d4   : > { %4256 = vmatprep.subr.bf16.mxu0 %v9794_v22  ;;  %4468 = vmatprep.subr.bf16.mxu1 %v9796_v38  ;;  %v990_v22 = vld [vmem:[#allocation7 + $0xef8] sm:$0xff]  ;;  %v9833_v38 = vcombine.low %v977_v26, %v981_v53  ;;  %v9842_v58 = vcombine.high %v985_v32, %v989_v33 }
 0x2d5   : > { %v11583_v35 = vpop.f32.mrb[0].mxu0  ;;  %v11585_v48 = vpop.f32.mrb[0].mxu1  ;;  %v9844_v40 = vcombine.high %v986_v37, %v990_v22  ;;  %v9843_v36 = vcombine.low %v986_v37, %v990_v22 }
 0x2d6   : > { %v11587_v49 = vpop.f32.mrb[1].mxu0  ;;  %v11589_v52 = vpop.f32.mrb[1].mxu1 }
 0x2d7   : > { %v11591_v55 = vpop.f32.mrb[2].mxu0  ;;  %4257 = vmatpush1.bf16.msra.mxu0 %v9793_v44  ;;  %v11593_v24 = vpop.f32.mrb[2].mxu1  ;;  %4469 = vmatpush1.bf16.msra.mxu1 %v9795_v15  ;;  %v997_v44 = vld [vmem:[#allocation7 + $0xf30] sm:$0xff]  ;;  %v994_v15 = vld [vmem:[#allocation7 + $0xf18] sm:$0xff] }
 0x2d8   : > { %v11595_v60 = vpop.f32.mrb[3].mxu0  ;;  %4258 = vmatprep.subr.bf16.mxu0 %v9802_v46  ;;  %v11597_v63 = vpop.f32.mrb[3].mxu1  ;;  %4470 = vmatprep.subr.bf16.mxu1 %v9804_v30  ;;  %v998_v46 = vld [vmem:[#allocation7 + $0xf38] sm:$0xff]  ;;  %v9841_v30 = vcombine.low %v985_v32, %v989_v33  ;;  %v9850_v47 = vcombine.high %v993_v41, %v997_v44 }
 0x2d9   : > { %v9852_v51 = vcombine.high %v994_v15, %v998_v46  ;;  %v9851_v0 = vcombine.low %v994_v15, %v998_v46 }
 0x2db   : > { %4259 = vmatpush1.bf16.msra.mxu0 %v9801_v23  ;;  %4471 = vmatpush1.bf16.msra.mxu1 %v9803_v61  ;;  %v1005_v23 = vld [vmem:[#allocation7 + $0xf70] sm:$0xff]  ;;  %v1002_v61 = vld [vmem:[#allocation7 + $0xf58] sm:$0xff] }
 0x2dc   : > { %4260 = vmatprep.subr.bf16.mxu0 %v9810_v62  ;;  %4472 = vmatprep.subr.bf16.mxu1 %v9812_v34  ;;  %v1006_v62 = vld [vmem:[#allocation7 + $0xf78] sm:$0xff]  ;;  %v9849_v34 = vcombine.low %v993_v41, %v997_v44  ;;  %v9858_v4 = vcombine.high %v1001_v25, %v1005_v23 }
 0x2dd   : > { %v11599_v9 = vpop.f32.mrb[4].mxu0  ;;  %v11601_v13 = vpop.f32.mrb[4].mxu1  ;;  %v9860_v5 = vcombine.high %v1002_v61, %v1006_v62  ;;  %v9859_v43 = vcombine.low %v1002_v61, %v1006_v62  ;;  %v4520_v41 = vld [vmem:[#allocation8 + $0x38] sm:$0x33]  ;;  %v4824_v61 = vld [vmem:[#allocation11 + $0x28] sm:$0xff] }
 0x2de   : > { %v11603_v45 = vpop.f32.mrb[5].mxu0  ;;  %v11605_v14 = vpop.f32.mrb[5].mxu1 }
 0x2df   : > { %v11607_v16 = vpop.f32.mrb[6].mxu0  ;;  %4261 = vmatpush1.bf16.msra.mxu0 %v9809_v31  ;;  %v11609_v1 = vpop.f32.mrb[6].mxu1  ;;  %4473 = vmatpush1.bf16.msra.mxu1 %v9811_v7  ;;  %v1013_v31 = vld [vmem:[#allocation7 + $0xfb0] sm:$0xff]  ;;  %v1010_v7 = vld [vmem:[#allocation7 + $0xf98] sm:$0xff] }
 0x2e0   : > { %v11611_v18 = vpop.f32.mrb[7].mxu0  ;;  %4262 = vmatprep.subr.bf16.mxu0 %v9818_v8  ;;  %v11613_v20 = vpop.f32.mrb[7].mxu1  ;;  %4474 = vmatprep.subr.bf16.mxu1 %v9820_v10  ;;  %v1014_v8 = vld [vmem:[#allocation7 + $0xfb8] sm:$0xff]  ;;  %v9857_v10 = vcombine.low %v1001_v25, %v1005_v23  ;;  %v9866_v11 = vcombine.high %v1009_v6, %v1013_v31  ;;  %v4819_v25 = vld [vmem:[#allocation11] sm:$0xff] }
 0x2e1   : > { %v9868_v57 = vcombine.high %v1010_v7, %v1014_v8  ;;  %v9867_v26 = vcombine.low %v1010_v7, %v1014_v8  ;;  %v4823_v23 = vld [vmem:[#allocation11 + $0x20] sm:$0xff] }
 0x2e2   : > { %v9895_v7 = vcombine.low %v4819_v25, %v4823_v23 }
 0x2e3   : > { %4263 = vmatpush1.bf16.msra.mxu0 %v9817_v17  ;;  %4475 = vmatpush1.bf16.msra.mxu1 %v9819_v19  ;;  %v1021_v17 = vld [vmem:[#allocation7 + $0xff0] sm:$0xff]  ;;  %v1018_v19 = vld [vmem:[#allocation7 + $0xfd8] sm:$0xff] }
 0x2e4   : > { %4264 = vmatprep.subr.bf16.mxu0 %v9826_v56  ;;  %4476 = vmatprep.subr.bf16.mxu1 %v9828_v21  ;;  %v1022_v56 = vld [vmem:[#allocation7 + $0xff8] sm:$0xff]  ;;  %v9865_v21 = vcombine.low %v1009_v6, %v1013_v31  ;;  %v9874_v53 = vcombine.high %v1017_v59, %v1021_v17  ;;  %v4828_v6 = vld [vmem:[#allocation11 + $0x48] sm:$0xff] }
 0x2e5   : > { %v9876_v12 = vcombine.high %v1018_v19, %v1022_v56  ;;  %v9875_v32 = vcombine.low %v1018_v19, %v1022_v56  ;;  %v4832_v31 = vld [vmem:[#allocation11 + $0x68] sm:$0xff] }
 0x2e6   : > { %v9905_v56 = vcombine.low %v4828_v6, %v4832_v31 }
 0x2e7   : > { %4265 = vmatpush1.bf16.msra.mxu0 %v9825_v27  ;;  %4477 = vmatpush1.bf16.msra.mxu1 %v9827_v2  ;;  %v4517_v27 = vld [vmem:[#allocation8 + $0x20] sm:$0x33]  ;;  %v4514_v2 = vld [vmem:[#allocation8 + $0x8] sm:$0xff] }
 0x2e8   : > { %4266 = vmatprep.subr.bf16.mxu0 %v9834_v28  ;;  %4478 = vmatprep.subr.bf16.mxu1 %v9836_v29  ;;  %v4518_v28 = vld [vmem:[#allocation8 + $0x28] sm:$0x33]  ;;  %v9873_v29 = vcombine.low %v1017_v59, %v1021_v17  ;;  %v9879_v33 = vcombine.high %v4513_v54, %v4517_v27  ;;  %v9878_v37 = vcombine.low %v4513_v54, %v4517_v27  ;;  %v4836_v59 = vld [vmem:[#allocation11 + $0x88] sm:$0xff] }
 0x2e9   : > { %v9881_v22 = vcombine.high %v4514_v2, %v4518_v28  ;;  %v4840_v17 = vld [vmem:[#allocation11 + $0xa8] sm:$0xff] }
 0x2ea   : > { %v4564_v44 = vsel %vm4562_vm0, %v9878_v37, 0  ;;  %v4844_v54 = vld [vmem:[#allocation11 + $0xc8] sm:$0xff]  ;;  %v4855_v37 = vld [vmem:[#allocation11 + $0x120] sm:$0xff] }
 0x2eb   : > { %4267 = vmatpush1.bf16.msra.mxu0 %v9833_v38  ;;  %4479 = vmatpush1.bf16.msra.mxu1 %v9835_v39  ;;  %v9880_v38 = vcombine.low %v4514_v2, %v4518_v28  ;;  %v4515_v39 = vld [vmem:[#allocation8 + $0x10] sm:$0xff]  ;;  %v9913_v28 = vcombine.low %v4836_v59, %v4840_v17 }
 0x2ec   : > { %4268 = vmatprep.subr.bf16.mxu0 %v9842_v58  ;;  %4480 = vmatprep.subr.bf16.mxu1 %v9844_v40  ;;  %v4519_v58 = vld [vmem:[#allocation8 + $0x30] sm:$0x33]  ;;  %v4516_v40 = vld [vmem:[#allocation8 + $0x18] sm:$0xff] }
 0x2ed   : > { %v9883_v15 = vcombine.high %v4515_v39, %v4519_v58  ;;  %v4570_v46 = vsel %vm4562_vm0, %v9880_v38, 0  ;;  %v4848_v27 = vld [vmem:[#allocation11 + $0xe8] sm:$0xff] }
 0x2ee   : > { %v4856_v38 = vld [vmem:[#allocation11 + $0x128] sm:$0xff] }
 0x2ef   : > { %4269 = vmatpush1.bf16.msra.mxu0 %v9841_v30  ;;  %4481 = vmatpush1.bf16.msra.mxu1 %v9843_v36  ;;  %v9885_v30 = vcombine.high %v4516_v40, %v4520_v41  ;;  %v11058_v36 = vmov 0  }
 0x2f0   : > { %4270 = vmatprep.subr.bf16.mxu0 %v9850_v47  ;;  %4482 = vmatprep.subr.bf16.mxu1 %v9852_v51  ;;  %v9884_v47 = vcombine.low %v4516_v40, %v4520_v41  ;;  %v10745_v51 = vld [vmem:[%s11573_s14] sm:$0xff]  }
 0x2f3   : > { %4271 = vmatpush1.bf16.msra.mxu0 %v9849_v34  ;;  %4483 = vmatpush1.bf16.msra.mxu1 %v9851_v0  ;;  %v4582_v34 = vsel %vm4562_vm0, %v9884_v47, 0  ;;  %v9896_v0 = vcombine.high %v4819_v25, %v4823_v23  ;;  %v4829_v23 = vld [vmem:[#allocation11 + $0x50] sm:$0xff] }
 0x2f4   : > { %4272 = vmatprep.subr.bf16.mxu0 %v9858_v4  ;;  %4484 = vmatprep.subr.bf16.mxu1 %v9860_v5  ;;  %v4827_v4 = vld [vmem:[#allocation11 + $0x40] sm:$0xff] }
 0x2f5   : > { %v4831_v5 = vld [vmem:[#allocation11 + $0x60] sm:$0xff] }
 0x2f6   : > { %v9903_v19 = vcombine.low %v4827_v4, %v4831_v5 }
 0x2f7   : > { %4273 = vmatpush1.bf16.msra.mxu0 %v9857_v10  ;;  %4485 = vmatpush1.bf16.msra.mxu1 %v9859_v43  ;;  %v9904_v10 = vcombine.high %v4827_v4, %v4831_v5  ;;  %v9906_v43 = vcombine.high %v4828_v6, %v4832_v31  ;;  %v4837_v6 = vld [vmem:[#allocation11 + $0x90] sm:$0xff] }
 0x2f8   : > { %4274 = vmatprep.subr.bf16.mxu0 %v9866_v11  ;;  %4486 = vmatprep.subr.bf16.mxu1 %v9868_v57  ;;  %v4835_v11 = vld [vmem:[#allocation11 + $0x80] sm:$0xff]  ;;  %v4841_v31 = vld [vmem:[#allocation11 + $0xb0] sm:$0xff] }
 0x2f9   : > { %v4839_v57 = vld [vmem:[#allocation11 + $0xa0] sm:$0xff] }
 0x2fa   : > { %v9911_v2 = vcombine.low %v4835_v11, %v4839_v57 }
 0x2fb   : > { %4275 = vmatpush1.bf16.msra.mxu0 %v9865_v21  ;;  %4487 = vmatpush1.bf16.msra.mxu1 %v9867_v26  ;;  %v9912_v21 = vcombine.high %v4835_v11, %v4839_v57  ;;  %v9914_v26 = vcombine.high %v4836_v59, %v4840_v17  ;;  %v9916_v11 = vcombine.high %v4837_v6, %v4841_v31  ;;  %v4845_v59 = vld [vmem:[#allocation11 + $0xd0] sm:$0xff] }
 0x2fc   : > { %4276 = vmatprep.subr.bf16.mxu0 %v9874_v53  ;;  %4488 = vmatprep.subr.bf16.mxu1 %v9876_v12  ;;  %v4843_v53 = vld [vmem:[#allocation11 + $0xc0] sm:$0xff]  ;;  %v4849_v17 = vld [vmem:[#allocation11 + $0xf0] sm:$0xff] }
 0x2fd   : > { %v4847_v12 = vld [vmem:[#allocation11 + $0xe0] sm:$0xff] }
 0x2ff   : > { %4277 = vmatpush1.bf16.msra.mxu0 %v9873_v29  ;;  %4489 = vmatpush1.bf16.msra.mxu1 %v9875_v32  ;;  %v9920_v29 = vcombine.high %v4843_v53, %v4847_v12  ;;  %v9922_v32 = vcombine.high %v4844_v54, %v4848_v27 }
 0x300   : > { %9886 = vmatprep.subr.msk.bf16.mxu0 %vm4562_vm0, %v9879_v33  ;;  %9888 = vmatprep.subr.msk.bf16.mxu1 %vm4562_vm0, %v9881_v22  ;;  %v4851_v33 = vld [vmem:[#allocation11 + $0x100] sm:$0xff]  ;;  %v4852_v22 = vld [vmem:[#allocation11 + $0x108] sm:$0xff] }
 0x301   : > { %v9928_v40 = vcombine.high %v4851_v33, %v4855_v37  ;;  %v9930_v41 = vcombine.high %v4852_v22, %v4856_v38  ;;  %v9929_v47 = vcombine.low %v4852_v22, %v4856_v38  ;;  %v5316_v22 = vld [vmem:[#allocation13 + $0x20] sm:$0xff]  ;;  %v5313_v38 = vld [vmem:[#allocation13 + $0x8] sm:$0xff] }
 0x302   : > { %4279 = vmatmul.mubr.bf16.vlgmr.msra.gmra.mrb[8].mxu0 %v11536_v42  ;;  %4491 = vmatmul.mubr.bf16.vlgmr.msra.gmra.mrb[8].mxu1 %v11536_v42  ;;  %v9882_v42 = vcombine.low %v4515_v39, %v4519_v58  ;;  %v9919_v39 = vcombine.low %v4843_v53, %v4847_v12  ;;  %v9921_v58 = vcombine.low %v4844_v54, %v4848_v27  ;;  %v4853_v54 = vld [vmem:[#allocation11 + $0x110] sm:$0xff] }
 0x303   : > { %4588 = vmatpush1.bf16.msra.mxu0 %v4564_v44  ;;  %4288 = vmatprep.mubr.bf16.mxu0 %v11540_v50  ;;  %v4821_v44 = vld [vmem:[#allocation11 + $0x10] sm:$0xff]  ;;  %v9924_v53 = vcombine.high %v4845_v59, %v4849_v17 }
 0x304   : > { %4500 = vmatprep.mubr.bf16.mxu1 %v11540_v50  ;;  %4631 = vmatpush1.bf16.msra.mxu1 %v4570_v46  ;;  %v4820_v50 = vld [vmem:[#allocation11 + $0x8] sm:$0xff]  ;;  %v4576_v62 = vsel %vm4562_vm0, %v9882_v42, 0  ;;  %v4822_v46 = vld [vmem:[#allocation11 + $0x18] sm:$0xff]  ;;  %v9927_v42 = vcombine.low %v4851_v33, %v4855_v37  ;;  %v4857_v27 = vld [vmem:[#allocation11 + $0x130] sm:$0xff] }
 0x305   : > { %9890 = vmatprep.subr.msk.bf16.mxu0 %vm4562_vm0, %v9883_v15  ;;  %9892 = vmatprep.subr.msk.bf16.mxu1 %vm4562_vm0, %v9885_v30  ;;  %v9897_v8 = vcombine.low %v4820_v50, %v4824_v61  ;;  %v4825_v15 = vld [vmem:[#allocation11 + $0x30] sm:$0xff]  ;;  %v4826_v30 = vld [vmem:[#allocation11 + $0x38] sm:$0xff]  ;;  %v9932_v33 = vcombine.high %v4853_v54, %v4857_v27  ;;  %v5312_v37 = vld [vmem:[#allocation13] sm:$0xff] }
 0x306   : > { %v9902_v25 = vcombine.high %v4822_v46, %v4826_v30 }
 0x30a   : > { %4289 = vmatmul.mubr.bf16.gmra.mrb[12].mxu0 %v11546_v3  ;;  %4501 = vmatmul.mubr.bf16.gmra.mrb[12].mxu1 %v11546_v3  ;;  %v9898_v3 = vcombine.high %v4820_v50, %v4824_v61  ;;  %v4833_v50 = vld [vmem:[#allocation11 + $0x70] sm:$0xff] }
 0x30b   : > { %4619 = vmatprep.mubr.bf16.mxu0 %v11058_v36  ;;  %4662 = vmatprep.mubr.bf16.mxu1 %v11058_v36  ;;  %v11641_v61 = vld [vmem:[%s11420_s3] sm:$0xff]   ;;  %v9908_v4 = vcombine.high %v4829_v23, %v4833_v50 }
 0x312   : > { %9887 = vmatmul.mubr.msk.bf16.vlgmr.msra.gmra.mrb[16].mxu0 %vm4558_vm1, %v10745_v51  ;;  %9889 = vmatmul.mubr.msk.bf16.vlgmr.msra.gmra.mrb[16].mxu1 %vm4558_vm1, %v10745_v51 }
 0x313   : > { %4674 = vmatpush1.bf16.msra.mxu0 %v4576_v62  ;;  %4717 = vmatpush1.bf16.msra.mxu1 %v4582_v34  ;;  %v4830_v62 = vld [vmem:[#allocation11 + $0x58] sm:$0xff] }
 0x314   : > { %4705 = vmatprep.mubr.bf16.mxu0 %v11058_v36  ;;  %4748 = vmatprep.mubr.bf16.mxu1 %v11058_v36  ;;  %v4834_v34 = vld [vmem:[#allocation11 + $0x78] sm:$0xff] }
 0x315   : > { %5068 = vmatprep.subr.bf16.mxu0 %v9896_v0  ;;  %5111 = vmatprep.subr.bf16.mxu1 %v9898_v3  ;;  %v9899_v0 = vcombine.low %v4821_v44, %v4825_v15  ;;  %v9901_v3 = vcombine.low %v4822_v46, %v4826_v30  ;;  %v9910_v5 = vcombine.high %v4830_v62, %v4834_v34  ;;  %v5324_v46 = vld [vmem:[#allocation13 + $0x60] sm:$0xff]  ;;  %v5321_v30 = vld [vmem:[#allocation13 + $0x48] sm:$0xff] }
 0x31a   : > { %9891 = vmatmul.mubr.msk.bf16.vlgmr.msra.gmra.mrb[20].mxu0 %vm4558_vm1, %v10745_v51  ;;  %9893 = vmatmul.mubr.msk.bf16.vlgmr.msra.gmra.mrb[20].mxu1 %vm4558_vm1, %v10745_v51  ;;  %v9900_v51 = vcombine.high %v4821_v44, %v4825_v15  ;;  %v5320_v15 = vld [vmem:[#allocation13 + $0x40] sm:$0xff] }
 0x31b   : > { %5069 = vmatpush1.bf16.msra.mxu0 %v9895_v7  ;;  %5112 = vmatpush1.bf16.msra.mxu1 %v9897_v8  ;;  %v4838_v7 = vld [vmem:[#allocation11 + $0x98] sm:$0xff] }
 0x31c   : > { %5070 = vmatprep.subr.bf16.mxu0 %v9904_v10  ;;  %5113 = vmatprep.subr.bf16.mxu1 %v9906_v43  ;;  %v4842_v8 = vld [vmem:[#allocation11 + $0xb8] sm:$0xff]  ;;  %v9907_v10 = vcombine.low %v4829_v23, %v4833_v50  ;;  %v9909_v43 = vcombine.low %v4830_v62, %v4834_v34  ;;  %v5328_v50 = vld [vmem:[#allocation13 + $0x80] sm:$0xff]  ;;  %v5329_v34 = vld [vmem:[#allocation13 + $0x88] sm:$0xff] }
 0x31d   : > { %5100 = vmatprep.mubr.bf16.mxu0 %v11058_v36  ;;  %5143 = vmatprep.mubr.bf16.mxu1 %v11058_v36  ;;  %v9918_v57 = vcombine.high %v4838_v7, %v4842_v8  ;;  %v5332_v62 = vld [vmem:[#allocation13 + $0xa0] sm:$0xff] }
 0x31f   : > { %5071 = vmatpush1.bf16.msra.mxu0 %v9903_v19  ;;  %5114 = vmatpush1.bf16.msra.mxu1 %v9905_v56  ;;  %v4846_v19 = vld [vmem:[#allocation11 + $0xd8] sm:$0xff] }
 0x320   : > { %5072 = vmatprep.subr.bf16.mxu0 %v9912_v21  ;;  %5115 = vmatprep.subr.bf16.mxu1 %v9914_v26  ;;  %v4850_v56 = vld [vmem:[#allocation11 + $0xf8] sm:$0xff]  ;;  %v9915_v21 = vcombine.low %v4837_v6, %v4841_v31  ;;  %v9917_v26 = vcombine.low %v4838_v7, %v4842_v8  ;;  %v5336_v31 = vld [vmem:[#allocation13 + $0xc0] sm:$0xff]  ;;  %v5337_v8 = vld [vmem:[#allocation13 + $0xc8] sm:$0xff] }
 0x321   : > { %v9926_v12 = vcombine.high %v4846_v19, %v4850_v56  ;;  %v5340_v7 = vld [vmem:[#allocation13 + $0xe0] sm:$0xff] }
 0x323   : > { %5073 = vmatpush1.bf16.msra.mxu0 %v9911_v2  ;;  %5116 = vmatpush1.bf16.msra.mxu1 %v9913_v28  ;;  %v4854_v2 = vld [vmem:[#allocation11 + $0x118] sm:$0xff] }
 0x324   : > { %5074 = vmatprep.subr.bf16.mxu0 %v9920_v29  ;;  %5117 = vmatprep.subr.bf16.mxu1 %v9922_v32  ;;  %v4858_v28 = vld [vmem:[#allocation11 + $0x138] sm:$0xff]  ;;  %v9923_v29 = vcombine.low %v4845_v59, %v4849_v17  ;;  %v9925_v32 = vcombine.low %v4846_v19, %v4850_v56  ;;  %v9963_v59 = vcombine.low %v5336_v31, %v5340_v7  ;;  %v5344_v19 = vld [vmem:[#allocation13 + $0x100] sm:$0xff] }
 0x325   : > { %v5348_v56 = vld [vmem:[#allocation13 + $0x120] sm:$0xff] }
 0x327   : > { %5075 = vmatpush1.bf16.msra.mxu0 %v9919_v39  ;;  %5118 = vmatpush1.bf16.msra.mxu1 %v9921_v58  ;;  %v5317_v39 = vld [vmem:[#allocation13 + $0x28] sm:$0xff]  ;;  %v9931_v58 = vcombine.low %v4853_v54, %v4857_v27 }
 0x328   : > { %5076 = vmatprep.subr.bf16.mxu0 %v9928_v40  ;;  %5119 = vmatprep.subr.bf16.mxu1 %v9930_v41  ;;  %v9933_v40 = vcombine.low %v4854_v2, %v4858_v28  ;;  %v9940_v41 = vcombine.high %v5312_v37, %v5316_v22  ;;  %v9942_v44 = vcombine.high %v5313_v38, %v5317_v39 }
 0x32b   : > { %5077 = vmatpush1.bf16.msra.mxu0 %v9927_v42  ;;  %5120 = vmatpush1.bf16.msra.mxu1 %v9929_v47  ;;  %v5325_v42 = vld [vmem:[#allocation13 + $0x68] sm:$0xff]  ;;  %v9939_v47 = vcombine.low %v5312_v37, %v5316_v22 }
 0x32c   : > { %5154 = vmatprep.subr.bf16.mxu0 %v9900_v51  ;;  %5197 = vmatprep.subr.bf16.mxu1 %v9902_v25  ;;  %v9941_v51 = vcombine.low %v5313_v38, %v5317_v39  ;;  %v9948_v25 = vcombine.high %v5320_v15, %v5324_v46  ;;  %v9950_v23 = vcombine.high %v5321_v30, %v5325_v42  ;;  %v5360_v38 = vld [vmem:[#allocation13 + $0x180] sm:$0xff] }
 0x32d   : > { %v5364_v39 = vld [vmem:[#allocation13 + $0x1a0] sm:$0xff] }
 0x32e   : > { %9935 = vmatmul.mubr.msk.bf16.vlgmr.msra.gmra.mrb[24].mxu0 %vm5064_vm2, %v11641_v61  ;;  %9936 = vmatmul.mubr.msk.bf16.vlgmr.msra.gmra.mrb[24].mxu1 %vm5064_vm2, %v11641_v61 }
 0x32f   : > { %5155 = vmatpush1.bf16.msra.mxu0 %v9899_v0  ;;  %5198 = vmatpush1.bf16.msra.mxu1 %v9901_v3  ;;  %v5333_v0 = vld [vmem:[#allocation13 + $0xa8] sm:$0xff]  ;;  %v9947_v3 = vcombine.low %v5320_v15, %v5324_v46  ;;  %v9987_v15 = vcombine.low %v5360_v38, %v5364_v39 }
 0x330   : > { %5156 = vmatprep.subr.bf16.mxu0 %v9908_v4  ;;  %5199 = vmatprep.subr.bf16.mxu1 %v9910_v5  ;;  %v9949_v4 = vcombine.low %v5321_v30, %v5325_v42  ;;  %v9956_v5 = vcombine.high %v5328_v50, %v5332_v62  ;;  %v9958_v6 = vcombine.high %v5329_v34, %v5333_v0  ;;  %v5368_v42 = vld [vmem:[#allocation13 + $0x1c0] sm:$0xff] }
 0x331   : > { %5186 = vmatprep.mubr.bf16.mxu0 %v11058_v36  ;;  %5229 = vmatprep.mubr.bf16.mxu1 %v11058_v36  ;;  %v9934_v36 = vcombine.high %v4854_v2, %v4858_v28  ;;  %v5352_v2 = vld [vmem:[#allocation13 + $0x140] sm:$0xff] }
 0x332   : > { %v5356_v28 = vld [vmem:[#allocation13 + $0x160] sm:$0xff] }
 0x333   : > { %5157 = vmatpush1.bf16.msra.mxu0 %v9907_v10  ;;  %5200 = vmatpush1.bf16.msra.mxu1 %v9909_v43  ;;  %v5341_v10 = vld [vmem:[#allocation13 + $0xe8] sm:$0xff]  ;;  %v9955_v43 = vcombine.low %v5328_v50, %v5332_v62 }
 0x334   : > { %5158 = vmatprep.subr.bf16.mxu0 %v9916_v11  ;;  %5201 = vmatprep.subr.bf16.mxu1 %v9918_v57  ;;  %v9957_v11 = vcombine.low %v5329_v34, %v5333_v0  ;;  %v9964_v57 = vcombine.high %v5336_v31, %v5340_v7  ;;  %v9965_v17 = vcombine.low %v5337_v8, %v5341_v10  ;;  %v5380_v31 = vld [vmem:[#allocation13 + $0x220] sm:$0xff]  ;;  %v5377_v7 = vld [vmem:[#allocation13 + $0x208] sm:$0xff] }
 0x337   : > { %5159 = vmatpush1.bf16.msra.mxu0 %v9915_v21  ;;  %5202 = vmatpush1.bf16.msra.mxu1 %v9917_v26  ;;  %v5345_v21 = vld [vmem:[#allocation13 + $0x108] sm:$0xff]  ;;  %v9972_v26 = vcombine.high %v5344_v19, %v5348_v56 }
 0x338   : > { %5160 = vmatprep.subr.bf16.mxu0 %v9924_v53  ;;  %5203 = vmatprep.subr.bf16.mxu1 %v9926_v12  ;;  %v5349_v53 = vld [vmem:[#allocation13 + $0x128] sm:$0xff]  ;;  %v9971_v12 = vcombine.low %v5344_v19, %v5348_v56 }
 0x339   : > { %v9973_v54 = vcombine.low %v5345_v21, %v5349_v53  ;;  %v9974_v27 = vcombine.high %v5345_v21, %v5349_v53  ;;  %v5389_v56 = vld [vmem:[#allocation13 + $0x268] sm:$0xff] }
 0x33b   : > { %5161 = vmatpush1.bf16.msra.mxu0 %v9923_v29  ;;  %5204 = vmatpush1.bf16.msra.mxu1 %v9925_v32  ;;  %v5353_v29 = vld [vmem:[#allocation13 + $0x148] sm:$0xff]  ;;  %v9980_v32 = vcombine.high %v5352_v2, %v5356_v28 }
 0x33c   : > { %5162 = vmatprep.subr.bf16.mxu0 %v9932_v33  ;;  %5205 = vmatprep.subr.bf16.mxu1 %v9934_v36  ;;  %v5357_v33 = vld [vmem:[#allocation13 + $0x168] sm:$0xff]  ;;  %v9979_v36 = vcombine.low %v5352_v2, %v5356_v28 }
 0x33d   : > { %v9982_v37 = vcombine.high %v5353_v29, %v5357_v33  ;;  %v9981_v22 = vcombine.low %v5353_v29, %v5357_v33  ;;  %v5392_v33 = vld [vmem:[#allocation13 + $0x280] sm:$0xff] }
 0x33f   : > { %5163 = vmatpush1.bf16.msra.mxu0 %v9931_v58  ;;  %5206 = vmatpush1.bf16.msra.mxu1 %v9933_v40  ;;  %v5361_v58 = vld [vmem:[#allocation13 + $0x188] sm:$0xff]  ;;  %v9988_v40 = vcombine.high %v5360_v38, %v5364_v39 }
 0x340   : > { %8384 = vmatprep.subr.bf16.mxu0 %v9940_v41  ;;  %8556 = vmatprep.subr.bf16.mxu1 %v9942_v44  ;;  %v5365_v41 = vld [vmem:[#allocation13 + $0x1a8] sm:$0xff]  ;;  %v4761_v44 = vlaneseq }
 0x341   : > { %v9989_v46 = vcombine.low %v5361_v58, %v5365_v41  ;;  %v9990_v30 = vcombine.high %v5361_v58, %v5365_v41  ;;  %v5397_v39 = vld [vmem:[#allocation13 + $0x2a8] sm:$0xff] }
 0x342   : > { %9937 = vmatmul.mubr.msk.bf16.vlgmr.msra.gmra.mrb[28].mxu0 %vm5064_vm2, %v11641_v61  ;;  %9938 = vmatmul.mubr.msk.bf16.vlgmr.msra.gmra.mrb[28].mxu1 %vm5064_vm2, %v11641_v61  ;;  %v9966_v61 = vcombine.high %v5337_v8, %v5341_v10  ;;  %v11653_v50 = vshrl.u32 %v4761_v44, 7  ;;  %v5381_v10 = vld [vmem:[#allocation13 + $0x228] sm:$0xff]  ;;  %v5400_v44 = vld [vmem:[#allocation13 + $0x2c0] sm:$0xff] }
 0x343   : > { %8385 = vmatpush1.bf16.msra.mxu0 %v9939_v47  ;;  %8557 = vmatpush1.bf16.msra.mxu1 %v9941_v51  ;;  %v5372_v47 = vld [vmem:[#allocation13 + $0x1e0] sm:$0xff]  ;;  %v5369_v51 = vld [vmem:[#allocation13 + $0x1c8] sm:$0xff] }
 0x344   : > { %8386 = vmatprep.subr.bf16.mxu0 %v9948_v25  ;;  %8558 = vmatprep.subr.bf16.mxu1 %v9950_v23  ;;  %v9996_v25 = vcombine.high %v5368_v42, %v5372_v47  ;;  %v5373_v23 = vld [vmem:[#allocation13 + $0x1e8] sm:$0xff]  ;;  %v9995_v62 = vcombine.low %v5368_v42, %v5372_v47  ;;  %v4779_v21 = vsub.s32 4, %v11653_v50  ;;  %v4791_v29 = vsub.s32 7, %v11653_v50 }
 0x345   : > { %v9998_v34 = vcombine.high %v5369_v51, %v5373_v23  ;;  %v9997_v0 = vcombine.low %v5369_v51, %v5373_v23  ;;  %v5405_v42 = vld [vmem:[#allocation13 + $0x2e8] sm:$0xff]  ;;  %v5408_v23 = vld [vmem:[#allocation13 + $0x300] sm:$0xff] }
 0x347   : > { %8387 = vmatpush1.bf16.msra.mxu0 %v9947_v3  ;;  %8559 = vmatpush1.bf16.msra.mxu1 %v9949_v4  ;;  %v4771_v3 = vsub.s32 2, %v11653_v50  ;;  %v11656_v4 = vld [vmem:[#allocation10] sm:$0xff] }
 0x348   : > { %8388 = vmatprep.subr.bf16.mxu0 %v9956_v5  ;;  %8560 = vmatprep.subr.bf16.mxu1 %v9958_v6  ;;  %v5376_v6 = vld [vmem:[#allocation13 + $0x200] sm:$0xff]  ;;  %v11665_v2 = vrot.slane %v11656_v4, %v4779_v21  ;;  %v5425_v21 = vld [vmem:[#allocation13 + $0x388] sm:$0xff] }
 0x349   : > { %v11659_v5 = vrot.slane %v11656_v4, %v4771_v3  ;;  %v10004_v8 = vcombine.high %v5376_v6, %v5380_v31  ;;  %v5413_v3 = vld [vmem:[#allocation13 + $0x328] sm:$0xff] }
 0x34b   : > { %8389 = vmatpush1.bf16.msra.mxu0 %v9955_v43  ;;  %8561 = vmatpush1.bf16.msra.mxu1 %v9957_v11  ;;  %v10003_v43 = vcombine.low %v5376_v6, %v5380_v31  ;;  %v10005_v11 = vcombine.low %v5377_v7, %v5381_v10  ;;  %v5416_v6 = vld [vmem:[#allocation13 + $0x340] sm:$0xff] }
 0x34c   : > { %8390 = vmatprep.subr.bf16.mxu0 %v9964_v57  ;;  %8562 = vmatprep.subr.bf16.mxu1 %v9966_v61  ;;  %v10006_v57 = vcombine.high %v5377_v7, %v5381_v10  ;;  %v5384_v61 = vld [vmem:[#allocation13 + $0x240] sm:$0xff]  ;;  %v5417_v10 = vld [vmem:[#allocation13 + $0x348] sm:$0xff] }
 0x34d   : > { %v5420_v31 = vld [vmem:[#allocation13 + $0x360] sm:$0xff] }
 0x34f   : > { %8391 = vmatpush1.bf16.msra.mxu0 %v9963_v59  ;;  %8563 = vmatpush1.bf16.msra.mxu1 %v9965_v17  ;;  %v5388_v59 = vld [vmem:[#allocation13 + $0x260] sm:$0xff]  ;;  %v5385_v17 = vld [vmem:[#allocation13 + $0x248] sm:$0xff] }
 0x350   : > { %8392 = vmatprep.subr.bf16.mxu0 %v9972_v26  ;;  %8564 = vmatprep.subr.bf16.mxu1 %v9974_v27  ;;  %v10012_v19 = vcombine.high %v5384_v61, %v5388_v59  ;;  %v4787_v26 = vsub.s32 6, %v11653_v50  ;;  %v10011_v53 = vcombine.low %v5384_v61, %v5388_v59  ;;  %v4783_v27 = vsub.s32 5, %v11653_v50 }
 0x351   : > { %v10043_v59 = vcombine.low %v5416_v6, %v5420_v31 }
 0x352   : > { %v11668_v28 = vrot.slane %v11656_v4, %v4787_v26 }
 0x353   : > { %8393 = vmatpush1.bf16.msra.mxu0 %v9971_v12  ;;  %8565 = vmatpush1.bf16.msra.mxu1 %v9973_v54  ;;  %v10013_v12 = vcombine.low %v5385_v17, %v5389_v56  ;;  %v10014_v54 = vcombine.high %v5385_v17, %v5389_v56  ;;  %v5428_v56 = vld [vmem:[#allocation13 + $0x3a0] sm:$0xff] }
 0x354   : > { %8394 = vmatprep.subr.bf16.mxu0 %v9980_v32  ;;  %8566 = vmatprep.subr.bf16.mxu1 %v9982_v37  ;;  %v11672_v32 = vrot.slane %v11656_v4, %v4783_v27  ;;  %v5393_v37 = vld [vmem:[#allocation13 + $0x288] sm:$0xff] }
 0x355   : > { %v10022_v41 = vcombine.high %v5393_v37, %v5397_v39 }
 0x357   : > { %8395 = vmatpush1.bf16.msra.mxu0 %v9979_v36  ;;  %8567 = vmatpush1.bf16.msra.mxu1 %v9981_v22  ;;  %v5396_v36 = vld [vmem:[#allocation13 + $0x2a0] sm:$0xff]  ;;  %v11675_v22 = vrot.slane %v11656_v4, %v4791_v29 }
 0x358   : > { %8396 = vmatprep.subr.bf16.mxu0 %v9988_v40  ;;  %8568 = vmatprep.subr.bf16.mxu1 %v9990_v30  ;;  %v10020_v38 = vcombine.high %v5392_v33, %v5396_v36  ;;  %v10019_v58 = vcombine.low %v5392_v33, %v5396_v36  ;;  %v10021_v40 = vcombine.low %v5393_v37, %v5397_v39  ;;  %v5432_v29 = vld [vmem:[#allocation13 + $0x3c0] sm:$0xff]  ;;  %v5433_v36 = vld [vmem:[#allocation13 + $0x3c8] sm:$0xff] }
 0x359   : > { %v5436_v33 = vld [vmem:[#allocation13 + $0x3e0] sm:$0xff]  ;;  %v5437_v39 = vld [vmem:[#allocation13 + $0x3e8] sm:$0xff] }
 0x35a   : > { %v10059_v37 = vcombine.low %v5432_v29, %v5436_v33 }
 0x35b   : > { %8397 = vmatpush1.bf16.msra.mxu0 %v9987_v15  ;;  %8569 = vmatpush1.bf16.msra.mxu1 %v9989_v46  ;;  %v5404_v15 = vld [vmem:[#allocation13 + $0x2e0] sm:$0xff]  ;;  %v5401_v46 = vld [vmem:[#allocation13 + $0x2c8] sm:$0xff] }
 0x35c   : > { %8398 = vmatprep.subr.bf16.mxu0 %v9996_v25  ;;  %8570 = vmatprep.subr.bf16.mxu1 %v9998_v34  ;;  %v10028_v30 = vcombine.high %v5400_v44, %v5404_v15  ;;  %v10027_v47 = vcombine.low %v5400_v44, %v5404_v15  ;;  %v10029_v51 = vcombine.low %v5401_v46, %v5405_v42  ;;  %v5409_v34 = vld [vmem:[#allocation13 + $0x308] sm:$0xff] }
 0x35d   : > { %v10030_v25 = vcombine.high %v5401_v46, %v5405_v42  ;;  %v10062_v44 = vcombine.high %v5433_v36, %v5437_v39  ;;  %v11687_v42 = vld [vmem:[#allocation13 + $0x428] sm:$0xff] }
 0x35f   : > { %8399 = vmatpush1.bf16.msra.mxu0 %v9995_v62  ;;  %8571 = vmatpush1.bf16.msra.mxu1 %v9997_v0  ;;  %v5412_v62 = vld [vmem:[#allocation13 + $0x320] sm:$0xff] }
 0x360   : > { %8400 = vmatprep.subr.bf16.mxu0 %v10004_v8  ;;  %8572 = vmatprep.subr.bf16.mxu1 %v10006_v57  ;;  %v10036_v0 = vcombine.high %v5408_v23, %v5412_v62  ;;  %v10035_v7 = vcombine.low %v5408_v23, %v5412_v62  ;;  %v10038_v8 = vcombine.high %v5409_v34, %v5413_v3 }
 0x361   : > { %v10044_v57 = vcombine.high %v5416_v6, %v5420_v31 }
 0x363   : > { %8401 = vmatpush1.bf16.msra.mxu0 %v10003_v43  ;;  %8573 = vmatpush1.bf16.msra.mxu1 %v10005_v11  ;;  %v5421_v43 = vld [vmem:[#allocation13 + $0x368] sm:$0xff]  ;;  %v10037_v11 = vcombine.low %v5409_v34, %v5413_v3 }
 0x364   : > { %8402 = vmatprep.subr.bf16.mxu0 %v10012_v19  ;;  %8574 = vmatprep.subr.bf16.mxu1 %v10014_v54  ;;  %v10046_v61 = vcombine.high %v5417_v10, %v5421_v43  ;;  %v10045_v17 = vcombine.low %v5417_v10, %v5421_v43  ;;  %v5424_v19 = vld [vmem:[#allocation13 + $0x380] sm:$0xff]  ;;  %v4763_v43 = vsub.s32 0, %v11653_v50 }
 0x365   : > { %v10052_v26 = vcombine.high %v5424_v19, %v5428_v56 }
 0x367   : > { %8403 = vmatpush1.bf16.msra.mxu0 %v10011_v53  ;;  %8575 = vmatpush1.bf16.msra.mxu1 %v10013_v12  ;;  %v5429_v53 = vld [vmem:[#allocation13 + $0x3a8] sm:$0xff]  ;;  %v10051_v12 = vcombine.low %v5424_v19, %v5428_v56  ;;  %v4775_v19 = vsub.s32 3, %v11653_v50 }
 0x368   : > { %8404 = vmatprep.subr.bf16.mxu0 %v10020_v38  ;;  %8576 = vmatprep.subr.bf16.mxu1 %v10022_v41  ;;  %v10053_v54 = vcombine.low %v5425_v21, %v5429_v53  ;;  %v10054_v27 = vcombine.high %v5425_v21, %v5429_v53  ;;  %v10060_v38 = vcombine.high %v5432_v29, %v5436_v33 }
 0x369   : > { %v10061_v41 = vcombine.low %v5433_v36, %v5437_v39  ;;  %v4764_v21 = vrot.slane %v11656_v4, %v4763_v43  ;;  %v4776_v53 = vrot.slane %v11656_v4, %v4775_v19 }
 0x36b   : > { %8405 = vmatpush1.bf16.msra.mxu0 %v10019_v58  ;;  %8577 = vmatpush1.bf16.msra.mxu1 %v10021_v40  ;;  %v11677_v58 = vld [vmem:[#allocation13 + $0x400] sm:$0xff] }
 0x36c   : > { %8406 = vmatprep.subr.bf16.mxu0 %v10028_v30  ;;  %8578 = vmatprep.subr.bf16.mxu1 %v10030_v25  ;;  %v11679_v40 = vld [vmem:[#allocation13 + $0x420] sm:$0xff]  ;;  %v11685_v30 = vld [vmem:[#allocation13 + $0x408] sm:$0xff] }
 0x36d   : > { %v10067_v15 = vcombine.low %v11677_v58, %v11679_v40  ;;  %v10068_v46 = vcombine.high %v11677_v58, %v11679_v40 }
 0x36f   : > { %8407 = vmatpush1.bf16.msra.mxu0 %v10027_v47  ;;  %8579 = vmatpush1.bf16.msra.mxu1 %v10029_v51  ;;  %v10069_v47 = vcombine.low %v11685_v30, %v11687_v42  ;;  %v10070_v51 = vcombine.high %v11685_v30, %v11687_v42  ;;  %v5472_v42 = vld [vmem:[#allocation13 + $0x500] sm:$0xff] }
 0x370   : > { %8408 = vmatprep.subr.bf16.mxu0 %v10036_v0  ;;  %8580 = vmatprep.subr.bf16.mxu1 %v10038_v8 }
 0x373   : > { %8409 = vmatpush1.bf16.msra.mxu0 %v10035_v7  ;;  %8581 = vmatpush1.bf16.msra.mxu1 %v10037_v11 }
 0x374   : > { %8410 = vmatprep.subr.bf16.mxu0 %v10044_v57  ;;  %8582 = vmatprep.subr.bf16.mxu1 %v10046_v61  ;;  %v4767_v61 = vsub.s32 1, %v11653_v50 }
 0x377   : > { %8411 = vmatpush1.bf16.msra.mxu0 %v10043_v59  ;;  %8583 = vmatpush1.bf16.msra.mxu1 %v10045_v17 }
 0x378   : > { %8412 = vmatprep.subr.bf16.mxu0 %v10052_v26  ;;  %8584 = vmatprep.subr.bf16.mxu1 %v10054_v27  ;;  %v4768_v26 = vrot.slane %v11656_v4, %v4767_v61 }
 0x37b   : > { %8413 = vmatpush1.bf16.msra.mxu0 %v10051_v12  ;;  %8585 = vmatpush1.bf16.msra.mxu1 %v10053_v54 }
 0x37c   : > { %8414 = vmatprep.subr.bf16.mxu0 %v10060_v38  ;;  %8586 = vmatprep.subr.bf16.mxu1 %v10062_v44 }
 0x37f   : > { %8415 = vmatpush1.bf16.msra.mxu0 %v10059_v37  ;;  %8587 = vmatpush1.bf16.msra.mxu1 %v10061_v41 }
 0x380   : > { %8427 = vmatprep.subr.bf16.mxu0 %v10068_v46  ;;  %8599 = vmatprep.subr.bf16.mxu1 %v10070_v51 }
 0x3d5   : > { %v4280_v25 = vpop.f32.mrb[8].mxu0  ;;  %v11693_v23 = vpop.f32.mrb[8].mxu1 }
 0x3d6   : > { %v11695_v62 = vpop.f32.mrb[9].mxu0  ;;  %v11697_v34 = vpop.f32.mrb[9].mxu1 }
 0x3d7   : > { %v11699_v0 = vpop.f32.mrb[10].mxu0  ;;  %v11701_v3 = vpop.f32.mrb[10].mxu1 }
 0x3d8   : > { %v11703_v6 = vpop.f32.mrb[11].mxu0  ;;  %v11705_v31 = vpop.f32.mrb[11].mxu1 }
 0x3dd   : > { %v11707_v7 = vpop.f32.mrb[12].mxu0  ;;  %v11709_v8 = vpop.f32.mrb[12].mxu1 }
 0x3de   : > { %v11711_v10 = vpop.f32.mrb[13].mxu0  ;;  %v11714_v11 = vpop.f32.mrb[13].mxu1 }
 0x3df   : > { %v11716_v57 = vpop.f32.mrb[14].mxu0  ;;  %v11719_v59 = vpop.f32.mrb[14].mxu1 }
 0x3e0   : > { %v11721_v17 = vpop.f32.mrb[15].mxu0  ;;  %v11724_v56 = vpop.f32.mrb[15].mxu1 }
 0x3e5   : > { %v4621_v12 = vpop.f32.mrb[16].mxu0  ;;  %v4664_v29 = vpop.f32.mrb[16].mxu1 }
 0x3e6   : > { %v4801_v54 = vsub.f32 %v4764_v21, %v4621_v12  ;;  %v5240_v27 = vmul.f32 %v4621_v12, %v11583_v35  ;;  %v4623_v33 = vpop.f32.mrb[17].mxu0  ;;  %v4803_v36 = vsub.f32 %v11659_v5, %v4664_v29  ;;  %v5242_v37 = vmul.f32 %v4664_v29, %v11585_v48  ;;  %v4666_v39 = vpop.f32.mrb[17].mxu1 }
 0x3e7   : > { %v4802_v38 = vsub.f32 %v4768_v26, %v4623_v33  ;;  %v5241_v50 = vmul.f32 %v4623_v33, %v11587_v49  ;;  %v4625_v41 = vpop.f32.mrb[18].mxu0  ;;  %v4804_v46 = vsub.f32 %v4776_v53, %v4666_v39  ;;  %v5243_v4 = vmul.f32 %v4666_v39, %v11589_v52  ;;  %v4668_v43 = vpop.f32.mrb[18].mxu1 }
 0x3e8   : > { %v5256_v44 = vmul.f32 %v4801_v54, %v11599_v9  ;;  %v4809_v51 = vsub.f32 %v4764_v21, %v4625_v41  ;;  %v4627_v61 = vpop.f32.mrb[19].mxu0  ;;  %v5258_v35 = vmul.f32 %v4803_v36, %v11601_v13  ;;  %v5248_v12 = vmul.f32 %v4625_v41, %v11591_v55  ;;  %v4670_v29 = vpop.f32.mrb[19].mxu1 }
 0x3e9   : > { %v5257_v19 = vmul.f32 %v4802_v38, %v11603_v45  ;;  %v4811_v48 = vsub.f32 %v11659_v5, %v4668_v43  ;;  %v5259_v49 = vmul.f32 %v4804_v46, %v11605_v14  ;;  %v5250_v9 = vmul.f32 %v4668_v43, %v11593_v24 }
 0x3ea   : > { %v5264_v33 = vmul.f32 %v4809_v51, %v11607_v16  ;;  %v4810_v54 = vsub.f32 %v4768_v26, %v4627_v61  ;;  %v5249_v21 = vmul.f32 %v4627_v61, %v11595_v60  ;;  %v4812_v39 = vsub.f32 %v4776_v53, %v4670_v29 }
 0x3eb   : > { %v5266_v52 = vmul.f32 %v4811_v48, %v11609_v1  ;;  %v5251_v13 = vmul.f32 %v4670_v29, %v11597_v63  ;;  %v5272_v55 = vadd.f32 %v5256_v44, %v5240_v27  ;;  %v5274_v36 = vadd.f32 %v5258_v35, %v5242_v37 }
 0x3ec   : > { %v5265_v45 = vmul.f32 %v4810_v54, %v11611_v18  ;;  %v5273_v5 = vadd.f32 %v5257_v19, %v5241_v50  ;;  %v5267_v38 = vmul.f32 %v4812_v39, %v11613_v20  ;;  %v5275_v41 = vadd.f32 %v5259_v49, %v5243_v4 }
 0x3ed   : > { %v4707_v14 = vpop.f32.mrb[20].mxu0  ;;  %v5280_v16 = vadd.f32 %v5264_v33, %v5248_v12  ;;  %v5282_v46 = vadd.f32 %v5266_v52, %v5250_v9  ;;  %v4750_v1 = vpop.f32.mrb[20].mxu1 }
 0x3ee   : > { %v4805_v24 = vsub.f32 %v11665_v2, %v4707_v14  ;;  %v5244_v26 = vmul.f32 %v4707_v14, %v4280_v25  ;;  %v4709_v51 = vpop.f32.mrb[21].mxu0  ;;  %v5281_v60 = vadd.f32 %v5265_v45, %v5249_v21  ;;  %v4807_v53 = vsub.f32 %v11668_v28, %v4750_v1  ;;  %v4752_v37 = vpop.f32.mrb[21].mxu1 }
 0x3ef   : > { %v5246_v63 = vmul.f32 %v4750_v1, %v11693_v23  ;;  %v4806_v18 = vsub.f32 %v11672_v32, %v4709_v51  ;;  %v5245_v27 = vmul.f32 %v4709_v51, %v11695_v62  ;;  %v4711_v20 = vpop.f32.mrb[22].mxu0  ;;  %v4808_v44 = vsub.f32 %v11675_v22, %v4752_v37  ;;  %v4754_v43 = vpop.f32.mrb[22].mxu1 }
 0x3f0   : > { %v5260_v50 = vmul.f32 %v4805_v24, %v11707_v7  ;;  %v5247_v4 = vmul.f32 %v4752_v37, %v11697_v34  ;;  %v4813_v25 = vsub.f32 %v11665_v2, %v4711_v20  ;;  %v4713_v61 = vpop.f32.mrb[23].mxu0  ;;  %v5262_v35 = vmul.f32 %v4807_v53, %v11709_v8  ;;  %v4756_v12 = vpop.f32.mrb[23].mxu1  ;;  %v5448_v53 = vld [vmem:[#allocation13 + $0x440] sm:$0xff]  ;;  %v5449_v37 = vld [vmem:[#allocation13 + $0x448] sm:$0xff] }
 0x3f1   : > { %v5261_v23 = vmul.f32 %v4806_v18, %v11711_v10  ;;  %v5252_v19 = vmul.f32 %v4711_v20, %v11699_v0  ;;  %v4815_v62 = vsub.f32 %v11668_v28, %v4754_v43  ;;  %v5263_v48 = vmul.f32 %v4808_v44, %v11714_v11  ;;  %v5461_v44 = vld [vmem:[#allocation13 + $0x4a8] sm:$0xff] }
 0x3f2   : > { %v5268_v7 = vmul.f32 %v4813_v25, %v11716_v57  ;;  %v5254_v29 = vmul.f32 %v4754_v43, %v11701_v3  ;;  %v4814_v34 = vsub.f32 %v11672_v32, %v4713_v61  ;;  %v5253_v49 = vmul.f32 %v4713_v61, %v11703_v6 }
 0x3f3   : > { %v5270_v2 = vmul.f32 %v4815_v62, %v11719_v59  ;;  %v4816_v8 = vsub.f32 %v11675_v22, %v4756_v12  ;;  %v5255_v10 = vmul.f32 %v4756_v12, %v11705_v31  ;;  %v5283_v28 = vadd.f32 %v5267_v38, %v5251_v13  ;;  %v5469_v62 = vld [vmem:[#allocation13 + $0x4e8] sm:$0xff] }
 0x3f4   : > { %v5269_v0 = vmul.f32 %v4814_v34, %v11721_v17  ;;  %v11769_v33 = vadd.f32 %v5260_v50, %v5244_v26  ;;  %v11771_v11 = vadd.f32 %v5262_v35, %v5246_v63  ;;  %v11774_v3 = vadd.f32 %v5261_v23, %v5245_v27  ;;  %v5452_v27 = vld [vmem:[#allocation13 + $0x460] sm:$0xff]  ;;  %v5457_v50 = vld [vmem:[#allocation13 + $0x488] sm:$0xff] }
 0x3f5   : > { %v5271_v57 = vmul.f32 %v4816_v8, %v11724_v56  ;;  %v11776_v32 = vadd.f32 %v5263_v48, %v5247_v4  ;;  %v11778_v59 = vadd.f32 %v5268_v7, %v5252_v19  ;;  %v11780_v6 = vadd.f32 %v5270_v2, %v5254_v29  ;;  %v5464_v35 = vld [vmem:[#allocation13 + $0x4c0] sm:$0xff]  ;;  %v5465_v19 = vld [vmem:[#allocation13 + $0x4c8] sm:$0xff] }
 0x3f6   : > { %v11782_v22 = vadd.f32 %v5269_v0, %v5253_v49  ;;  %v10075_v4 = vcombine.low %v5448_v53, %v5452_v27  ;;  %v10086_v61 = vcombine.high %v5457_v50, %v5461_v44  ;;  %v5468_v23 = vld [vmem:[#allocation13 + $0x4e0] sm:$0xff]  ;;  %v10085_v40 = vcombine.low %v5457_v50, %v5461_v44  ;;  %v5473_v12 = vld [vmem:[#allocation13 + $0x508] sm:$0xff] }
 0x3f7   : > { %v11784_v31 = vadd.f32 %v5271_v57, %v5255_v10  ;;  %v10094_v30 = vcombine.high %v5465_v19, %v5469_v62  ;;  %v5477_v48 = vld [vmem:[#allocation13 + $0x528] sm:$0xff]  ;;  %v10091_v7 = vcombine.low %v5464_v35, %v5468_v23  ;;  %v10093_v29 = vcombine.low %v5465_v19, %v5469_v62  ;;  %v5480_v49 = vld [vmem:[#allocation13 + $0x540] sm:$0xff] }
 0x3f8   : > { %v10102_v2 = vcombine.high %v5473_v12, %v5477_v48  ;;  %v5484_v8 = vld [vmem:[#allocation13 + $0x560] sm:$0xff]  ;;  %v5481_v0 = vld [vmem:[#allocation13 + $0x548] sm:$0xff] }
 0x3f9   : > { %v5500_v50 = vld [vmem:[#allocation13 + $0x5e0] sm:$0xff]  ;;  %v5497_v44 = vld [vmem:[#allocation13 + $0x5c8] sm:$0xff] }
 0x3fa   : > { %v5505_v19 = vld [vmem:[#allocation13 + $0x608] sm:$0xff] }
 0x3fb   : > { %v5509_v62 = vld [vmem:[#allocation13 + $0x628] sm:$0xff] }
 0x401   : > { %v5102_v17 = vpop.f32.mrb[24].mxu0  ;;  %v5145_v54 = vpop.f32.mrb[24].mxu1 }
 0x402   : > { %v5288_v9 = vmul.f32 %v5272_v55, %v5102_v17  ;;  %v5104_v52 = vpop.f32.mrb[25].mxu0  ;;  %v5290_v21 = vmul.f32 %v5274_v36, %v5145_v54  ;;  %v5147_v13 = vpop.f32.mrb[25].mxu1  ;;  %v5453_v55 = vld [vmem:[#allocation13 + $0x468] sm:$0xff] }
 0x403   : > { %v5289_v39 = vmul.f32 %v5273_v5, %v5104_v52  ;;  %v5106_v56 = vpop.f32.mrb[26].mxu0  ;;  %v5291_v45 = vmul.f32 %v5275_v41, %v5147_v13  ;;  %v5149_v14 = vpop.f32.mrb[26].mxu1  ;;  %v5456_v41 = vld [vmem:[#allocation13 + $0x480] sm:$0xff]  ;;  %v10077_v25 = vcombine.low %v5449_v37, %v5453_v55  ;;  %v10101_v52 = vcombine.low %v5473_v12, %v5477_v48  ;;  %v5513_v12 = vld [vmem:[#allocation13 + $0x648] sm:$0xff] }
 0x404   : > { %v5296_v38 = vmul.f32 %v5280_v16, %v5106_v56  ;;  %v5108_v24 = vpop.f32.mrb[27].mxu0  ;;  %v5298_v26 = vmul.f32 %v5282_v46, %v5149_v14  ;;  %v5151_v51 = vpop.f32.mrb[27].mxu1  ;;  %v10076_v16 = vcombine.high %v5448_v53, %v5452_v27  ;;  %v10078_v46 = vcombine.high %v5449_v37, %v5453_v55  ;;  %v5492_v53 = vld [vmem:[#allocation13 + $0x5a0] sm:$0xff]  ;;  %v5493_v27 = vld [vmem:[#allocation13 + $0x5a8] sm:$0xff] }
 0x405   : > { %v5297_v1 = vmul.f32 %v5281_v60, %v5108_v24  ;;  %v5299_v18 = vmul.f32 %v5283_v28, %v5151_v51  ;;  %v5460_v60 = vld [vmem:[#allocation13 + $0x4a0] sm:$0xff]  ;;  %v5485_v28 = vld [vmem:[#allocation13 + $0x568] sm:$0xff]  ;;  %v10107_v55 = vcombine.low %v5480_v49, %v5484_v8 }
 0x406   : > { %v11786_v63 = vpack.c.bf16 %v5296_v38, %v5288_v9  ;;  %v11788_v20 = vpack.c.bf16 %v5298_v26, %v5290_v21  ;;  %v10084_v43 = vcombine.high %v5456_v41, %v5460_v60  ;;  %v10083_v58 = vcombine.low %v5456_v41, %v5460_v60  ;;  %v5496_v60 = vld [vmem:[#allocation13 + $0x5c0] sm:$0xff]  ;;  %v5517_v48 = vld [vmem:[#allocation13 + $0x668] sm:$0xff] }
 0x407   : > { %v11790_v36 = vpack.c.bf16 %v5297_v1, %v5289_v39  ;;  %v11792_v5 = vpack.c.bf16 %v5299_v18, %v5291_v45  ;;  %v10108_v45 = vcombine.high %v5480_v49, %v5484_v8  ;;  %v5488_v1 = vld [vmem:[#allocation13 + $0x580] sm:$0xff]  ;;  %v5489_v18 = vld [vmem:[#allocation13 + $0x588] sm:$0xff] }
 0x408   : > { %v5520_v49 = vld [vmem:[#allocation13 + $0x680] sm:$0xff] }
 0x409   : > { %8416 = vmatprep.mubr.bf16.mxu0 %v11790_v36  ;;  %8588 = vmatprep.mubr.bf16.mxu1 %v11790_v36  ;;  %v5524_v8 = vld [vmem:[#allocation13 + $0x6a0] sm:$0xff] }
 0x40a   : > { %8417 = vmatmul.mubr.bf16.vlgmr.msra.gmra.mrb[32].mxu0 %v11786_v63  ;;  %8589 = vmatmul.mubr.bf16.vlgmr.msra.gmra.mrb[32].mxu1 %v11786_v63 }
 0x40b   : > { %8428 = vmatpush1.bf16.msra.mxu0 %v10067_v15  ;;  %8600 = vmatpush1.bf16.msra.mxu1 %v10069_v47  ;;  %v10092_v15 = vcombine.high %v5464_v35, %v5468_v23  ;;  %v5476_v47 = vld [vmem:[#allocation13 + $0x520] sm:$0xff] }
 0x40c   : > { %8459 = vmatprep.mubr.bf16.mxu0 %v11792_v5  ;;  %8631 = vmatprep.mubr.bf16.mxu1 %v11792_v5  ;;  %v10100_v34 = vcombine.high %v5472_v42, %v5476_v47  ;;  %v10099_v54 = vcombine.low %v5472_v42, %v5476_v47  ;;  %v5504_v35 = vld [vmem:[#allocation13 + $0x600] sm:$0xff] }
 0x40d   : > { %8429 = vmatprep.subr.bf16.mxu0 %v10076_v16  ;;  %8601 = vmatprep.subr.bf16.mxu1 %v10078_v46  ;;  %v10109_v16 = vcombine.low %v5481_v0, %v5485_v28  ;;  %v5508_v23 = vld [vmem:[#allocation13 + $0x620] sm:$0xff] }
 0x40e   : > { %v5512_v42 = vld [vmem:[#allocation13 + $0x640] sm:$0xff] }
 0x40f   : > { %8430 = vmatpush1.bf16.msra.mxu0 %v10075_v4  ;;  %8602 = vmatpush1.bf16.msra.mxu1 %v10077_v25  ;;  %v5501_v4 = vld [vmem:[#allocation13 + $0x5e8] sm:$0xff]  ;;  %v10117_v25 = vcombine.low %v5489_v18, %v5493_v27  ;;  %v5516_v47 = vld [vmem:[#allocation13 + $0x660] sm:$0xff] }
 0x410   : > { %8431 = vmatprep.subr.bf16.mxu0 %v10084_v43  ;;  %8603 = vmatprep.subr.bf16.mxu1 %v10086_v61  ;;  %v10124_v43 = vcombine.high %v5496_v60, %v5500_v50  ;;  %v10126_v61 = vcombine.high %v5497_v44, %v5501_v4 }
 0x413   : > { %8432 = vmatpush1.bf16.msra.mxu0 %v10083_v58  ;;  %8604 = vmatpush1.bf16.msra.mxu1 %v10085_v40  ;;  %v10123_v58 = vcombine.low %v5496_v60, %v5500_v50  ;;  %v10125_v40 = vcombine.low %v5497_v44, %v5501_v4  ;;  %v5552_v60 = vld [vmem:[#allocation13 + $0x780] sm:$0xff]  ;;  %v5553_v44 = vld [vmem:[#allocation13 + $0x788] sm:$0xff] }
 0x414   : > { %8433 = vmatprep.subr.bf16.mxu0 %v10092_v15  ;;  %8605 = vmatprep.subr.bf16.mxu1 %v10094_v30  ;;  %v10132_v15 = vcombine.high %v5504_v35, %v5508_v23  ;;  %v10134_v30 = vcombine.high %v5505_v19, %v5509_v62  ;;  %v5556_v50 = vld [vmem:[#allocation13 + $0x7a0] sm:$0xff]  ;;  %v5557_v4 = vld [vmem:[#allocation13 + $0x7a8] sm:$0xff] }
 0x415   : > { %v5188_v10 = vpop.f32.mrb[28].mxu0  ;;  %v5231_v17 = vpop.f32.mrb[28].mxu1 }
 0x416   : > { %v5292_v57 = vmul.f32 %v11769_v33, %v5188_v10  ;;  %v5190_v9 = vpop.f32.mrb[29].mxu0  ;;  %v5294_v21 = vmul.f32 %v11771_v11, %v5231_v17  ;;  %v5233_v13 = vpop.f32.mrb[29].mxu1  ;;  %v10110_v33 = vcombine.high %v5481_v0, %v5485_v28  ;;  %v5521_v10 = vld [vmem:[#allocation13 + $0x688] sm:$0xff]  ;;  %v10139_v28 = vcombine.low %v5512_v42, %v5516_v47 }
 0x417   : > { %v5293_v39 = vmul.f32 %v11774_v3, %v5190_v9  ;;  %8434 = vmatpush1.bf16.msra.mxu0 %v10091_v7  ;;  %8606 = vmatpush1.bf16.msra.mxu1 %v10093_v29  ;;  %v5192_v56 = vpop.f32.mrb[30].mxu0  ;;  %v5295_v38 = vmul.f32 %v11776_v32, %v5233_v13  ;;  %v5235_v24 = vpop.f32.mrb[30].mxu1  ;;  %v10131_v7 = vcombine.low %v5504_v35, %v5508_v23  ;;  %v5525_v0 = vld [vmem:[#allocation13 + $0x6a8] sm:$0xff]  ;;  %v5560_v35 = vld [vmem:[#allocation13 + $0x7c0] sm:$0xff] }
 0x418   : > { %v5300_v14 = vmul.f32 %v11778_v59, %v5192_v56  ;;  %v5194_v26 = vpop.f32.mrb[31].mxu0  ;;  %8435 = vmatprep.subr.bf16.mxu0 %v10100_v34  ;;  %8607 = vmatprep.subr.bf16.mxu1 %v10102_v2  ;;  %v5302_v51 = vmul.f32 %v11780_v6, %v5235_v24  ;;  %v5237_v3 = vpop.f32.mrb[31].mxu1  ;;  %v10116_v6 = vcombine.high %v5488_v1, %v5492_v53  ;;  %v5540_v24 = vld [vmem:[#allocation13 + $0x720] sm:$0xff] }
 0x419   : > { %v5301_v11 = vmul.f32 %v11782_v22, %v5194_v26  ;;  %v5303_v32 = vmul.f32 %v11784_v31, %v5237_v3  ;;  %v10118_v22 = vcombine.high %v5489_v18, %v5493_v27  ;;  %v10115_v31 = vcombine.low %v5488_v1, %v5492_v53  ;;  %v5537_v26 = vld [vmem:[#allocation13 + $0x708] sm:$0xff]  ;;  %v5544_v53 = vld [vmem:[#allocation13 + $0x740] sm:$0xff] }
 0x41a   : > { %v11813_v37 = vpack.c.bf16 %v5300_v14, %v5292_v57  ;;  %v11816_v59 = vpack.c.bf16 %v5302_v51, %v5294_v21  ;;  %v10133_v29 = vcombine.low %v5505_v19, %v5509_v62  ;;  %v10140_v34 = vcombine.high %v5512_v42, %v5516_v47  ;;  %v5529_v21 = vld [vmem:[#allocation13 + $0x6c8] sm:$0xff]  ;;  %v5536_v14 = vld [vmem:[#allocation13 + $0x700] sm:$0xff] }
 0x41b   : > { %v11818_v41 = vpack.c.bf16 %v5301_v11, %v5293_v39  ;;  %8436 = vmatpush1.bf16.msra.mxu0 %v10099_v54  ;;  %8608 = vmatpush1.bf16.msra.mxu1 %v10101_v52  ;;  %v11820_v46 = vpack.c.bf16 %v5303_v32, %v5295_v38  ;;  %v10142_v2 = vcombine.high %v5513_v12, %v5517_v48  ;;  %v5528_v54 = vld [vmem:[#allocation13 + $0x6c0] sm:$0xff]  ;;  %v5533_v39 = vld [vmem:[#allocation13 + $0x6e8] sm:$0xff] }
 0x41c   : > { %8437 = vmatprep.subr.bf16.mxu0 %v10108_v45  ;;  %8609 = vmatprep.subr.bf16.mxu1 %v10110_v33  ;;  %v10141_v57 = vcombine.low %v5513_v12, %v5517_v48  ;;  %v10148_v17 = vcombine.high %v5520_v49, %v5524_v8  ;;  %v10150_v9 = vcombine.high %v5521_v10, %v5525_v0  ;;  %v5532_v52 = vld [vmem:[#allocation13 + $0x6e0] sm:$0xff]  ;;  %v5541_v33 = vld [vmem:[#allocation13 + $0x728] sm:$0xff] }
 0x41d   : > { %v10147_v13 = vcombine.low %v5520_v49, %v5524_v8  ;;  %v10149_v56 = vcombine.low %v5521_v10, %v5525_v0  ;;  %v10156_v45 = vcombine.high %v5528_v54, %v5532_v52  ;;  %v10158_v38 = vcombine.high %v5529_v21, %v5533_v39  ;;  %v5548_v18 = vld [vmem:[#allocation13 + $0x760] sm:$0xff]  ;;  %v5545_v27 = vld [vmem:[#allocation13 + $0x748] sm:$0xff] }
 0x41e   : > { %v10155_v1 = vcombine.low %v5528_v54, %v5532_v52  ;;  %v10157_v51 = vcombine.low %v5529_v21, %v5533_v39  ;;  %v10164_v11 = vcombine.high %v5536_v14, %v5540_v24  ;;  %v10166_v3 = vcombine.high %v5537_v26, %v5541_v33  ;;  %v5549_v32 = vld [vmem:[#allocation13 + $0x768] sm:$0xff]  ;;  %v5564_v23 = vld [vmem:[#allocation13 + $0x7e0] sm:$0xff] }
 0x41f   : > { %8438 = vmatpush1.bf16.msra.mxu0 %v10107_v55  ;;  %8610 = vmatpush1.bf16.msra.mxu1 %v10109_v16  ;;  %v10163_v55 = vcombine.low %v5536_v14, %v5540_v24  ;;  %v10165_v16 = vcombine.low %v5537_v26, %v5541_v33  ;;  %v5561_v19 = vld [vmem:[#allocation13 + $0x7c8] sm:$0xff]  ;;  %v5568_v42 = vld [vmem:[#allocation13 + $0x800] sm:$0xff] }
 0x420   : > { %8439 = vmatprep.subr.bf16.mxu0 %v10116_v6  ;;  %8611 = vmatprep.subr.bf16.mxu1 %v10118_v22  ;;  %v10172_v6 = vcombine.high %v5544_v53, %v5548_v18  ;;  %v10174_v22 = vcombine.high %v5545_v27, %v5549_v32  ;;  %v5565_v62 = vld [vmem:[#allocation13 + $0x7e8] sm:$0xff]  ;;  %v5572_v47 = vld [vmem:[#allocation13 + $0x820] sm:$0xff] }
 0x421   : > { %v5569_v12 = vld [vmem:[#allocation13 + $0x808] sm:$0xff]  ;;  %v5576_v49 = vld [vmem:[#allocation13 + $0x840] sm:$0xff] }
 0x422   : > { %v5573_v48 = vld [vmem:[#allocation13 + $0x828] sm:$0xff]  ;;  %v5580_v8 = vld [vmem:[#allocation13 + $0x860] sm:$0xff] }
 0x423   : > { %8440 = vmatpush1.bf16.msra.mxu0 %v10115_v31  ;;  %8612 = vmatpush1.bf16.msra.mxu1 %v10117_v25  ;;  %v10171_v31 = vcombine.low %v5544_v53, %v5548_v18  ;;  %v10173_v25 = vcombine.low %v5545_v27, %v5549_v32  ;;  %v5577_v10 = vld [vmem:[#allocation13 + $0x848] sm:$0xff]  ;;  %v5584_v54 = vld [vmem:[#allocation13 + $0x880] sm:$0xff] }
 0x424   : > { %8441 = vmatprep.subr.bf16.mxu0 %v10124_v43  ;;  %8613 = vmatprep.subr.bf16.mxu1 %v10126_v61  ;;  %v10180_v43 = vcombine.high %v5552_v60, %v5556_v50  ;;  %v10182_v61 = vcombine.high %v5553_v44, %v5557_v4  ;;  %v5581_v0 = vld [vmem:[#allocation13 + $0x868] sm:$0xff]  ;;  %v5588_v52 = vld [vmem:[#allocation13 + $0x8a0] sm:$0xff] }
 0x425   : > { %v5585_v21 = vld [vmem:[#allocation13 + $0x888] sm:$0xff]  ;;  %v5592_v14 = vld [vmem:[#allocation13 + $0x8c0] sm:$0xff] }
 0x426   : > { %v5589_v39 = vld [vmem:[#allocation13 + $0x8a8] sm:$0xff]  ;;  %v5596_v24 = vld [vmem:[#allocation13 + $0x8e0] sm:$0xff] }
 0x427   : > { %8442 = vmatpush1.bf16.msra.mxu0 %v10123_v58  ;;  %8614 = vmatpush1.bf16.msra.mxu1 %v10125_v40  ;;  %v10179_v58 = vcombine.low %v5552_v60, %v5556_v50  ;;  %v10181_v40 = vcombine.low %v5553_v44, %v5557_v4  ;;  %v5593_v26 = vld [vmem:[#allocation13 + $0x8c8] sm:$0xff]  ;;  %v5600_v53 = vld [vmem:[#allocation13 + $0x900] sm:$0xff] }
 0x428   : > { %8443 = vmatprep.subr.bf16.mxu0 %v10132_v15  ;;  %8615 = vmatprep.subr.bf16.mxu1 %v10134_v30  ;;  %v10188_v15 = vcombine.high %v5560_v35, %v5564_v23  ;;  %v10190_v30 = vcombine.high %v5561_v19, %v5565_v62  ;;  %v5597_v33 = vld [vmem:[#allocation13 + $0x8e8] sm:$0xff]  ;;  %v5604_v18 = vld [vmem:[#allocation13 + $0x920] sm:$0xff] }
 0x429   : > { %v5601_v27 = vld [vmem:[#allocation13 + $0x908] sm:$0xff]  ;;  %v5608_v60 = vld [vmem:[#allocation13 + $0x940] sm:$0xff] }
 0x42a   : > { %v5605_v32 = vld [vmem:[#allocation13 + $0x928] sm:$0xff]  ;;  %v5612_v50 = vld [vmem:[#allocation13 + $0x960] sm:$0xff] }
 0x42b   : > { %8444 = vmatpush1.bf16.msra.mxu0 %v10131_v7  ;;  %8616 = vmatpush1.bf16.msra.mxu1 %v10133_v29  ;;  %v10187_v7 = vcombine.low %v5560_v35, %v5564_v23  ;;  %v10189_v29 = vcombine.low %v5561_v19, %v5565_v62  ;;  %v5609_v44 = vld [vmem:[#allocation13 + $0x948] sm:$0xff]  ;;  %v5616_v35 = vld [vmem:[#allocation13 + $0x980] sm:$0xff] }
 0x42c   : > { %8445 = vmatprep.subr.bf16.mxu0 %v10140_v34  ;;  %8617 = vmatprep.subr.bf16.mxu1 %v10142_v2  ;;  %v10196_v34 = vcombine.high %v5568_v42, %v5572_v47  ;;  %v10198_v2 = vcombine.high %v5569_v12, %v5573_v48  ;;  %v5613_v4 = vld [vmem:[#allocation13 + $0x968] sm:$0xff]  ;;  %v5620_v23 = vld [vmem:[#allocation13 + $0x9a0] sm:$0xff] }
 0x42d   : > { %v5617_v19 = vld [vmem:[#allocation13 + $0x988] sm:$0xff] }
 0x42e   : > { %v5621_v62 = vld [vmem:[#allocation13 + $0x9a8] sm:$0xff] }
 0x42f   : > { %8446 = vmatpush1.bf16.msra.mxu0 %v10139_v28  ;;  %8618 = vmatpush1.bf16.msra.mxu1 %v10141_v57  ;;  %v10195_v28 = vcombine.low %v5568_v42, %v5572_v47  ;;  %v10197_v57 = vcombine.low %v5569_v12, %v5573_v48  ;;  %v5624_v42 = vld [vmem:[#allocation13 + $0x9c0] sm:$0xff]  ;;  %v5625_v12 = vld [vmem:[#allocation13 + $0x9c8] sm:$0xff] }
 0x430   : > { %8447 = vmatprep.subr.bf16.mxu0 %v10148_v17  ;;  %8619 = vmatprep.subr.bf16.mxu1 %v10150_v9  ;;  %v10204_v17 = vcombine.high %v5576_v49, %v5580_v8  ;;  %v10206_v9 = vcombine.high %v5577_v10, %v5581_v0  ;;  %v5628_v47 = vld [vmem:[#allocation13 + $0x9e0] sm:$0xff]  ;;  %v5629_v48 = vld [vmem:[#allocation13 + $0x9e8] sm:$0xff] }
 0x433   : > { %8448 = vmatpush1.bf16.msra.mxu0 %v10147_v13  ;;  %8620 = vmatpush1.bf16.msra.mxu1 %v10149_v56  ;;  %v10203_v13 = vcombine.low %v5576_v49, %v5580_v8  ;;  %v10205_v56 = vcombine.low %v5577_v10, %v5581_v0  ;;  %v5632_v49 = vld [vmem:[#allocation13 + $0xa00] sm:$0xff]  ;;  %v5633_v10 = vld [vmem:[#allocation13 + $0xa08] sm:$0xff] }
 0x434   : > { %8449 = vmatprep.subr.bf16.mxu0 %v10156_v45  ;;  %8621 = vmatprep.subr.bf16.mxu1 %v10158_v38  ;;  %v10212_v45 = vcombine.high %v5584_v54, %v5588_v52  ;;  %v10214_v38 = vcombine.high %v5585_v21, %v5589_v39  ;;  %v5636_v8 = vld [vmem:[#allocation13 + $0xa20] sm:$0xff]  ;;  %v5637_v0 = vld [vmem:[#allocation13 + $0xa28] sm:$0xff] }
 0x437   : > { %8450 = vmatpush1.bf16.msra.mxu0 %v10155_v1  ;;  %8622 = vmatpush1.bf16.msra.mxu1 %v10157_v51  ;;  %v10211_v1 = vcombine.low %v5584_v54, %v5588_v52  ;;  %v10213_v51 = vcombine.low %v5585_v21, %v5589_v39  ;;  %v5640_v54 = vld [vmem:[#allocation13 + $0xa40] sm:$0xff]  ;;  %v5641_v21 = vld [vmem:[#allocation13 + $0xa48] sm:$0xff] }
 0x438   : > { %8451 = vmatprep.subr.bf16.mxu0 %v10164_v11  ;;  %8623 = vmatprep.subr.bf16.mxu1 %v10166_v3  ;;  %v10220_v11 = vcombine.high %v5592_v14, %v5596_v24  ;;  %v10222_v3 = vcombine.high %v5593_v26, %v5597_v33  ;;  %v5644_v52 = vld [vmem:[#allocation13 + $0xa60] sm:$0xff]  ;;  %v5645_v39 = vld [vmem:[#allocation13 + $0xa68] sm:$0xff] }
 0x43b   : > { %8452 = vmatpush1.bf16.msra.mxu0 %v10163_v55  ;;  %8624 = vmatpush1.bf16.msra.mxu1 %v10165_v16  ;;  %v10219_v55 = vcombine.low %v5592_v14, %v5596_v24  ;;  %v10221_v16 = vcombine.low %v5593_v26, %v5597_v33  ;;  %v5648_v14 = vld [vmem:[#allocation13 + $0xa80] sm:$0xff]  ;;  %v5649_v26 = vld [vmem:[#allocation13 + $0xa88] sm:$0xff] }
 0x43c   : > { %8453 = vmatprep.subr.bf16.mxu0 %v10172_v6  ;;  %8625 = vmatprep.subr.bf16.mxu1 %v10174_v22  ;;  %v10228_v6 = vcombine.high %v5600_v53, %v5604_v18  ;;  %v10230_v22 = vcombine.high %v5601_v27, %v5605_v32  ;;  %v5652_v24 = vld [vmem:[#allocation13 + $0xaa0] sm:$0xff]  ;;  %v5653_v33 = vld [vmem:[#allocation13 + $0xaa8] sm:$0xff] }
 0x43f   : > { %8454 = vmatpush1.bf16.msra.mxu0 %v10171_v31  ;;  %8626 = vmatpush1.bf16.msra.mxu1 %v10173_v25  ;;  %v10227_v31 = vcombine.low %v5600_v53, %v5604_v18  ;;  %v10229_v25 = vcombine.low %v5601_v27, %v5605_v32  ;;  %v5656_v53 = vld [vmem:[#allocation13 + $0xac0] sm:$0xff]  ;;  %v5657_v27 = vld [vmem:[#allocation13 + $0xac8] sm:$0xff] }
 0x440   : > { %8455 = vmatprep.subr.bf16.mxu0 %v10180_v43  ;;  %8627 = vmatprep.subr.bf16.mxu1 %v10182_v61  ;;  %v10236_v43 = vcombine.high %v5608_v60, %v5612_v50  ;;  %v10238_v61 = vcombine.high %v5609_v44, %v5613_v4  ;;  %v5660_v18 = vld [vmem:[#allocation13 + $0xae0] sm:$0xff]  ;;  %v5661_v32 = vld [vmem:[#allocation13 + $0xae8] sm:$0xff] }
 0x443   : > { %8456 = vmatpush1.bf16.msra.mxu0 %v10179_v58  ;;  %8628 = vmatpush1.bf16.msra.mxu1 %v10181_v40  ;;  %v10235_v58 = vcombine.low %v5608_v60, %v5612_v50  ;;  %v10237_v40 = vcombine.low %v5609_v44, %v5613_v4  ;;  %v5664_v60 = vld [vmem:[#allocation13 + $0xb00] sm:$0xff]  ;;  %v5665_v44 = vld [vmem:[#allocation13 + $0xb08] sm:$0xff] }
 0x444   : > { %8457 = vmatprep.subr.bf16.mxu0 %v10188_v15  ;;  %8629 = vmatprep.subr.bf16.mxu1 %v10190_v30  ;;  %v10244_v15 = vcombine.high %v5616_v35, %v5620_v23  ;;  %v10246_v30 = vcombine.high %v5617_v19, %v5621_v62  ;;  %v5668_v50 = vld [vmem:[#allocation13 + $0xb20] sm:$0xff]  ;;  %v5669_v4 = vld [vmem:[#allocation13 + $0xb28] sm:$0xff] }
 0x447   : > { %8458 = vmatpush1.bf16.msra.mxu0 %v10187_v7  ;;  %8630 = vmatpush1.bf16.msra.mxu1 %v10189_v29  ;;  %v10243_v7 = vcombine.low %v5616_v35, %v5620_v23  ;;  %v10245_v29 = vcombine.low %v5617_v19, %v5621_v62  ;;  %v5672_v35 = vld [vmem:[#allocation13 + $0xb40] sm:$0xff]  ;;  %v5673_v19 = vld [vmem:[#allocation13 + $0xb48] sm:$0xff] }
 0x448   : > { %8470 = vmatprep.subr.bf16.mxu0 %v10196_v34  ;;  %8642 = vmatprep.subr.bf16.mxu1 %v10198_v2  ;;  %v10252_v34 = vcombine.high %v5624_v42, %v5628_v47  ;;  %v10254_v2 = vcombine.high %v5625_v12, %v5629_v48  ;;  %v5676_v23 = vld [vmem:[#allocation13 + $0xb60] sm:$0xff]  ;;  %v5677_v62 = vld [vmem:[#allocation13 + $0xb68] sm:$0xff] }
 0x44a   : > { %8460 = vmatmul.mubr.bf16.vlgmr.msra.gmra.mrb[32].mxu0 %v11788_v20  ;;  %8632 = vmatmul.mubr.bf16.vlgmr.msra.gmra.mrb[32].mxu1 %v11788_v20 }
 0x44b   : > { %8471 = vmatpush1.bf16.msra.mxu0 %v10195_v28  ;;  %8502 = vmatprep.mubr.bf16.mxu0 %v11818_v41  ;;  %v10251_v28 = vcombine.low %v5624_v42, %v5628_v47  ;;  %v5680_v42 = vld [vmem:[#allocation13 + $0xb80] sm:$0xff] }
 0x44c   : > { %8643 = vmatpush1.bf16.msra.mxu1 %v10197_v57  ;;  %8674 = vmatprep.mubr.bf16.mxu1 %v11818_v41  ;;  %v10253_v57 = vcombine.low %v5625_v12, %v5629_v48  ;;  %v5684_v47 = vld [vmem:[#allocation13 + $0xba0] sm:$0xff]  ;;  %v5681_v12 = vld [vmem:[#allocation13 + $0xb88] sm:$0xff] }
 0x44d   : > { %8472 = vmatprep.subr.bf16.mxu0 %v10204_v17  ;;  %8644 = vmatprep.subr.bf16.mxu1 %v10206_v9  ;;  %v10260_v17 = vcombine.high %v5632_v49, %v5636_v8  ;;  %v10262_v9 = vcombine.high %v5633_v10, %v5637_v0  ;;  %v5685_v48 = vld [vmem:[#allocation13 + $0xba8] sm:$0xff] }
 0x44f   : > { %8473 = vmatpush1.bf16.msra.mxu0 %v10203_v13  ;;  %v10259_v13 = vcombine.low %v5632_v49, %v5636_v8  ;;  %v5688_v49 = vld [vmem:[#allocation13 + $0xbc0] sm:$0xff] }
 0x450   : > { %8645 = vmatpush1.bf16.msra.mxu1 %v10205_v56  ;;  %8474 = vmatprep.subr.bf16.mxu0 %v10212_v45  ;;  %v10261_v56 = vcombine.low %v5633_v10, %v5637_v0  ;;  %v10268_v45 = vcombine.high %v5640_v54, %v5644_v52  ;;  %v5692_v8 = vld [vmem:[#allocation13 + $0xbe0] sm:$0xff]  ;;  %v5689_v10 = vld [vmem:[#allocation13 + $0xbc8] sm:$0xff] }
 0x451   : > { %8646 = vmatprep.subr.bf16.mxu1 %v10214_v38  ;;  %v10270_v38 = vcombine.high %v5641_v21, %v5645_v39  ;;  %v5693_v0 = vld [vmem:[#allocation13 + $0xbe8] sm:$0xff] }
 0x453   : > { %8475 = vmatpush1.bf16.msra.mxu0 %v10211_v1  ;;  %v10267_v1 = vcombine.low %v5640_v54, %v5644_v52  ;;  %v5696_v54 = vld [vmem:[#allocation13 + $0xc00] sm:$0xff] }
 0x454   : > { %8647 = vmatpush1.bf16.msra.mxu1 %v10213_v51  ;;  %8476 = vmatprep.subr.bf16.mxu0 %v10220_v11  ;;  %v10269_v51 = vcombine.low %v5641_v21, %v5645_v39  ;;  %v10276_v11 = vcombine.high %v5648_v14, %v5652_v24  ;;  %v5700_v52 = vld [vmem:[#allocation13 + $0xc20] sm:$0xff]  ;;  %v5697_v21 = vld [vmem:[#allocation13 + $0xc08] sm:$0xff] }
 0x455   : > { %8648 = vmatprep.subr.bf16.mxu1 %v10222_v3  ;;  %v10278_v3 = vcombine.high %v5649_v26, %v5653_v33  ;;  %v5701_v39 = vld [vmem:[#allocation13 + $0xc28] sm:$0xff] }
 0x457   : > { %8477 = vmatpush1.bf16.msra.mxu0 %v10219_v55  ;;  %v10275_v55 = vcombine.low %v5648_v14, %v5652_v24  ;;  %v5704_v14 = vld [vmem:[#allocation13 + $0xc40] sm:$0xff] }
 0x458   : > { %8649 = vmatpush1.bf16.msra.mxu1 %v10221_v16  ;;  %8478 = vmatprep.subr.bf16.mxu0 %v10228_v6  ;;  %v10277_v16 = vcombine.low %v5649_v26, %v5653_v33  ;;  %v10284_v6 = vcombine.high %v5656_v53, %v5660_v18  ;;  %v5708_v24 = vld [vmem:[#allocation13 + $0xc60] sm:$0xff]  ;;  %v10323_v26 = vcombine.low %v5696_v54, %v5700_v52  ;;  %v5705_v33 = vld [vmem:[#allocation13 + $0xc48] sm:$0xff] }
 0x459   : > { %8650 = vmatprep.subr.bf16.mxu1 %v10230_v22  ;;  %v10286_v22 = vcombine.high %v5657_v27, %v5661_v32 }
 0x45b   : > { %8479 = vmatpush1.bf16.msra.mxu0 %v10227_v31  ;;  %v10283_v31 = vcombine.low %v5656_v53, %v5660_v18  ;;  %v5716_v53 = vld [vmem:[#allocation13 + $0xca0] sm:$0xff] }
 0x45c   : > { %8651 = vmatpush1.bf16.msra.mxu1 %v10229_v25  ;;  %8480 = vmatprep.subr.bf16.mxu0 %v10236_v43  ;;  %v10285_v25 = vcombine.low %v5657_v27, %v5661_v32  ;;  %v10292_v43 = vcombine.high %v5664_v60, %v5668_v50  ;;  %v5713_v27 = vld [vmem:[#allocation13 + $0xc88] sm:$0xff] }
 0x45d   : > { %8652 = vmatprep.subr.bf16.mxu1 %v10238_v61  ;;  %v10294_v61 = vcombine.high %v5665_v44, %v5669_v4  ;;  %v5717_v32 = vld [vmem:[#allocation13 + $0xca8] sm:$0xff] }
 0x45f   : > { %8481 = vmatpush1.bf16.msra.mxu0 %v10235_v58  ;;  %v10291_v58 = vcombine.low %v5664_v60, %v5668_v50  ;;  %v5720_v60 = vld [vmem:[#allocation13 + $0xcc0] sm:$0xff] }
 0x460   : > { %8653 = vmatpush1.bf16.msra.mxu1 %v10237_v40  ;;  %8482 = vmatprep.subr.bf16.mxu0 %v10244_v15  ;;  %v10293_v40 = vcombine.low %v5665_v44, %v5669_v4  ;;  %v10300_v15 = vcombine.high %v5672_v35, %v5676_v23  ;;  %v5724_v50 = vld [vmem:[#allocation13 + $0xce0] sm:$0xff]  ;;  %v5721_v44 = vld [vmem:[#allocation13 + $0xcc8] sm:$0xff] }
 0x461   : > { %8654 = vmatprep.subr.bf16.mxu1 %v10246_v30  ;;  %v10302_v30 = vcombine.high %v5673_v19, %v5677_v62  ;;  %v5725_v4 = vld [vmem:[#allocation13 + $0xce8] sm:$0xff] }
 0x463   : > { %8483 = vmatpush1.bf16.msra.mxu0 %v10243_v7  ;;  %v10299_v7 = vcombine.low %v5672_v35, %v5676_v23  ;;  %v5728_v35 = vld [vmem:[#allocation13 + $0xd00] sm:$0xff] }
 0x464   : > { %8655 = vmatpush1.bf16.msra.mxu1 %v10245_v29  ;;  %8484 = vmatprep.subr.bf16.mxu0 %v10252_v34  ;;  %v10301_v29 = vcombine.low %v5673_v19, %v5677_v62  ;;  %v10308_v34 = vcombine.high %v5680_v42, %v5684_v47  ;;  %v5732_v23 = vld [vmem:[#allocation13 + $0xd20] sm:$0xff]  ;;  %v5729_v19 = vld [vmem:[#allocation13 + $0xd08] sm:$0xff] }
 0x465   : > { %8656 = vmatprep.subr.bf16.mxu1 %v10254_v2  ;;  %v10310_v2 = vcombine.high %v5681_v12, %v5685_v48  ;;  %v5733_v62 = vld [vmem:[#allocation13 + $0xd28] sm:$0xff] }
 0x467   : > { %8485 = vmatpush1.bf16.msra.mxu0 %v10251_v28  ;;  %v10307_v28 = vcombine.low %v5680_v42, %v5684_v47  ;;  %v5736_v42 = vld [vmem:[#allocation13 + $0xd40] sm:$0xff] }
 0x468   : > { %8657 = vmatpush1.bf16.msra.mxu1 %v10253_v57  ;;  %8486 = vmatprep.subr.bf16.mxu0 %v10260_v17  ;;  %v10309_v57 = vcombine.low %v5681_v12, %v5685_v48  ;;  %v10316_v17 = vcombine.high %v5688_v49, %v5692_v8  ;;  %v5740_v47 = vld [vmem:[#allocation13 + $0xd60] sm:$0xff]  ;;  %v5737_v12 = vld [vmem:[#allocation13 + $0xd48] sm:$0xff] }
 0x469   : > { %8658 = vmatprep.subr.bf16.mxu1 %v10262_v9  ;;  %v10318_v9 = vcombine.high %v5689_v10, %v5693_v0  ;;  %v5741_v48 = vld [vmem:[#allocation13 + $0xd68] sm:$0xff] }
 0x46b   : > { %8487 = vmatpush1.bf16.msra.mxu0 %v10259_v13  ;;  %v10315_v13 = vcombine.low %v5688_v49, %v5692_v8  ;;  %v5744_v49 = vld [vmem:[#allocation13 + $0xd80] sm:$0xff] }
 0x46c   : > { %8659 = vmatpush1.bf16.msra.mxu1 %v10261_v56  ;;  %8488 = vmatprep.subr.bf16.mxu0 %v10268_v45  ;;  %v10317_v56 = vcombine.low %v5689_v10, %v5693_v0  ;;  %v10324_v45 = vcombine.high %v5696_v54, %v5700_v52  ;;  %v5748_v8 = vld [vmem:[#allocation13 + $0xda0] sm:$0xff]  ;;  %v5745_v10 = vld [vmem:[#allocation13 + $0xd88] sm:$0xff] }
 0x46d   : > { %8660 = vmatprep.subr.bf16.mxu1 %v10270_v38  ;;  %v10326_v38 = vcombine.high %v5697_v21, %v5701_v39  ;;  %v5749_v0 = vld [vmem:[#allocation13 + $0xda8] sm:$0xff]  ;;  %v5752_v54 = vld [vmem:[#allocation13 + $0xdc0] sm:$0xff] }
 0x46e   : > { %v5756_v52 = vld [vmem:[#allocation13 + $0xde0] sm:$0xff] }
 0x46f   : > { %8489 = vmatpush1.bf16.msra.mxu0 %v10267_v1  ;;  %v5709_v1 = vld [vmem:[#allocation13 + $0xc68] sm:$0xff] }
 0x470   : > { %8661 = vmatpush1.bf16.msra.mxu1 %v10269_v51  ;;  %8490 = vmatprep.subr.bf16.mxu0 %v10276_v11  ;;  %v10325_v51 = vcombine.low %v5697_v21, %v5701_v39  ;;  %v10332_v11 = vcombine.high %v5704_v14, %v5708_v24  ;;  %v10334_v18 = vcombine.high %v5705_v33, %v5709_v1  ;;  %v5753_v21 = vld [vmem:[#allocation13 + $0xdc8] sm:$0xff] }
 0x471   : > { %8662 = vmatprep.subr.bf16.mxu1 %v10278_v3  ;;  %v5712_v3 = vld [vmem:[#allocation13 + $0xc80] sm:$0xff]  ;;  %v5757_v39 = vld [vmem:[#allocation13 + $0xde8] sm:$0xff] }
 0x473   : > { %8491 = vmatpush1.bf16.msra.mxu0 %v10275_v55  ;;  %v10331_v55 = vcombine.low %v5704_v14, %v5708_v24  ;;  %v5760_v14 = vld [vmem:[#allocation13 + $0xe00] sm:$0xff] }
 0x474   : > { %8663 = vmatpush1.bf16.msra.mxu1 %v10277_v16  ;;  %8492 = vmatprep.subr.bf16.mxu0 %v10284_v6  ;;  %v10333_v16 = vcombine.low %v5705_v33, %v5709_v1  ;;  %v10340_v6 = vcombine.high %v5712_v3, %v5716_v53  ;;  %v5764_v24 = vld [vmem:[#allocation13 + $0xe20] sm:$0xff]  ;;  %v5765_v33 = vld [vmem:[#allocation13 + $0xe28] sm:$0xff]  ;;  %v10379_v1 = vcombine.low %v5752_v54, %v5756_v52 }
 0x475   : > { %8664 = vmatprep.subr.bf16.mxu1 %v10286_v22  ;;  %v10342_v22 = vcombine.high %v5713_v27, %v5717_v32 }
 0x477   : > { %8493 = vmatpush1.bf16.msra.mxu0 %v10283_v31  ;;  %v10339_v31 = vcombine.low %v5712_v3, %v5716_v53  ;;  %v5768_v53 = vld [vmem:[#allocation13 + $0xe40] sm:$0xff] }
 0x478   : > { %8665 = vmatpush1.bf16.msra.mxu1 %v10285_v25  ;;  %8494 = vmatprep.subr.bf16.mxu0 %v10292_v43  ;;  %v10341_v25 = vcombine.low %v5713_v27, %v5717_v32  ;;  %v10348_v43 = vcombine.high %v5720_v60, %v5724_v50  ;;  %v5769_v27 = vld [vmem:[#allocation13 + $0xe48] sm:$0xff] }
 0x479   : > { %8666 = vmatprep.subr.bf16.mxu1 %v10294_v61  ;;  %v10350_v61 = vcombine.high %v5721_v44, %v5725_v4  ;;  %v5773_v32 = vld [vmem:[#allocation13 + $0xe68] sm:$0xff] }
 0x47b   : > { %8495 = vmatpush1.bf16.msra.mxu0 %v10291_v58  ;;  %v10347_v58 = vcombine.low %v5720_v60, %v5724_v50  ;;  %v5776_v60 = vld [vmem:[#allocation13 + $0xe80] sm:$0xff] }
 0x47c   : > { %8667 = vmatpush1.bf16.msra.mxu1 %v10293_v40  ;;  %8496 = vmatprep.subr.bf16.mxu0 %v10300_v15  ;;  %v10349_v40 = vcombine.low %v5721_v44, %v5725_v4  ;;  %v10356_v15 = vcombine.high %v5728_v35, %v5732_v23  ;;  %v5780_v50 = vld [vmem:[#allocation13 + $0xea0] sm:$0xff]  ;;  %v5777_v44 = vld [vmem:[#allocation13 + $0xe88] sm:$0xff] }
 0x47d   : > { %8668 = vmatprep.subr.bf16.mxu1 %v10302_v30  ;;  %v10358_v30 = vcombine.high %v5729_v19, %v5733_v62  ;;  %v5781_v4 = vld [vmem:[#allocation13 + $0xea8] sm:$0xff] }
 0x47f   : > { %8497 = vmatpush1.bf16.msra.mxu0 %v10299_v7  ;;  %v10355_v7 = vcombine.low %v5728_v35, %v5732_v23  ;;  %v5784_v35 = vld [vmem:[#allocation13 + $0xec0] sm:$0xff] }
 0x480   : > { %8669 = vmatpush1.bf16.msra.mxu1 %v10301_v29  ;;  %8498 = vmatprep.subr.bf16.mxu0 %v10308_v34  ;;  %v10357_v29 = vcombine.low %v5729_v19, %v5733_v62  ;;  %v10364_v34 = vcombine.high %v5736_v42, %v5740_v47  ;;  %v5788_v23 = vld [vmem:[#allocation13 + $0xee0] sm:$0xff]  ;;  %v5785_v19 = vld [vmem:[#allocation13 + $0xec8] sm:$0xff] }
 0x481   : > { %8670 = vmatprep.subr.bf16.mxu1 %v10310_v2  ;;  %v10366_v2 = vcombine.high %v5737_v12, %v5741_v48  ;;  %v5789_v62 = vld [vmem:[#allocation13 + $0xee8] sm:$0xff] }
 0x483   : > { %8499 = vmatpush1.bf16.msra.mxu0 %v10307_v28  ;;  %v10363_v28 = vcombine.low %v5736_v42, %v5740_v47  ;;  %v5792_v42 = vld [vmem:[#allocation13 + $0xf00] sm:$0xff] }
 0x484   : > { %8671 = vmatpush1.bf16.msra.mxu1 %v10309_v57  ;;  %8500 = vmatprep.subr.bf16.mxu0 %v10316_v17  ;;  %v10365_v57 = vcombine.low %v5737_v12, %v5741_v48  ;;  %v10372_v17 = vcombine.high %v5744_v49, %v5748_v8  ;;  %v5796_v47 = vld [vmem:[#allocation13 + $0xf20] sm:$0xff]  ;;  %v5793_v12 = vld [vmem:[#allocation13 + $0xf08] sm:$0xff] }
 0x485   : > { %8672 = vmatprep.subr.bf16.mxu1 %v10318_v9  ;;  %v10374_v9 = vcombine.high %v5745_v10, %v5749_v0  ;;  %v5797_v48 = vld [vmem:[#allocation13 + $0xf28] sm:$0xff] }
 0x487   : > { %8501 = vmatpush1.bf16.msra.mxu0 %v10315_v13  ;;  %v10371_v13 = vcombine.low %v5744_v49, %v5748_v8  ;;  %v5800_v49 = vld [vmem:[#allocation13 + $0xf40] sm:$0xff] }
 0x488   : > { %8673 = vmatpush1.bf16.msra.mxu1 %v10317_v56  ;;  %8513 = vmatprep.subr.bf16.mxu0 %v10324_v45  ;;  %v10373_v56 = vcombine.low %v5745_v10, %v5749_v0  ;;  %v10380_v45 = vcombine.high %v5752_v54, %v5756_v52  ;;  %v5804_v8 = vld [vmem:[#allocation13 + $0xf60] sm:$0xff]  ;;  %v5801_v10 = vld [vmem:[#allocation13 + $0xf48] sm:$0xff] }
 0x489   : > { %8685 = vmatprep.subr.bf16.mxu1 %v10326_v38  ;;  %v10382_v38 = vcombine.high %v5753_v21, %v5757_v39  ;;  %v5805_v0 = vld [vmem:[#allocation13 + $0xf68] sm:$0xff]  ;;  %v5808_v54 = vld [vmem:[#allocation13 + $0xf80] sm:$0xff] }
 0x48a   : > { %8503 = vmatmul.mubr.bf16.vlgmr.msra.gmra.mrb[32].mxu0 %v11813_v37  ;;  %v5812_v52 = vld [vmem:[#allocation13 + $0xfa0] sm:$0xff] }
 0x48b   : > { %8675 = vmatmul.mubr.bf16.vlgmr.msra.gmra.mrb[32].mxu1 %v11813_v37  ;;  %8514 = vmatpush1.bf16.msra.mxu0 %v10323_v26  ;;  %v5761_v26 = vld [vmem:[#allocation13 + $0xe08] sm:$0xff] }
 0x48c   : > { %8545 = vmatprep.mubr.bf16.mxu0 %v11820_v46  ;;  %8686 = vmatpush1.bf16.msra.mxu1 %v10325_v51  ;;  %v10381_v51 = vcombine.low %v5753_v21, %v5757_v39  ;;  %v10390_v3 = vcombine.high %v5761_v26, %v5765_v33  ;;  %v5809_v21 = vld [vmem:[#allocation13 + $0xf88] sm:$0xff] }
 0x48d   : > { %8717 = vmatprep.mubr.bf16.mxu1 %v11820_v46  ;;  %8515 = vmatprep.subr.bf16.mxu0 %v10332_v11  ;;  %v10388_v11 = vcombine.high %v5760_v14, %v5764_v24  ;;  %v5813_v39 = vld [vmem:[#allocation13 + $0xfa8] sm:$0xff] }
 0x48e   : > { %8687 = vmatprep.subr.bf16.mxu1 %v10334_v18  ;;  %v5772_v18 = vld [vmem:[#allocation13 + $0xe60] sm:$0xff] }
 0x48f   : > { %8516 = vmatpush1.bf16.msra.mxu0 %v10331_v55  ;;  %v10387_v55 = vcombine.low %v5760_v14, %v5764_v24  ;;  %v5816_v14 = vld [vmem:[#allocation13 + $0xfc0] sm:$0xff] }
 0x490   : > { %8688 = vmatpush1.bf16.msra.mxu1 %v10333_v16  ;;  %8517 = vmatprep.subr.bf16.mxu0 %v10340_v6  ;;  %v10389_v16 = vcombine.low %v5761_v26, %v5765_v33  ;;  %v10396_v6 = vcombine.high %v5768_v53, %v5772_v18  ;;  %v5820_v24 = vld [vmem:[#allocation13 + $0xfe0] sm:$0xff]  ;;  %v5817_v26 = vld [vmem:[#allocation13 + $0xfc8] sm:$0xff] }
 0x491   : > { %8689 = vmatprep.subr.bf16.mxu1 %v10342_v22  ;;  %v10398_v22 = vcombine.high %v5769_v27, %v5773_v32  ;;  %v5821_v33 = vld [vmem:[#allocation13 + $0xfe8] sm:$0xff] }
 0x493   : > { %8518 = vmatpush1.bf16.msra.mxu0 %v10339_v31  ;;  %v10395_v31 = vcombine.low %v5768_v53, %v5772_v18  ;;  %v5314_v53 = vld [vmem:[#allocation13 + $0x10] sm:$0xff] }
 0x494   : > { %8690 = vmatpush1.bf16.msra.mxu1 %v10341_v25  ;;  %8519 = vmatprep.subr.bf16.mxu0 %v10348_v43  ;;  %v10397_v25 = vcombine.low %v5769_v27, %v5773_v32  ;;  %v10404_v43 = vcombine.high %v5776_v60, %v5780_v50  ;;  %v5318_v18 = vld [vmem:[#allocation13 + $0x30] sm:$0xff]  ;;  %v5315_v27 = vld [vmem:[#allocation13 + $0x18] sm:$0xff] }
 0x495   : > { %8691 = vmatprep.subr.bf16.mxu1 %v10350_v61  ;;  %v10406_v61 = vcombine.high %v5777_v44, %v5781_v4  ;;  %v5319_v32 = vld [vmem:[#allocation13 + $0x38] sm:$0xff] }
 0x497   : > { %8520 = vmatpush1.bf16.msra.mxu0 %v10347_v58  ;;  %v10403_v58 = vcombine.low %v5776_v60, %v5780_v50  ;;  %v5322_v60 = vld [vmem:[#allocation13 + $0x50] sm:$0xff] }
 0x498   : > { %8692 = vmatpush1.bf16.msra.mxu1 %v10349_v40  ;;  %8521 = vmatprep.subr.bf16.mxu0 %v10356_v15  ;;  %v10405_v40 = vcombine.low %v5777_v44, %v5781_v4  ;;  %v10412_v15 = vcombine.high %v5784_v35, %v5788_v23  ;;  %v5326_v50 = vld [vmem:[#allocation13 + $0x70] sm:$0xff]  ;;  %v9943_v44 = vcombine.low %v5314_v53, %v5318_v18  ;;  %v5323_v4 = vld [vmem:[#allocation13 + $0x58] sm:$0xff] }
 0x499   : > { %8693 = vmatprep.subr.bf16.mxu1 %v10358_v30  ;;  %v10414_v30 = vcombine.high %v5785_v19, %v5789_v62 }
 0x49b   : > { %8522 = vmatpush1.bf16.msra.mxu0 %v10355_v7  ;;  %v10411_v7 = vcombine.low %v5784_v35, %v5788_v23  ;;  %v5334_v35 = vld [vmem:[#allocation13 + $0xb0] sm:$0xff] }
 0x49c   : > { %8694 = vmatpush1.bf16.msra.mxu1 %v10357_v29  ;;  %8523 = vmatprep.subr.bf16.mxu0 %v10364_v34  ;;  %v10413_v29 = vcombine.low %v5785_v19, %v5789_v62  ;;  %v10420_v34 = vcombine.high %v5792_v42, %v5796_v47  ;;  %v5331_v19 = vld [vmem:[#allocation13 + $0x98] sm:$0xff] }
 0x49d   : > { %8695 = vmatprep.subr.bf16.mxu1 %v10366_v2  ;;  %v10422_v2 = vcombine.high %v5793_v12, %v5797_v48  ;;  %v5335_v62 = vld [vmem:[#allocation13 + $0xb8] sm:$0xff] }
 0x49f   : > { %8524 = vmatpush1.bf16.msra.mxu0 %v10363_v28  ;;  %v10419_v28 = vcombine.low %v5792_v42, %v5796_v47  ;;  %v5338_v42 = vld [vmem:[#allocation13 + $0xd0] sm:$0xff] }
 0x4a0   : > { %8696 = vmatpush1.bf16.msra.mxu1 %v10365_v57  ;;  %8525 = vmatprep.subr.bf16.mxu0 %v10372_v17  ;;  %v10421_v57 = vcombine.low %v5793_v12, %v5797_v48  ;;  %v10428_v17 = vcombine.high %v5800_v49, %v5804_v8  ;;  %v5342_v47 = vld [vmem:[#allocation13 + $0xf0] sm:$0xff]  ;;  %v5339_v12 = vld [vmem:[#allocation13 + $0xd8] sm:$0xff] }
 0x4a1   : > { %8697 = vmatprep.subr.bf16.mxu1 %v10374_v9  ;;  %v10430_v9 = vcombine.high %v5801_v10, %v5805_v0  ;;  %v5343_v48 = vld [vmem:[#allocation13 + $0xf8] sm:$0xff] }
 0x4a3   : > { %8526 = vmatpush1.bf16.msra.mxu0 %v10371_v13  ;;  %v10427_v13 = vcombine.low %v5800_v49, %v5804_v8  ;;  %v5346_v49 = vld [vmem:[#allocation13 + $0x110] sm:$0xff] }
 0x4a4   : > { %8698 = vmatpush1.bf16.msra.mxu1 %v10373_v56  ;;  %8527 = vmatprep.subr.bf16.mxu0 %v10380_v45  ;;  %v10429_v56 = vcombine.low %v5801_v10, %v5805_v0  ;;  %v10436_v45 = vcombine.high %v5808_v54, %v5812_v52  ;;  %v5350_v8 = vld [vmem:[#allocation13 + $0x130] sm:$0xff]  ;;  %v5347_v10 = vld [vmem:[#allocation13 + $0x118] sm:$0xff] }
 0x4a5   : > { %8699 = vmatprep.subr.bf16.mxu1 %v10382_v38  ;;  %v10438_v38 = vcombine.high %v5809_v21, %v5813_v39  ;;  %v5351_v0 = vld [vmem:[#allocation13 + $0x138] sm:$0xff] }
 0x4a7   : > { %8528 = vmatpush1.bf16.msra.mxu0 %v10379_v1  ;;  %v10435_v1 = vcombine.low %v5808_v54, %v5812_v52  ;;  %v5358_v54 = vld [vmem:[#allocation13 + $0x170] sm:$0xff]  ;;  %v5355_v52 = vld [vmem:[#allocation13 + $0x158] sm:$0xff] }
 0x4a8   : > { %8700 = vmatpush1.bf16.msra.mxu1 %v10381_v51  ;;  %8529 = vmatprep.subr.bf16.mxu0 %v10388_v11  ;;  %v10437_v51 = vcombine.low %v5809_v21, %v5813_v39  ;;  %v10444_v11 = vcombine.high %v5816_v14, %v5820_v24  ;;  %v5359_v21 = vld [vmem:[#allocation13 + $0x178] sm:$0xff]  ;;  %v9975_v39 = vcombine.low %v5346_v49, %v5350_v8 }
 0x4a9   : > { %8701 = vmatprep.subr.bf16.mxu1 %v10390_v3  ;;  %v10446_v3 = vcombine.high %v5817_v26, %v5821_v33 }
 0x4ab   : > { %8530 = vmatpush1.bf16.msra.mxu0 %v10387_v55  ;;  %v10443_v55 = vcombine.low %v5816_v14, %v5820_v24  ;;  %v5366_v14 = vld [vmem:[#allocation13 + $0x1b0] sm:$0xff]  ;;  %v5363_v24 = vld [vmem:[#allocation13 + $0x198] sm:$0xff] }
 0x4ac   : > { %8702 = vmatpush1.bf16.msra.mxu1 %v10389_v16  ;;  %8531 = vmatprep.subr.bf16.mxu0 %v10396_v6  ;;  %v10445_v16 = vcombine.low %v5817_v26, %v5821_v33  ;;  %v9944_v6 = vcombine.high %v5314_v53, %v5318_v18  ;;  %v5367_v26 = vld [vmem:[#allocation13 + $0x1b8] sm:$0xff]  ;;  %v5374_v53 = vld [vmem:[#allocation13 + $0x1f0] sm:$0xff] }
 0x4ad   : > { %8703 = vmatprep.subr.bf16.mxu1 %v10398_v22  ;;  %v9946_v22 = vcombine.high %v5315_v27, %v5319_v32  ;;  %v5371_v18 = vld [vmem:[#allocation13 + $0x1d8] sm:$0xff] }
 0x4af   : > { %8532 = vmatpush1.bf16.msra.mxu0 %v10395_v31  ;;  %v5327_v31 = vld [vmem:[#allocation13 + $0x78] sm:$0xff] }
 0x4b0   : > { %8704 = vmatpush1.bf16.msra.mxu1 %v10397_v25  ;;  %8533 = vmatprep.subr.bf16.mxu0 %v10404_v43  ;;  %v9945_v25 = vcombine.low %v5315_v27, %v5319_v32  ;;  %v9952_v43 = vcombine.high %v5322_v60, %v5326_v50  ;;  %v9954_v23 = vcombine.high %v5323_v4, %v5327_v31  ;;  %v5375_v27 = vld [vmem:[#allocation13 + $0x1f8] sm:$0xff] }
 0x4b1   : > { %8705 = vmatprep.subr.bf16.mxu1 %v10406_v61  ;;  %v5330_v61 = vld [vmem:[#allocation13 + $0x90] sm:$0xff] }
 0x4b3   : > { %8534 = vmatpush1.bf16.msra.mxu0 %v10403_v58  ;;  %v9951_v58 = vcombine.low %v5322_v60, %v5326_v50  ;;  %v5382_v60 = vld [vmem:[#allocation13 + $0x230] sm:$0xff]  ;;  %v5379_v50 = vld [vmem:[#allocation13 + $0x218] sm:$0xff] }
 0x4b4   : > { %8706 = vmatpush1.bf16.msra.mxu1 %v10405_v40  ;;  %8535 = vmatprep.subr.bf16.mxu0 %v10412_v15  ;;  %v9953_v40 = vcombine.low %v5323_v4, %v5327_v31  ;;  %v9960_v15 = vcombine.high %v5330_v61, %v5334_v35  ;;  %v10001_v31 = vcombine.low %v5371_v18, %v5375_v27 }
 0x4b5   : > { %8707 = vmatprep.subr.bf16.mxu1 %v10414_v30  ;;  %v9962_v30 = vcombine.high %v5331_v19, %v5335_v62 }
 0x4b7   : > { %8536 = vmatpush1.bf16.msra.mxu0 %v10411_v7  ;;  %v9959_v7 = vcombine.low %v5330_v61, %v5334_v35  ;;  %v5386_v61 = vld [vmem:[#allocation13 + $0x250] sm:$0xff] }
 0x4b8   : > { %8708 = vmatpush1.bf16.msra.mxu1 %v10413_v29  ;;  %8537 = vmatprep.subr.bf16.mxu0 %v10420_v34  ;;  %v9961_v29 = vcombine.low %v5331_v19, %v5335_v62  ;;  %v9968_v34 = vcombine.high %v5338_v42, %v5342_v47  ;;  %v5390_v35 = vld [vmem:[#allocation13 + $0x270] sm:$0xff]  ;;  %v5391_v19 = vld [vmem:[#allocation13 + $0x278] sm:$0xff] }
 0x4b9   : > { %8709 = vmatprep.subr.bf16.mxu1 %v10422_v2  ;;  %v9970_v2 = vcombine.high %v5339_v12, %v5343_v48 }
 0x4bb   : > { %8538 = vmatpush1.bf16.msra.mxu0 %v10419_v28  ;;  %v9969_v28 = vcombine.low %v5339_v12, %v5343_v48  ;;  %v5399_v12 = vld [vmem:[#allocation13 + $0x2b8] sm:$0xff]  ;;  %v10015_v48 = vcombine.low %v5386_v61, %v5390_v35 }
 0x4bc   : > { %8710 = vmatpush1.bf16.msra.mxu1 %v10421_v57  ;;  %8539 = vmatprep.subr.bf16.mxu0 %v10428_v17  ;;  %v9976_v57 = vcombine.high %v5346_v49, %v5350_v8  ;;  %v9978_v17 = vcombine.high %v5347_v10, %v5351_v0  ;;  %v5406_v49 = vld [vmem:[#allocation13 + $0x2f0] sm:$0xff]  ;;  %v5403_v8 = vld [vmem:[#allocation13 + $0x2d8] sm:$0xff] }
 0x4bd   : > { %8711 = vmatprep.subr.bf16.mxu1 %v10430_v9  ;;  %v5354_v9 = vld [vmem:[#allocation13 + $0x150] sm:$0xff] }
 0x4be   : > { %v9983_v33 = vcombine.low %v5354_v9, %v5358_v54 }
 0x4bf   : > { %8540 = vmatpush1.bf16.msra.mxu0 %v10427_v13  ;;  %v9977_v13 = vcombine.low %v5347_v10, %v5351_v0  ;;  %v5407_v10 = vld [vmem:[#allocation13 + $0x2f8] sm:$0xff] }
 0x4c0   : > { %8712 = vmatpush1.bf16.msra.mxu1 %v10429_v56  ;;  %8541 = vmatprep.subr.bf16.mxu0 %v10436_v45  ;;  %v9984_v56 = vcombine.high %v5354_v9, %v5358_v54  ;;  %v9986_v45 = vcombine.high %v5355_v52, %v5359_v21  ;;  %v5414_v9 = vld [vmem:[#allocation13 + $0x330] sm:$0xff]  ;;  %v5411_v54 = vld [vmem:[#allocation13 + $0x318] sm:$0xff] }
 0x4c1   : > { %8713 = vmatprep.subr.bf16.mxu1 %v10438_v38  ;;  %v5362_v38 = vld [vmem:[#allocation13 + $0x190] sm:$0xff] }
 0x4c2   : > { %v9991_v32 = vcombine.low %v5362_v38, %v5366_v14 }
 0x4c3   : > { %8542 = vmatpush1.bf16.msra.mxu0 %v10435_v1  ;;  %v9985_v1 = vcombine.low %v5355_v52, %v5359_v21  ;;  %v5415_v52 = vld [vmem:[#allocation13 + $0x338] sm:$0xff] }
 0x4c4   : > { %8714 = vmatpush1.bf16.msra.mxu1 %v10437_v51  ;;  %8543 = vmatprep.subr.bf16.mxu0 %v10444_v11  ;;  %v9992_v51 = vcombine.high %v5362_v38, %v5366_v14  ;;  %v9994_v11 = vcombine.high %v5363_v24, %v5367_v26  ;;  %v5422_v38 = vld [vmem:[#allocation13 + $0x370] sm:$0xff]  ;;  %v5419_v14 = vld [vmem:[#allocation13 + $0x358] sm:$0xff] }
 0x4c5   : > { %8715 = vmatprep.subr.bf16.mxu1 %v10446_v3  ;;  %v5370_v3 = vld [vmem:[#allocation13 + $0x1d0] sm:$0xff] }
 0x4c6   : > { %v9999_v4 = vcombine.low %v5370_v3, %v5374_v53 }
 0x4c7   : > { %8544 = vmatpush1.bf16.msra.mxu0 %v10443_v55  ;;  %v9993_v55 = vcombine.low %v5363_v24, %v5367_v26  ;;  %v5423_v24 = vld [vmem:[#allocation13 + $0x378] sm:$0xff] }
 0x4c8   : > { %8716 = vmatpush1.bf16.msra.mxu1 %v10445_v16  ;;  %8728 = vmatprep.subr.bf16.mxu0 %v9944_v6  ;;  %v10000_v16 = vcombine.high %v5370_v3, %v5374_v53  ;;  %v10002_v6 = vcombine.high %v5371_v18, %v5375_v27  ;;  %v5430_v3 = vld [vmem:[#allocation13 + $0x3b0] sm:$0xff]  ;;  %v5427_v53 = vld [vmem:[#allocation13 + $0x398] sm:$0xff] }
 0x4c9   : > { %8900 = vmatprep.subr.bf16.mxu1 %v9946_v22  ;;  %v5378_v22 = vld [vmem:[#allocation13 + $0x210] sm:$0xff]  ;;  %v5431_v18 = vld [vmem:[#allocation13 + $0x3b8] sm:$0xff] }
 0x4ca   : > { %8546 = vmatmul.mubr.bf16.vlgmr.msra.gmra.mrb[32].mxu0 %v11816_v59  ;;  %v10007_v62 = vcombine.low %v5378_v22, %v5382_v60 }
 0x4cb   : > { %8718 = vmatmul.mubr.bf16.vlgmr.msra.gmra.mrb[32].mxu1 %v11816_v59  ;;  %8729 = vmatpush1.bf16.msra.mxu0 %v9943_v44  ;;  %v5383_v44 = vld [vmem:[#allocation13 + $0x238] sm:$0xff] }
 0x4cc   : > { %8760 = vmatprep.mubr.bf16.mxu0 %v11790_v36  ;;  %8901 = vmatpush1.bf16.msra.mxu1 %v9945_v25  ;;  %v10008_v25 = vcombine.high %v5378_v22, %v5382_v60  ;;  %v5438_v22 = vld [vmem:[#allocation13 + $0x3f0] sm:$0xff]  ;;  %v5435_v60 = vld [vmem:[#allocation13 + $0x3d8] sm:$0xff] }
 0x4cd   : > { %8932 = vmatprep.mubr.bf16.mxu1 %v11790_v36  ;;  %8730 = vmatprep.subr.bf16.mxu0 %v9952_v43  ;;  %v9967_v36 = vcombine.low %v5338_v42, %v5342_v47  ;;  %v10010_v43 = vcombine.high %v5379_v50, %v5383_v44  ;;  %v5398_v42 = vld [vmem:[#allocation13 + $0x2b0] sm:$0xff]  ;;  %v5395_v47 = vld [vmem:[#allocation13 + $0x298] sm:$0xff] }
 0x4ce   : > { %8902 = vmatprep.subr.bf16.mxu1 %v9954_v23  ;;  %v5387_v23 = vld [vmem:[#allocation13 + $0x258] sm:$0xff] }
 0x4cf   : > { %8731 = vmatpush1.bf16.msra.mxu0 %v9951_v58  ;;  %v10009_v58 = vcombine.low %v5379_v50, %v5383_v44  ;;  %v5439_v50 = vld [vmem:[#allocation13 + $0x3f8] sm:$0xff] }
 0x4d0   : > { %8903 = vmatpush1.bf16.msra.mxu1 %v9953_v40  ;;  %8732 = vmatprep.subr.bf16.mxu0 %v9960_v15  ;;  %v10016_v40 = vcombine.high %v5386_v61, %v5390_v35  ;;  %v10018_v15 = vcombine.high %v5387_v23, %v5391_v19  ;;  %v5446_v61 = vld [vmem:[#allocation13 + $0x430] sm:$0xff]  ;;  %v5443_v35 = vld [vmem:[#allocation13 + $0x418] sm:$0xff] }
 0x4d1   : > { %8904 = vmatprep.subr.bf16.mxu1 %v9962_v30  ;;  %v5394_v30 = vld [vmem:[#allocation13 + $0x290] sm:$0xff] }
 0x4d2   : > { %v10023_v0 = vcombine.low %v5394_v30, %v5398_v42 }
 0x4d3   : > { %8733 = vmatpush1.bf16.msra.mxu0 %v9959_v7  ;;  %v10017_v7 = vcombine.low %v5387_v23, %v5391_v19  ;;  %v5447_v23 = vld [vmem:[#allocation13 + $0x438] sm:$0xff] }
 0x4d4   : > { %8905 = vmatpush1.bf16.msra.mxu1 %v9961_v29  ;;  %8734 = vmatprep.subr.bf16.mxu0 %v9968_v34  ;;  %v10024_v29 = vcombine.high %v5394_v30, %v5398_v42  ;;  %v10026_v34 = vcombine.high %v5395_v47, %v5399_v12  ;;  %v5454_v30 = vld [vmem:[#allocation13 + $0x470] sm:$0xff] }
 0x4d5   : > { %8906 = vmatprep.subr.bf16.mxu1 %v9970_v2  ;;  %v5402_v2 = vld [vmem:[#allocation13 + $0x2d0] sm:$0xff] }
 0x4d6   : > { %v10031_v21 = vcombine.low %v5402_v2, %v5406_v49 }
 0x4d7   : > { %8735 = vmatpush1.bf16.msra.mxu0 %v9967_v36  ;;  %v10025_v36 = vcombine.low %v5395_v47, %v5399_v12  ;;  %v5451_v47 = vld [vmem:[#allocation13 + $0x458] sm:$0xff] }
 0x4d8   : > { %8907 = vmatpush1.bf16.msra.mxu1 %v9969_v28  ;;  %8736 = vmatprep.subr.bf16.mxu0 %v9976_v57  ;;  %v10032_v28 = vcombine.high %v5402_v2, %v5406_v49  ;;  %v10034_v57 = vcombine.high %v5403_v8, %v5407_v10  ;;  %v5455_v12 = vld [vmem:[#allocation13 + $0x478] sm:$0xff] }
 0x4d9   : > { %8908 = vmatprep.subr.bf16.mxu1 %v9978_v17  ;;  %v5410_v17 = vld [vmem:[#allocation13 + $0x310] sm:$0xff]  ;;  %v10082_v2 = vcombine.high %v5451_v47, %v5455_v12  ;;  %v5459_v49 = vld [vmem:[#allocation13 + $0x498] sm:$0xff] }
 0x4da   : > { %v10039_v26 = vcombine.low %v5410_v17, %v5414_v9 }
 0x4db   : > { %8737 = vmatpush1.bf16.msra.mxu0 %v9975_v39  ;;  %v10033_v39 = vcombine.low %v5403_v8, %v5407_v10  ;;  %v5463_v8 = vld [vmem:[#allocation13 + $0x4b8] sm:$0xff] }
 0x4dc   : > { %8909 = vmatpush1.bf16.msra.mxu1 %v9977_v13  ;;  %8738 = vmatprep.subr.bf16.mxu0 %v9984_v56  ;;  %v10040_v13 = vcombine.high %v5410_v17, %v5414_v9  ;;  %v10042_v56 = vcombine.high %v5411_v54, %v5415_v52  ;;  %v5470_v17 = vld [vmem:[#allocation13 + $0x4f0] sm:$0xff]  ;;  %v5467_v9 = vld [vmem:[#allocation13 + $0x4d8] sm:$0xff] }
 0x4dd   : > { %8910 = vmatprep.subr.bf16.mxu1 %v9986_v45  ;;  %v5418_v45 = vld [vmem:[#allocation13 + $0x350] sm:$0xff] }
 0x4de   : > { %v10047_v27 = vcombine.low %v5418_v45, %v5422_v38 }
 0x4df   : > { %8739 = vmatpush1.bf16.msra.mxu0 %v9983_v33  ;;  %v10041_v33 = vcombine.low %v5411_v54, %v5415_v52  ;;  %v5471_v54 = vld [vmem:[#allocation13 + $0x4f8] sm:$0xff] }
 0x4e0   : > { %8911 = vmatpush1.bf16.msra.mxu1 %v9985_v1  ;;  %8740 = vmatprep.subr.bf16.mxu0 %v9992_v51  ;;  %v10048_v1 = vcombine.high %v5418_v45, %v5422_v38  ;;  %v10050_v51 = vcombine.high %v5419_v14, %v5423_v24  ;;  %v5475_v45 = vld [vmem:[#allocation13 + $0x518] sm:$0xff] }
 0x4e1   : > { %8912 = vmatprep.subr.bf16.mxu1 %v9994_v11  ;;  %v5426_v11 = vld [vmem:[#allocation13 + $0x390] sm:$0xff]  ;;  %v5479_v38 = vld [vmem:[#allocation13 + $0x538] sm:$0xff] }
 0x4e2   : > { %v10055_v44 = vcombine.low %v5426_v11, %v5430_v3 }
 0x4e3   : > { %8741 = vmatpush1.bf16.msra.mxu0 %v9991_v32  ;;  %v10049_v32 = vcombine.low %v5419_v14, %v5423_v24  ;;  %v10097_v14 = vcombine.low %v5467_v9, %v5471_v54 }
 0x4e4   : > { %8913 = vmatpush1.bf16.msra.mxu1 %v9993_v55  ;;  %8742 = vmatprep.subr.bf16.mxu0 %v10000_v16  ;;  %v10056_v55 = vcombine.high %v5426_v11, %v5430_v3  ;;  %v10058_v16 = vcombine.high %v5427_v53, %v5431_v18  ;;  %v5487_v11 = vld [vmem:[#allocation13 + $0x578] sm:$0xff] }
 0x4e5   : > { %8914 = vmatprep.subr.bf16.mxu1 %v10002_v6  ;;  %v5434_v6 = vld [vmem:[#allocation13 + $0x3d0] sm:$0xff] }
 0x4e6   : > { %v10063_v19 = vcombine.low %v5434_v6, %v5438_v22 }
 0x4e7   : > { %8743 = vmatpush1.bf16.msra.mxu0 %v9999_v4  ;;  %v10057_v4 = vcombine.low %v5427_v53, %v5431_v18  ;;  %v10105_v53 = vcombine.low %v5475_v45, %v5479_v38 }
 0x4e8   : > { %8915 = vmatpush1.bf16.msra.mxu1 %v10001_v31  ;;  %8744 = vmatprep.subr.bf16.mxu0 %v10008_v25  ;;  %v10064_v31 = vcombine.high %v5434_v6, %v5438_v22  ;;  %v10066_v25 = vcombine.high %v5435_v60, %v5439_v50  ;;  %v5495_v6 = vld [vmem:[#allocation13 + $0x5b8] sm:$0xff] }
 0x4e9   : > { %8916 = vmatprep.subr.bf16.mxu1 %v10010_v43  ;;  %v5442_v43 = vld [vmem:[#allocation13 + $0x410] sm:$0xff] }
 0x4ea   : > { %v10071_v42 = vcombine.low %v5442_v43, %v5446_v61 }
 0x4eb   : > { %8745 = vmatpush1.bf16.msra.mxu0 %v10007_v62  ;;  %v10065_v62 = vcombine.low %v5435_v60, %v5439_v50 }
 0x4ec   : > { %8917 = vmatpush1.bf16.msra.mxu1 %v10009_v58  ;;  %8746 = vmatprep.subr.bf16.mxu0 %v10016_v40  ;;  %v10072_v58 = vcombine.high %v5442_v43, %v5446_v61  ;;  %v10074_v40 = vcombine.high %v5443_v35, %v5447_v23  ;;  %v5503_v43 = vld [vmem:[#allocation13 + $0x5f8] sm:$0xff] }
 0x4ed   : > { %8918 = vmatprep.subr.bf16.mxu1 %v10018_v15  ;;  %v5450_v15 = vld [vmem:[#allocation13 + $0x450] sm:$0xff] }
 0x4ee   : > { %v10079_v10 = vcombine.low %v5450_v15, %v5454_v30 }
 0x4ef   : > { %8747 = vmatpush1.bf16.msra.mxu0 %v10015_v48  ;;  %v10073_v48 = vcombine.low %v5443_v35, %v5447_v23 }
 0x4f0   : > { %8919 = vmatpush1.bf16.msra.mxu1 %v10017_v7  ;;  %8748 = vmatprep.subr.bf16.mxu0 %v10024_v29  ;;  %v10080_v7 = vcombine.high %v5450_v15, %v5454_v30  ;;  %v5458_v29 = vld [vmem:[#allocation13 + $0x490] sm:$0xff]  ;;  %v5511_v15 = vld [vmem:[#allocation13 + $0x638] sm:$0xff] }
 0x4f1   : > { %8920 = vmatprep.subr.bf16.mxu1 %v10026_v34  ;;  %v5462_v34 = vld [vmem:[#allocation13 + $0x4b0] sm:$0xff] }
 0x4f2   : > { %v10087_v52 = vcombine.low %v5458_v29, %v5462_v34 }
 0x4f3   : > { %8749 = vmatpush1.bf16.msra.mxu0 %v10023_v0  ;;  %v10081_v0 = vcombine.low %v5451_v47, %v5455_v12 }
 0x4f4   : > { %8921 = vmatpush1.bf16.msra.mxu1 %v10025_v36  ;;  %8750 = vmatprep.subr.bf16.mxu0 %v10032_v28  ;;  %v10088_v36 = vcombine.high %v5458_v29, %v5462_v34  ;;  %v10090_v28 = vcombine.high %v5459_v49, %v5463_v8  ;;  %v5515_v29 = vld [vmem:[#allocation13 + $0x658] sm:$0xff] }
 0x4f5   : > { %8922 = vmatprep.subr.bf16.mxu1 %v10034_v57  ;;  %v5466_v57 = vld [vmem:[#allocation13 + $0x4d0] sm:$0xff]  ;;  %v5519_v34 = vld [vmem:[#allocation13 + $0x678] sm:$0xff] }
 0x4f7   : > { %8751 = vmatpush1.bf16.msra.mxu0 %v10031_v21  ;;  %v10096_v21 = vcombine.high %v5466_v57, %v5470_v17 }
 0x4f8   : > { %8923 = vmatpush1.bf16.msra.mxu1 %v10033_v39  ;;  %8752 = vmatprep.subr.bf16.mxu0 %v10040_v13  ;;  %v10098_v39 = vcombine.high %v5467_v9, %v5471_v54  ;;  %v5474_v13 = vld [vmem:[#allocation13 + $0x510] sm:$0xff]  ;;  %v10145_v9 = vcombine.low %v5515_v29, %v5519_v34 }
 0x4f9   : > { %8924 = vmatprep.subr.bf16.mxu1 %v10042_v56  ;;  %v5478_v56 = vld [vmem:[#allocation13 + $0x530] sm:$0xff] }
 0x4fa   : > { %v10104_v24 = vcombine.high %v5474_v13, %v5478_v56  ;;  %v10103_v3 = vcombine.low %v5474_v13, %v5478_v56  ;;  %v5535_v13 = vld [vmem:[#allocation13 + $0x6f8] sm:$0xff] }
 0x4fb   : > { %8753 = vmatpush1.bf16.msra.mxu0 %v10039_v26  ;;  %v10106_v26 = vcombine.high %v5475_v45, %v5479_v38 }
 0x4fc   : > { %8925 = vmatpush1.bf16.msra.mxu1 %v10041_v33  ;;  %8754 = vmatprep.subr.bf16.mxu0 %v10048_v1  ;;  %v5482_v33 = vld [vmem:[#allocation13 + $0x550] sm:$0xff] }
 0x4fd   : > { %8926 = vmatprep.subr.bf16.mxu1 %v10050_v51  ;;  %v5486_v1 = vld [vmem:[#allocation13 + $0x570] sm:$0xff]  ;;  %v5483_v51 = vld [vmem:[#allocation13 + $0x558] sm:$0xff] }
 0x4fe   : > { %v10112_v18 = vcombine.high %v5482_v33, %v5486_v1  ;;  %v10111_v22 = vcombine.low %v5482_v33, %v5486_v1  ;;  %v10113_v60 = vcombine.low %v5483_v51, %v5487_v11  ;;  %v5543_v33 = vld [vmem:[#allocation13 + $0x738] sm:$0xff] }
 0x4ff   : > { %8755 = vmatpush1.bf16.msra.mxu0 %v10047_v27  ;;  %v10114_v27 = vcombine.high %v5483_v51, %v5487_v11 }
 0x500   : > { %8927 = vmatpush1.bf16.msra.mxu1 %v10049_v32  ;;  %8756 = vmatprep.subr.bf16.mxu0 %v10056_v55  ;;  %v5490_v32 = vld [vmem:[#allocation13 + $0x590] sm:$0xff] }
 0x501   : > { %8928 = vmatprep.subr.bf16.mxu1 %v10058_v16  ;;  %v5494_v55 = vld [vmem:[#allocation13 + $0x5b0] sm:$0xff]  ;;  %v5491_v16 = vld [vmem:[#allocation13 + $0x598] sm:$0xff] }
 0x502   : > { %v10120_v50 = vcombine.high %v5490_v32, %v5494_v55  ;;  %v10119_v61 = vcombine.low %v5490_v32, %v5494_v55  ;;  %v10121_v35 = vcombine.low %v5491_v16, %v5495_v6  ;;  %v5551_v32 = vld [vmem:[#allocation13 + $0x778] sm:$0xff] }
 0x503   : > { %8757 = vmatpush1.bf16.msra.mxu0 %v10055_v44  ;;  %v10122_v44 = vcombine.high %v5491_v16, %v5495_v6 }
 0x504   : > { %8929 = vmatpush1.bf16.msra.mxu1 %v10057_v4  ;;  %8758 = vmatprep.subr.bf16.mxu0 %v10064_v31  ;;  %v5498_v4 = vld [vmem:[#allocation13 + $0x5d0] sm:$0xff] }
 0x505   : > { %8930 = vmatprep.subr.bf16.mxu1 %v10066_v25  ;;  %v5502_v31 = vld [vmem:[#allocation13 + $0x5f0] sm:$0xff]  ;;  %v5499_v25 = vld [vmem:[#allocation13 + $0x5d8] sm:$0xff] }
 0x506   : > { %v10128_v23 = vcombine.high %v5498_v4, %v5502_v31  ;;  %v10127_v30 = vcombine.low %v5498_v4, %v5502_v31  ;;  %v5559_v4 = vld [vmem:[#allocation13 + $0x7b8] sm:$0xff] }
 0x507   : > { %8759 = vmatpush1.bf16.msra.mxu0 %v10063_v19  ;;  %v10130_v19 = vcombine.high %v5499_v25, %v5503_v43 }
 0x508   : > { %8931 = vmatpush1.bf16.msra.mxu1 %v10065_v62  ;;  %8771 = vmatprep.subr.bf16.mxu0 %v10072_v58  ;;  %v5506_v62 = vld [vmem:[#allocation13 + $0x610] sm:$0xff] }
 0x509   : > { %8943 = vmatprep.subr.bf16.mxu1 %v10074_v40  ;;  %v5510_v58 = vld [vmem:[#allocation13 + $0x630] sm:$0xff]  ;;  %v5507_v40 = vld [vmem:[#allocation13 + $0x618] sm:$0xff] }
 0x50a   : > { %8761 = vmatmul.mubr.bf16.vlgmr.msra.gmra.mrb[36].mxu0 %v11786_v63  ;;  %v10136_v47 = vcombine.high %v5506_v62, %v5510_v58  ;;  %v10138_v12 = vcombine.high %v5507_v40, %v5511_v15 }
 0x50b   : > { %8933 = vmatmul.mubr.bf16.vlgmr.msra.gmra.mrb[36].mxu1 %v11786_v63  ;;  %8772 = vmatpush1.bf16.msra.mxu0 %v10071_v42  ;;  %v10089_v63 = vcombine.low %v5459_v49, %v5463_v8  ;;  %v10129_v42 = vcombine.low %v5499_v25, %v5503_v43  ;;  %v10137_v49 = vcombine.low %v5507_v40, %v5511_v15 }
 0x50c   : > { %8803 = vmatprep.mubr.bf16.mxu0 %v11792_v5  ;;  %8944 = vmatpush1.bf16.msra.mxu1 %v10073_v48  ;;  %v5514_v48 = vld [vmem:[#allocation13 + $0x650] sm:$0xff] }
 0x50d   : > { %8975 = vmatprep.mubr.bf16.mxu1 %v11792_v5  ;;  %8773 = vmatprep.subr.bf16.mxu0 %v10080_v7  ;;  %v10095_v5 = vcombine.low %v5466_v57, %v5470_v17  ;;  %v5518_v7 = vld [vmem:[#allocation13 + $0x670] sm:$0xff]  ;;  %v5527_v57 = vld [vmem:[#allocation13 + $0x6b8] sm:$0xff] }
 0x50e   : > { %8945 = vmatprep.subr.bf16.mxu1 %v10082_v2  ;;  %v10135_v2 = vcombine.low %v5506_v62, %v5510_v58  ;;  %v10144_v8 = vcombine.high %v5514_v48, %v5518_v7  ;;  %v10143_v17 = vcombine.low %v5514_v48, %v5518_v7  ;;  %v5567_v62 = vld [vmem:[#allocation13 + $0x7f8] sm:$0xff] }
 0x50f   : > { %8774 = vmatpush1.bf16.msra.mxu0 %v10079_v10  ;;  %v10146_v10 = vcombine.high %v5515_v29, %v5519_v34  ;;  %v5575_v48 = vld [vmem:[#allocation13 + $0x838] sm:$0xff] }
 0x510   : > { %8946 = vmatpush1.bf16.msra.mxu1 %v10081_v0  ;;  %8775 = vmatprep.subr.bf16.mxu0 %v10088_v36  ;;  %v5522_v0 = vld [vmem:[#allocation13 + $0x690] sm:$0xff] }
 0x511   : > { %8947 = vmatprep.subr.bf16.mxu1 %v10090_v28  ;;  %v5526_v36 = vld [vmem:[#allocation13 + $0x6b0] sm:$0xff]  ;;  %v5523_v28 = vld [vmem:[#allocation13 + $0x698] sm:$0xff] }
 0x512   : > { %v10152_v54 = vcombine.high %v5522_v0, %v5526_v36  ;;  %v10151_v56 = vcombine.low %v5522_v0, %v5526_v36  ;;  %v10153_v45 = vcombine.low %v5523_v28, %v5527_v57  ;;  %v5579_v0 = vld [vmem:[#allocation13 + $0x858] sm:$0xff] }
 0x513   : > { %8776 = vmatpush1.bf16.msra.mxu0 %v10087_v52  ;;  %v10154_v52 = vcombine.high %v5523_v28, %v5527_v57  ;;  %v5583_v36 = vld [vmem:[#allocation13 + $0x878] sm:$0xff] }
 0x514   : > { %8948 = vmatpush1.bf16.msra.mxu1 %v10089_v63  ;;  %8777 = vmatprep.subr.bf16.mxu0 %v10096_v21  ;;  %v5530_v63 = vld [vmem:[#allocation13 + $0x6d0] sm:$0xff] }
 0x515   : > { %8949 = vmatprep.subr.bf16.mxu1 %v10098_v39  ;;  %v5534_v21 = vld [vmem:[#allocation13 + $0x6f0] sm:$0xff]  ;;  %v5531_v39 = vld [vmem:[#allocation13 + $0x6d8] sm:$0xff] }
 0x516   : > { %v10160_v38 = vcombine.high %v5530_v63, %v5534_v21  ;;  %v10159_v1 = vcombine.low %v5530_v63, %v5534_v21  ;;  %v10161_v51 = vcombine.low %v5531_v39, %v5535_v13  ;;  %v5591_v63 = vld [vmem:[#allocation13 + $0x8b8] sm:$0xff] }
 0x517   : > { %8778 = vmatpush1.bf16.msra.mxu0 %v10095_v5  ;;  %v10162_v5 = vcombine.high %v5531_v39, %v5535_v13  ;;  %v10209_v39 = vcombine.low %v5579_v0, %v5583_v36 }
 0x518   : > { %8950 = vmatpush1.bf16.msra.mxu1 %v10097_v14  ;;  %8779 = vmatprep.subr.bf16.mxu0 %v10104_v24  ;;  %v5538_v14 = vld [vmem:[#allocation13 + $0x710] sm:$0xff] }
 0x519   : > { %8951 = vmatprep.subr.bf16.mxu1 %v10106_v26  ;;  %v5542_v24 = vld [vmem:[#allocation13 + $0x730] sm:$0xff]  ;;  %v5539_v26 = vld [vmem:[#allocation13 + $0x718] sm:$0xff] }
 0x51a   : > { %v10168_v11 = vcombine.high %v5538_v14, %v5542_v24  ;;  %v10167_v55 = vcombine.low %v5538_v14, %v5542_v24  ;;  %v10169_v16 = vcombine.low %v5539_v26, %v5543_v33  ;;  %v5599_v14 = vld [vmem:[#allocation13 + $0x8f8] sm:$0xff] }
 0x51b   : > { %8780 = vmatpush1.bf16.msra.mxu0 %v10103_v3  ;;  %v10170_v3 = vcombine.high %v5539_v26, %v5543_v33 }
 0x51c   : > { %8952 = vmatpush1.bf16.msra.mxu1 %v10105_v53  ;;  %8781 = vmatprep.subr.bf16.mxu0 %v10112_v18  ;;  %v5546_v53 = vld [vmem:[#allocation13 + $0x750] sm:$0xff] }
 0x51d   : > { %8953 = vmatprep.subr.bf16.mxu1 %v10114_v27  ;;  %v5550_v18 = vld [vmem:[#allocation13 + $0x770] sm:$0xff]  ;;  %v5547_v27 = vld [vmem:[#allocation13 + $0x758] sm:$0xff] }
 0x51e   : > { %v10176_v6 = vcombine.high %v5546_v53, %v5550_v18  ;;  %v10175_v31 = vcombine.low %v5546_v53, %v5550_v18  ;;  %v10177_v25 = vcombine.low %v5547_v27, %v5551_v32 }
 0x51f   : > { %8782 = vmatpush1.bf16.msra.mxu0 %v10111_v22  ;;  %v10178_v22 = vcombine.high %v5547_v27, %v5551_v32  ;;  %v5610_v32 = vld [vmem:[#allocation13 + $0x950] sm:$0xff] }
 0x520   : > { %8954 = vmatpush1.bf16.msra.mxu1 %v10113_v60  ;;  %8783 = vmatprep.subr.bf16.mxu0 %v10120_v50  ;;  %v5554_v60 = vld [vmem:[#allocation13 + $0x790] sm:$0xff] }
 0x521   : > { %8955 = vmatprep.subr.bf16.mxu1 %v10122_v44  ;;  %v5558_v50 = vld [vmem:[#allocation13 + $0x7b0] sm:$0xff]  ;;  %v5555_v44 = vld [vmem:[#allocation13 + $0x798] sm:$0xff] }
 0x522   : > { %v10184_v43 = vcombine.high %v5554_v60, %v5558_v50  ;;  %v10183_v58 = vcombine.low %v5554_v60, %v5558_v50  ;;  %v10185_v40 = vcombine.low %v5555_v44, %v5559_v4 }
 0x523   : > { %8784 = vmatpush1.bf16.msra.mxu0 %v10119_v61  ;;  %v10186_v61 = vcombine.high %v5555_v44, %v5559_v4  ;;  %v5618_v4 = vld [vmem:[#allocation13 + $0x990] sm:$0xff] }
 0x524   : > { %8956 = vmatpush1.bf16.msra.mxu1 %v10121_v35  ;;  %8785 = vmatprep.subr.bf16.mxu0 %v10128_v23  ;;  %v5562_v35 = vld [vmem:[#allocation13 + $0x7d0] sm:$0xff] }
 0x525   : > { %8957 = vmatprep.subr.bf16.mxu1 %v10130_v19  ;;  %v5566_v23 = vld [vmem:[#allocation13 + $0x7f0] sm:$0xff]  ;;  %v5563_v19 = vld [vmem:[#allocation13 + $0x7d8] sm:$0xff] }
 0x526   : > { %v10192_v15 = vcombine.high %v5562_v35, %v5566_v23  ;;  %v10191_v7 = vcombine.low %v5562_v35, %v5566_v23  ;;  %v10193_v29 = vcombine.low %v5563_v19, %v5567_v62 }
 0x527   : > { %8786 = vmatpush1.bf16.msra.mxu0 %v10127_v30  ;;  %v10194_v30 = vcombine.high %v5563_v19, %v5567_v62  ;;  %v5626_v62 = vld [vmem:[#allocation13 + $0x9d0] sm:$0xff] }
 0x528   : > { %8958 = vmatpush1.bf16.msra.mxu1 %v10129_v42  ;;  %8787 = vmatprep.subr.bf16.mxu0 %v10136_v47  ;;  %v5570_v42 = vld [vmem:[#allocation13 + $0x810] sm:$0xff] }
 0x529   : > { %8959 = vmatprep.subr.bf16.mxu1 %v10138_v12  ;;  %v5574_v47 = vld [vmem:[#allocation13 + $0x830] sm:$0xff]  ;;  %v5571_v12 = vld [vmem:[#allocation13 + $0x818] sm:$0xff] }
 0x52a   : > { %v10200_v34 = vcombine.high %v5570_v42, %v5574_v47  ;;  %v10201_v28 = vcombine.low %v5571_v12, %v5575_v48 }
 0x52b   : > { %8788 = vmatpush1.bf16.msra.mxu0 %v10135_v2  ;;  %v10202_v2 = vcombine.high %v5571_v12, %v5575_v48  ;;  %v5634_v48 = vld [vmem:[#allocation13 + $0xa10] sm:$0xff] }
 0x52c   : > { %8960 = vmatpush1.bf16.msra.mxu1 %v10137_v49  ;;  %8789 = vmatprep.subr.bf16.mxu0 %v10144_v8  ;;  %v5578_v49 = vld [vmem:[#allocation13 + $0x850] sm:$0xff] }
 0x52d   : > { %8961 = vmatprep.subr.bf16.mxu1 %v10146_v10  ;;  %v5582_v8 = vld [vmem:[#allocation13 + $0x870] sm:$0xff]  ;;  %v10199_v10 = vcombine.low %v5570_v42, %v5574_v47 }
 0x52e   : > { %v10208_v57 = vcombine.high %v5578_v49, %v5582_v8  ;;  %v10207_v21 = vcombine.low %v5578_v49, %v5582_v8 }
 0x52f   : > { %8790 = vmatpush1.bf16.msra.mxu0 %v10143_v17  ;;  %v5586_v17 = vld [vmem:[#allocation13 + $0x890] sm:$0xff] }
 0x530   : > { %8962 = vmatpush1.bf16.msra.mxu1 %v10145_v9  ;;  %8791 = vmatprep.subr.bf16.mxu0 %v10152_v54  ;;  %v5590_v9 = vld [vmem:[#allocation13 + $0x8b0] sm:$0xff]  ;;  %v10210_v54 = vcombine.high %v5579_v0, %v5583_v36 }
 0x531   : > { %8963 = vmatprep.subr.bf16.mxu1 %v10154_v52  ;;  %v5587_v52 = vld [vmem:[#allocation13 + $0x898] sm:$0xff]  ;;  %v10216_v13 = vcombine.high %v5586_v17, %v5590_v9  ;;  %v10215_v24 = vcombine.low %v5586_v17, %v5590_v9  ;;  %v5642_v0 = vld [vmem:[#allocation13 + $0xa50] sm:$0xff] }
 0x532   : > { %v5646_v36 = vld [vmem:[#allocation13 + $0xa70] sm:$0xff] }
 0x533   : > { %8792 = vmatpush1.bf16.msra.mxu0 %v10151_v56  ;;  %v10218_v56 = vcombine.high %v5587_v52, %v5591_v63 }
 0x534   : > { %8964 = vmatpush1.bf16.msra.mxu1 %v10153_v45  ;;  %8793 = vmatprep.subr.bf16.mxu0 %v10160_v38  ;;  %v5594_v45 = vld [vmem:[#allocation13 + $0x8d0] sm:$0xff] }
 0x535   : > { %8965 = vmatprep.subr.bf16.mxu1 %v10162_v5  ;;  %v5598_v38 = vld [vmem:[#allocation13 + $0x8f0] sm:$0xff]  ;;  %v5595_v5 = vld [vmem:[#allocation13 + $0x8d8] sm:$0xff] }
 0x536   : > { %v10224_v26 = vcombine.high %v5594_v45, %v5598_v38  ;;  %v10226_v33 = vcombine.high %v5595_v5, %v5599_v14  ;;  %v10225_v53 = vcombine.low %v5595_v5, %v5599_v14  ;;  %v5658_v14 = vld [vmem:[#allocation13 + $0xad0] sm:$0xff] }
 0x537   : > { %8794 = vmatpush1.bf16.msra.mxu0 %v10159_v1  ;;  %v5602_v1 = vld [vmem:[#allocation13 + $0x910] sm:$0xff] }
 0x538   : > { %8966 = vmatpush1.bf16.msra.mxu1 %v10161_v51  ;;  %8795 = vmatprep.subr.bf16.mxu0 %v10168_v11  ;;  %v5606_v51 = vld [vmem:[#allocation13 + $0x930] sm:$0xff]  ;;  %v5603_v11 = vld [vmem:[#allocation13 + $0x918] sm:$0xff] }
 0x539   : > { %8967 = vmatprep.subr.bf16.mxu1 %v10170_v3  ;;  %v5607_v3 = vld [vmem:[#allocation13 + $0x938] sm:$0xff]  ;;  %v10232_v18 = vcombine.high %v5602_v1, %v5606_v51 }
 0x53a   : > { %v10234_v27 = vcombine.high %v5603_v11, %v5607_v3  ;;  %v10233_v60 = vcombine.low %v5603_v11, %v5607_v3  ;;  %v5666_v3 = vld [vmem:[#allocation13 + $0xb10] sm:$0xff] }
 0x53b   : > { %8796 = vmatpush1.bf16.msra.mxu0 %v10167_v55  ;;  %v5614_v55 = vld [vmem:[#allocation13 + $0x970] sm:$0xff] }
 0x53c   : > { %8968 = vmatpush1.bf16.msra.mxu1 %v10169_v16  ;;  %8797 = vmatprep.subr.bf16.mxu0 %v10176_v6  ;;  %v5611_v16 = vld [vmem:[#allocation13 + $0x958] sm:$0xff]  ;;  %v10240_v50 = vcombine.high %v5610_v32, %v5614_v55 }
 0x53d   : > { %8969 = vmatprep.subr.bf16.mxu1 %v10178_v22  ;;  %v5615_v6 = vld [vmem:[#allocation13 + $0x978] sm:$0xff]  ;;  %v10231_v22 = vcombine.low %v5602_v1, %v5606_v51 }
 0x53e   : > { %v10242_v44 = vcombine.high %v5611_v16, %v5615_v6  ;;  %v10241_v35 = vcombine.low %v5611_v16, %v5615_v6  ;;  %v5674_v6 = vld [vmem:[#allocation13 + $0xb50] sm:$0xff] }
 0x53f   : > { %8798 = vmatpush1.bf16.msra.mxu0 %v10175_v31  ;;  %v5622_v31 = vld [vmem:[#allocation13 + $0x9b0] sm:$0xff] }
 0x540   : > { %8970 = vmatpush1.bf16.msra.mxu1 %v10177_v25  ;;  %8799 = vmatprep.subr.bf16.mxu0 %v10184_v43  ;;  %v5619_v25 = vld [vmem:[#allocation13 + $0x998] sm:$0xff]  ;;  %v10248_v23 = vcombine.high %v5618_v4, %v5622_v31 }
 0x541   : > { %8971 = vmatprep.subr.bf16.mxu1 %v10186_v61  ;;  %v5623_v43 = vld [vmem:[#allocation13 + $0x9b8] sm:$0xff]  ;;  %v10239_v61 = vcombine.low %v5610_v32, %v5614_v55 }
 0x542   : > { %v10250_v19 = vcombine.high %v5619_v25, %v5623_v43  ;;  %v10249_v42 = vcombine.low %v5619_v25, %v5623_v43  ;;  %v5682_v43 = vld [vmem:[#allocation13 + $0xb90] sm:$0xff] }
 0x543   : > { %8800 = vmatpush1.bf16.msra.mxu0 %v10183_v58  ;;  %v5630_v58 = vld [vmem:[#allocation13 + $0x9f0] sm:$0xff] }
 0x544   : > { %8972 = vmatpush1.bf16.msra.mxu1 %v10185_v40  ;;  %8801 = vmatprep.subr.bf16.mxu0 %v10192_v15  ;;  %v5627_v40 = vld [vmem:[#allocation13 + $0x9d8] sm:$0xff]  ;;  %v10256_v47 = vcombine.high %v5626_v62, %v5630_v58 }
 0x545   : > { %8973 = vmatprep.subr.bf16.mxu1 %v10194_v30  ;;  %v5631_v15 = vld [vmem:[#allocation13 + $0x9f8] sm:$0xff]  ;;  %v10247_v30 = vcombine.low %v5618_v4, %v5622_v31 }
 0x546   : > { %v10258_v12 = vcombine.high %v5627_v40, %v5631_v15  ;;  %v10257_v49 = vcombine.low %v5627_v40, %v5631_v15  ;;  %v5690_v15 = vld [vmem:[#allocation13 + $0xbd0] sm:$0xff] }
 0x547   : > { %8802 = vmatpush1.bf16.msra.mxu0 %v10191_v7  ;;  %v5638_v7 = vld [vmem:[#allocation13 + $0xa30] sm:$0xff] }
 0x548   : > { %8974 = vmatpush1.bf16.msra.mxu1 %v10193_v29  ;;  %8814 = vmatprep.subr.bf16.mxu0 %v10200_v34  ;;  %v5635_v29 = vld [vmem:[#allocation13 + $0xa18] sm:$0xff]  ;;  %v10264_v8 = vcombine.high %v5634_v48, %v5638_v7  ;;  %v10263_v17 = vcombine.low %v5634_v48, %v5638_v7 }
 0x549   : > { %8986 = vmatprep.subr.bf16.mxu1 %v10202_v2  ;;  %v5639_v34 = vld [vmem:[#allocation13 + $0xa38] sm:$0xff]  ;;  %v10255_v2 = vcombine.low %v5626_v62, %v5630_v58 }
 0x54a   : > { %8804 = vmatmul.mubr.bf16.vlgmr.msra.gmra.mrb[36].mxu0 %v11788_v20  ;;  %v10265_v9 = vcombine.low %v5635_v29, %v5639_v34 }
 0x54b   : > { %8976 = vmatmul.mubr.bf16.vlgmr.msra.gmra.mrb[36].mxu1 %v11788_v20  ;;  %8815 = vmatpush1.bf16.msra.mxu0 %v10199_v10  ;;  %v10217_v20 = vcombine.low %v5587_v52, %v5591_v63  ;;  %v10266_v10 = vcombine.high %v5635_v29, %v5639_v34  ;;  %v5650_v63 = vld [vmem:[#allocation13 + $0xa90] sm:$0xff] }
 0x54c   : > { %8846 = vmatprep.mubr.bf16.mxu0 %v11818_v41  ;;  %8987 = vmatpush1.bf16.msra.mxu1 %v10201_v28  ;;  %v5643_v28 = vld [vmem:[#allocation13 + $0xa58] sm:$0xff]  ;;  %v5698_v34 = vld [vmem:[#allocation13 + $0xc10] sm:$0xff] }
 0x54d   : > { %9018 = vmatprep.mubr.bf16.mxu1 %v11818_v41  ;;  %8816 = vmatprep.subr.bf16.mxu0 %v10208_v57  ;;  %v10223_v41 = vcombine.low %v5594_v45, %v5598_v38  ;;  %v5647_v57 = vld [vmem:[#allocation13 + $0xa78] sm:$0xff] }
 0x54e   : > { %8988 = vmatprep.subr.bf16.mxu1 %v10210_v54  ;;  %v10272_v54 = vcombine.high %v5642_v0, %v5646_v36  ;;  %v10274_v52 = vcombine.high %v5643_v28, %v5647_v57  ;;  %v10273_v45 = vcombine.low %v5643_v28, %v5647_v57  ;;  %v5706_v57 = vld [vmem:[#allocation13 + $0xc50] sm:$0xff] }
 0x54f   : > { %8817 = vmatpush1.bf16.msra.mxu0 %v10207_v21  ;;  %v5654_v21 = vld [vmem:[#allocation13 + $0xab0] sm:$0xff] }
 0x550   : > { %8989 = vmatpush1.bf16.msra.mxu1 %v10209_v39  ;;  %8818 = vmatprep.subr.bf16.mxu0 %v10216_v13  ;;  %v5651_v39 = vld [vmem:[#allocation13 + $0xa98] sm:$0xff]  ;;  %v10280_v38 = vcombine.high %v5650_v63, %v5654_v21 }
 0x551   : > { %8990 = vmatprep.subr.bf16.mxu1 %v10218_v56  ;;  %v5655_v13 = vld [vmem:[#allocation13 + $0xab8] sm:$0xff]  ;;  %v10271_v56 = vcombine.low %v5642_v0, %v5646_v36 }
 0x552   : > { %v10282_v5 = vcombine.high %v5651_v39, %v5655_v13  ;;  %v10281_v1 = vcombine.low %v5651_v39, %v5655_v13  ;;  %v5714_v39 = vld [vmem:[#allocation13 + $0xc90] sm:$0xff] }
 0x553   : > { %8819 = vmatpush1.bf16.msra.mxu0 %v10215_v24  ;;  %v5662_v24 = vld [vmem:[#allocation13 + $0xaf0] sm:$0xff] }
 0x554   : > { %8991 = vmatpush1.bf16.msra.mxu1 %v10217_v20  ;;  %8820 = vmatprep.subr.bf16.mxu0 %v10224_v26  ;;  %v5659_v20 = vld [vmem:[#allocation13 + $0xad8] sm:$0xff]  ;;  %v10288_v51 = vcombine.high %v5658_v14, %v5662_v24  ;;  %v5718_v13 = vld [vmem:[#allocation13 + $0xcb0] sm:$0xff] }
 0x555   : > { %8992 = vmatprep.subr.bf16.mxu1 %v10226_v33  ;;  %v5663_v26 = vld [vmem:[#allocation13 + $0xaf8] sm:$0xff]  ;;  %v10279_v33 = vcombine.low %v5650_v63, %v5654_v21 }
 0x556   : > { %v10290_v11 = vcombine.high %v5659_v20, %v5663_v26  ;;  %v10289_v32 = vcombine.low %v5659_v20, %v5663_v26  ;;  %v5722_v26 = vld [vmem:[#allocation13 + $0xcd0] sm:$0xff] }
 0x557   : > { %8821 = vmatpush1.bf16.msra.mxu0 %v10223_v41  ;;  %v5670_v41 = vld [vmem:[#allocation13 + $0xb30] sm:$0xff] }
 0x558   : > { %8993 = vmatpush1.bf16.msra.mxu1 %v10225_v53  ;;  %8822 = vmatprep.subr.bf16.mxu0 %v10232_v18  ;;  %v5667_v53 = vld [vmem:[#allocation13 + $0xb18] sm:$0xff]  ;;  %v10296_v55 = vcombine.high %v5666_v3, %v5670_v41 }
 0x559   : > { %8994 = vmatprep.subr.bf16.mxu1 %v10234_v27  ;;  %v5671_v18 = vld [vmem:[#allocation13 + $0xb38] sm:$0xff]  ;;  %v10287_v27 = vcombine.low %v5658_v14, %v5662_v24  ;;  %v10344_v24 = vcombine.high %v5714_v39, %v5718_v13 }
 0x55a   : > { %v10298_v16 = vcombine.high %v5667_v53, %v5671_v18  ;;  %v10297_v4 = vcombine.low %v5667_v53, %v5671_v18  ;;  %v5730_v53 = vld [vmem:[#allocation13 + $0xd10] sm:$0xff] }
 0x55b   : > { %8823 = vmatpush1.bf16.msra.mxu0 %v10231_v22  ;;  %v5678_v22 = vld [vmem:[#allocation13 + $0xb70] sm:$0xff] }
 0x55c   : > { %8995 = vmatpush1.bf16.msra.mxu1 %v10233_v60  ;;  %8824 = vmatprep.subr.bf16.mxu0 %v10240_v50  ;;  %v5675_v60 = vld [vmem:[#allocation13 + $0xb58] sm:$0xff]  ;;  %v10304_v31 = vcombine.high %v5674_v6, %v5678_v22  ;;  %v5734_v18 = vld [vmem:[#allocation13 + $0xd30] sm:$0xff] }
 0x55d   : > { %8996 = vmatprep.subr.bf16.mxu1 %v10242_v44  ;;  %v5679_v50 = vld [vmem:[#allocation13 + $0xb78] sm:$0xff]  ;;  %v10295_v44 = vcombine.low %v5666_v3, %v5670_v41 }
 0x55e   : > { %v10306_v25 = vcombine.high %v5675_v60, %v5679_v50  ;;  %v10305_v62 = vcombine.low %v5675_v60, %v5679_v50  ;;  %v5742_v60 = vld [vmem:[#allocation13 + $0xd70] sm:$0xff]  ;;  %v5739_v50 = vld [vmem:[#allocation13 + $0xd58] sm:$0xff] }
 0x55f   : > { %8825 = vmatpush1.bf16.msra.mxu0 %v10239_v61  ;;  %v5686_v61 = vld [vmem:[#allocation13 + $0xbb0] sm:$0xff] }
 0x560   : > { %8997 = vmatpush1.bf16.msra.mxu1 %v10241_v35  ;;  %8826 = vmatprep.subr.bf16.mxu0 %v10248_v23  ;;  %v5683_v35 = vld [vmem:[#allocation13 + $0xb98] sm:$0xff]  ;;  %v10312_v58 = vcombine.high %v5682_v43, %v5686_v61 }
 0x561   : > { %8998 = vmatprep.subr.bf16.mxu1 %v10250_v19  ;;  %v5687_v23 = vld [vmem:[#allocation13 + $0xbb8] sm:$0xff]  ;;  %v10303_v19 = vcombine.low %v5674_v6, %v5678_v22  ;;  %v5738_v22 = vld [vmem:[#allocation13 + $0xd50] sm:$0xff] }
 0x562   : > { %v10314_v40 = vcombine.high %v5683_v35, %v5687_v23  ;;  %v10313_v48 = vcombine.low %v5683_v35, %v5687_v23  ;;  %v5750_v35 = vld [vmem:[#allocation13 + $0xdb0] sm:$0xff]  ;;  %v5747_v23 = vld [vmem:[#allocation13 + $0xd98] sm:$0xff] }
 0x563   : > { %8827 = vmatpush1.bf16.msra.mxu0 %v10247_v30  ;;  %v5694_v30 = vld [vmem:[#allocation13 + $0xbf0] sm:$0xff] }
 0x564   : > { %8999 = vmatpush1.bf16.msra.mxu1 %v10249_v42  ;;  %8828 = vmatprep.subr.bf16.mxu0 %v10256_v47  ;;  %v5691_v42 = vld [vmem:[#allocation13 + $0xbd8] sm:$0xff]  ;;  %v10320_v7 = vcombine.high %v5690_v15, %v5694_v30 }
 0x565   : > { %9000 = vmatprep.subr.bf16.mxu1 %v10258_v12  ;;  %v5695_v47 = vld [vmem:[#allocation13 + $0xbf8] sm:$0xff]  ;;  %v10311_v12 = vcombine.low %v5682_v43, %v5686_v61  ;;  %v5746_v61 = vld [vmem:[#allocation13 + $0xd90] sm:$0xff] }
 0x566   : > { %v10322_v29 = vcombine.high %v5691_v42, %v5695_v47  ;;  %v10321_v0 = vcombine.low %v5691_v42, %v5695_v47  ;;  %v5754_v42 = vld [vmem:[#allocation13 + $0xdd0] sm:$0xff] }
 0x567   : > { %8829 = vmatpush1.bf16.msra.mxu0 %v10255_v2  ;;  %v5702_v2 = vld [vmem:[#allocation13 + $0xc30] sm:$0xff] }
 0x568   : > { %9001 = vmatpush1.bf16.msra.mxu1 %v10257_v49  ;;  %8830 = vmatprep.subr.bf16.mxu0 %v10264_v8  ;;  %v5699_v49 = vld [vmem:[#allocation13 + $0xc18] sm:$0xff]  ;;  %v10328_v36 = vcombine.high %v5698_v34, %v5702_v2  ;;  %v5758_v47 = vld [vmem:[#allocation13 + $0xdf0] sm:$0xff] }
 0x569   : > { %9002 = vmatprep.subr.bf16.mxu1 %v10266_v10  ;;  %v5703_v8 = vld [vmem:[#allocation13 + $0xc38] sm:$0xff]  ;;  %v10319_v10 = vcombine.low %v5690_v15, %v5694_v30 }
 0x56a   : > { %v10330_v28 = vcombine.high %v5699_v49, %v5703_v8  ;;  %v10329_v63 = vcombine.low %v5699_v49, %v5703_v8  ;;  %v10375_v8 = vcombine.low %v5746_v61, %v5750_v35 }
 0x56b   : > { %8831 = vmatpush1.bf16.msra.mxu0 %v10263_v17  ;;  %v5710_v17 = vld [vmem:[#allocation13 + $0xc70] sm:$0xff] }
 0x56c   : > { %9003 = vmatpush1.bf16.msra.mxu1 %v10265_v9  ;;  %8832 = vmatprep.subr.bf16.mxu0 %v10272_v54  ;;  %v10327_v9 = vcombine.low %v5698_v34, %v5702_v2  ;;  %v5707_v54 = vld [vmem:[#allocation13 + $0xc58] sm:$0xff]  ;;  %v10336_v21 = vcombine.high %v5706_v57, %v5710_v17 }
 0x56d   : > { %9004 = vmatprep.subr.bf16.mxu1 %v10274_v52  ;;  %v5711_v52 = vld [vmem:[#allocation13 + $0xc78] sm:$0xff] }
 0x56e   : > { %v10337_v14 = vcombine.low %v5707_v54, %v5711_v52 }
 0x56f   : > { %8833 = vmatpush1.bf16.msra.mxu0 %v10271_v56  ;;  %v10338_v56 = vcombine.high %v5707_v54, %v5711_v52  ;;  %v5762_v52 = vld [vmem:[#allocation13 + $0xe10] sm:$0xff] }
 0x570   : > { %9005 = vmatpush1.bf16.msra.mxu1 %v10273_v45  ;;  %8834 = vmatprep.subr.bf16.mxu0 %v10280_v38  ;;  %v5715_v45 = vld [vmem:[#allocation13 + $0xc98] sm:$0xff] }
 0x571   : > { %9006 = vmatprep.subr.bf16.mxu1 %v10282_v5  ;;  %v5719_v38 = vld [vmem:[#allocation13 + $0xcb8] sm:$0xff]  ;;  %v10335_v5 = vcombine.low %v5706_v57, %v5710_v17  ;;  %v10384_v57 = vcombine.high %v5754_v42, %v5758_v47 }
 0x572   : > { %v10346_v20 = vcombine.high %v5715_v45, %v5719_v38 }
 0x573   : > { %8835 = vmatpush1.bf16.msra.mxu0 %v10279_v33  ;;  %v5726_v33 = vld [vmem:[#allocation13 + $0xcf0] sm:$0xff] }
 0x574   : > { %9007 = vmatpush1.bf16.msra.mxu1 %v10281_v1  ;;  %8836 = vmatprep.subr.bf16.mxu0 %v10288_v51  ;;  %v5723_v1 = vld [vmem:[#allocation13 + $0xcd8] sm:$0xff]  ;;  %v10352_v3 = vcombine.high %v5722_v26, %v5726_v33 }
 0x575   : > { %9008 = vmatprep.subr.bf16.mxu1 %v10290_v11  ;;  %v5727_v51 = vld [vmem:[#allocation13 + $0xcf8] sm:$0xff]  ;;  %v10343_v11 = vcombine.low %v5714_v39, %v5718_v13 }
 0x576   : > { %v10354_v41 = vcombine.high %v5723_v1, %v5727_v51  ;;  %v5763_v39 = vld [vmem:[#allocation13 + $0xe18] sm:$0xff] }
 0x577   : > { %8837 = vmatpush1.bf16.msra.mxu0 %v10287_v27  ;;  %v5731_v27 = vld [vmem:[#allocation13 + $0xd18] sm:$0xff] }
 0x578   : > { %9009 = vmatpush1.bf16.msra.mxu1 %v10289_v32  ;;  %8838 = vmatprep.subr.bf16.mxu0 %v10296_v55  ;;  %v5735_v32 = vld [vmem:[#allocation13 + $0xd38] sm:$0xff]  ;;  %v10353_v55 = vcombine.low %v5723_v1, %v5727_v51 }
 0x579   : > { %9010 = vmatprep.subr.bf16.mxu1 %v10298_v16  ;;  %v10360_v16 = vcombine.high %v5730_v53, %v5734_v18  ;;  %v10362_v6 = vcombine.high %v5731_v27, %v5735_v32  ;;  %v5767_v13 = vld [vmem:[#allocation13 + $0xe38] sm:$0xff] }
 0x57a   : > { %v10393_v1 = vcombine.low %v5763_v39, %v5767_v13 }
 0x57b   : > { %8839 = vmatpush1.bf16.msra.mxu0 %v10295_v44  ;;  %v5743_v44 = vld [vmem:[#allocation13 + $0xd78] sm:$0xff] }
 0x57c   : > { %9011 = vmatpush1.bf16.msra.mxu1 %v10297_v4  ;;  %8840 = vmatprep.subr.bf16.mxu0 %v10304_v31  ;;  %v10359_v4 = vcombine.low %v5730_v53, %v5734_v18  ;;  %v10361_v31 = vcombine.low %v5731_v27, %v5735_v32  ;;  %v10370_v43 = vcombine.high %v5739_v50, %v5743_v44  ;;  %v5783_v53 = vld [vmem:[#allocation13 + $0xeb8] sm:$0xff] }
 0x57d   : > { %9012 = vmatprep.subr.bf16.mxu1 %v10306_v25  ;;  %v10368_v25 = vcombine.high %v5738_v22, %v5742_v60 }
 0x57f   : > { %8841 = vmatpush1.bf16.msra.mxu0 %v10303_v19  ;;  %v5751_v19 = vld [vmem:[#allocation13 + $0xdb8] sm:$0xff] }
 0x580   : > { %9013 = vmatpush1.bf16.msra.mxu1 %v10305_v62  ;;  %8842 = vmatprep.subr.bf16.mxu0 %v10312_v58  ;;  %v10367_v62 = vcombine.low %v5738_v22, %v5742_v60  ;;  %v10369_v58 = vcombine.low %v5739_v50, %v5743_v44  ;;  %v10378_v30 = vcombine.high %v5747_v23, %v5751_v19  ;;  %v5791_v22 = vld [vmem:[#allocation13 + $0xef8] sm:$0xff] }
 0x581   : > { %9014 = vmatprep.subr.bf16.mxu1 %v10314_v40  ;;  %v10376_v40 = vcombine.high %v5746_v61, %v5750_v35  ;;  %v5799_v61 = vld [vmem:[#allocation13 + $0xf38] sm:$0xff] }
 0x583   : > { %8843 = vmatpush1.bf16.msra.mxu0 %v10311_v12 }
 0x584   : > { %9015 = vmatpush1.bf16.msra.mxu1 %v10313_v48  ;;  %8844 = vmatprep.subr.bf16.mxu0 %v10320_v7  ;;  %v5755_v7 = vld [vmem:[#allocation13 + $0xdd8] sm:$0xff] }
 0x585   : > { %9016 = vmatprep.subr.bf16.mxu1 %v10322_v29  ;;  %v5759_v29 = vld [vmem:[#allocation13 + $0xdf8] sm:$0xff] }
 0x586   : > { %v10386_v54 = vcombine.high %v5755_v7, %v5759_v29 }
 0x587   : > { %8845 = vmatpush1.bf16.msra.mxu0 %v10319_v10 }
 0x588   : > { %9017 = vmatpush1.bf16.msra.mxu1 %v10321_v0  ;;  %8857 = vmatprep.subr.bf16.mxu0 %v10328_v36 }
 0x589   : > { %9029 = vmatprep.subr.bf16.mxu1 %v10330_v28  ;;  %v10377_v28 = vcombine.low %v5747_v23, %v5751_v19 }
 0x58a   : > { %8847 = vmatmul.mubr.bf16.vlgmr.msra.gmra.mrb[36].mxu0 %v11813_v37 }
 0x58b   : > { %9019 = vmatmul.mubr.bf16.vlgmr.msra.gmra.mrb[36].mxu1 %v11813_v37  ;;  %8858 = vmatpush1.bf16.msra.mxu0 %v10327_v9  ;;  %v10345_v37 = vcombine.low %v5715_v45, %v5719_v38  ;;  %v10385_v45 = vcombine.low %v5755_v7, %v5759_v29  ;;  %v5810_v7 = vld [vmem:[#allocation13 + $0xf90] sm:$0xff] }
 0x58c   : > { %8889 = vmatprep.mubr.bf16.mxu0 %v11820_v46  ;;  %9030 = vmatpush1.bf16.msra.mxu1 %v10329_v63  ;;  %v5766_v63 = vld [vmem:[#allocation13 + $0xe30] sm:$0xff] }
 0x58d   : > { %9061 = vmatprep.mubr.bf16.mxu1 %v11820_v46  ;;  %8859 = vmatprep.subr.bf16.mxu0 %v10336_v21  ;;  %v10351_v46 = vcombine.low %v5722_v26, %v5726_v33  ;;  %v10392_v38 = vcombine.high %v5762_v52, %v5766_v63  ;;  %v5775_v26 = vld [vmem:[#allocation13 + $0xe78] sm:$0xff]  ;;  %v10391_v33 = vcombine.low %v5762_v52, %v5766_v63  ;;  %v5814_v29 = vld [vmem:[#allocation13 + $0xfb0] sm:$0xff] }
 0x58e   : > { %9031 = vmatprep.subr.bf16.mxu1 %v10338_v56  ;;  %v10383_v56 = vcombine.low %v5754_v42, %v5758_v47 }
 0x58f   : > { %8860 = vmatpush1.bf16.msra.mxu0 %v10335_v5  ;;  %v10394_v5 = vcombine.high %v5763_v39, %v5767_v13 }
 0x590   : > { %9032 = vmatpush1.bf16.msra.mxu1 %v10337_v14  ;;  %8861 = vmatprep.subr.bf16.mxu0 %v10344_v24  ;;  %v5770_v14 = vld [vmem:[#allocation13 + $0xe50] sm:$0xff] }
 0x591   : > { %9033 = vmatprep.subr.bf16.mxu1 %v10346_v20  ;;  %v5774_v24 = vld [vmem:[#allocation13 + $0xe70] sm:$0xff]  ;;  %v5771_v20 = vld [vmem:[#allocation13 + $0xe58] sm:$0xff] }
 0x592   : > { %v10400_v51 = vcombine.high %v5770_v14, %v5774_v24  ;;  %v10399_v18 = vcombine.low %v5770_v14, %v5774_v24  ;;  %v10401_v27 = vcombine.low %v5771_v20, %v5775_v26 }
 0x593   : > { %8862 = vmatpush1.bf16.msra.mxu0 %v10343_v11  ;;  %v10402_v11 = vcombine.high %v5771_v20, %v5775_v26 }
 0x594   : > { %9034 = vmatpush1.bf16.msra.mxu1 %v10345_v37  ;;  %8863 = vmatprep.subr.bf16.mxu0 %v10352_v3  ;;  %v5778_v37 = vld [vmem:[#allocation13 + $0xe90] sm:$0xff] }
 0x595   : > { %9035 = vmatprep.subr.bf16.mxu1 %v10354_v41  ;;  %v5782_v3 = vld [vmem:[#allocation13 + $0xeb0] sm:$0xff]  ;;  %v5779_v41 = vld [vmem:[#allocation13 + $0xe98] sm:$0xff] }
 0x596   : > { %v10408_v32 = vcombine.high %v5778_v37, %v5782_v3  ;;  %v10407_v60 = vcombine.low %v5778_v37, %v5782_v3  ;;  %v10409_v50 = vcombine.low %v5779_v41, %v5783_v53 }
 0x597   : > { %8864 = vmatpush1.bf16.msra.mxu0 %v10351_v46  ;;  %v10410_v46 = vcombine.high %v5779_v41, %v5783_v53 }
 0x598   : > { %9036 = vmatpush1.bf16.msra.mxu1 %v10353_v55  ;;  %8865 = vmatprep.subr.bf16.mxu0 %v10360_v16  ;;  %v5786_v55 = vld [vmem:[#allocation13 + $0xed0] sm:$0xff] }
 0x599   : > { %9037 = vmatprep.subr.bf16.mxu1 %v10362_v6  ;;  %v5790_v16 = vld [vmem:[#allocation13 + $0xef0] sm:$0xff]  ;;  %v5787_v6 = vld [vmem:[#allocation13 + $0xed8] sm:$0xff] }
 0x59a   : > { %v10416_v44 = vcombine.high %v5786_v55, %v5790_v16  ;;  %v10415_v35 = vcombine.low %v5786_v55, %v5790_v16  ;;  %v10417_v23 = vcombine.low %v5787_v6, %v5791_v22 }
 0x59b   : > { %8866 = vmatpush1.bf16.msra.mxu0 %v10359_v4  ;;  %v10418_v4 = vcombine.high %v5787_v6, %v5791_v22 }
 0x59c   : > { %9038 = vmatpush1.bf16.msra.mxu1 %v10361_v31  ;;  %8867 = vmatprep.subr.bf16.mxu0 %v10368_v25  ;;  %v5794_v31 = vld [vmem:[#allocation13 + $0xf10] sm:$0xff] }
 0x59d   : > { %v8547_v15 = vpop.f32.mrb[32].mxu0  ;;  %9039 = vmatprep.subr.bf16.mxu1 %v10370_v43  ;;  %v5798_v25 = vld [vmem:[#allocation13 + $0xf30] sm:$0xff]  ;;  %v5795_v43 = vld [vmem:[#allocation13 + $0xf18] sm:$0xff] }
 0x59e   : > { %v8719_v12 = vpop.f32.mrb[32].mxu1  ;;  %v8549_v48 = vpop.f32.mrb[33].mxu0  ;;  %v10424_v19 = vcombine.high %v5794_v31, %v5798_v25  ;;  %v10423_v42 = vcombine.low %v5794_v31, %v5798_v25  ;;  %v10425_v47 = vcombine.low %v5795_v43, %v5799_v61 }
 0x59f   : > { %v10467_v34 = vpack.c.bf16 %v8549_v48, %v8547_v15  ;;  %v8721_v2 = vpop.f32.mrb[33].mxu1  ;;  %v8551_v49 = vpop.f32.mrb[34].mxu0  ;;  %8868 = vmatpush1.bf16.msra.mxu0 %v10367_v62  ;;  %v10426_v62 = vcombine.high %v5795_v43, %v5799_v61  ;;  %v5803_v15 = vld [vmem:[#allocation13 + $0xf58] sm:$0xff] }
 0x5a0   : > { %v10468_v10 = vpack.c.bf16 %v8721_v2, %v8719_v12  ;;  %v8723_v0 = vpop.f32.mrb[34].mxu1  ;;  %9040 = vmatpush1.bf16.msra.mxu1 %v10369_v58  ;;  %v8553_v36 = vpop.f32.mrb[35].mxu0  ;;  %8869 = vmatprep.subr.bf16.mxu0 %v10376_v40  ;;  %v5802_v58 = vld [vmem:[#allocation13 + $0xf50] sm:$0xff]  ;;  %v5815_v2 = vld [vmem:[#allocation13 + $0xfb8] sm:$0xff] }
 0x5a1   : > { %9120 = vst [vmem:[%s11847_s20] sm:$0xff] %v10467_v34  ;;  %v10471_v17 = vpack.c.bf16 %v8553_v36, %v8551_v49  ;;  %v8725_v9 = vpop.f32.mrb[35].mxu1  ;;  %9041 = vmatprep.subr.bf16.mxu1 %v10378_v30  ;;  %v5806_v40 = vld [vmem:[#allocation13 + $0xf70] sm:$0xff]  ;;  %v5807_v30 = vld [vmem:[#allocation13 + $0xf78] sm:$0xff] }
 0x5a2   : > { %9121 = vst [vmem:[%s11847_s20 + $0x8] sm:$0xff] %v10468_v10  ;;  %v10472_v21 = vpack.c.bf16 %v8725_v9, %v8723_v0  ;;  %v10432_v12 = vcombine.high %v5802_v58, %v5806_v40  ;;  %v10434_v48 = vcombine.high %v5803_v15, %v5807_v30  ;;  %v5811_v34 = vld [vmem:[#allocation13 + $0xf98] sm:$0xff]  ;;  %v10431_v49 = vcombine.low %v5802_v58, %v5806_v40  ;;  %v5818_v36 = vld [vmem:[#allocation13 + $0xfd0] sm:$0xff] }
 0x5a3   : > { %9124 = vst [vmem:[%s11847_s20 + $0x20] sm:$0xff] %v10471_v17  ;;  %8870 = vmatpush1.bf16.msra.mxu0 %v10375_v8  ;;  %v10433_v8 = vcombine.low %v5803_v15, %v5807_v30  ;;  %v10440_v10 = vcombine.high %v5810_v7, %v5814_v29  ;;  %v10442_v0 = vcombine.high %v5811_v34, %v5815_v2  ;;  %v5823_v17 = vld [vmem:[#allocation13 + $0xff8] sm:$0xff] }
 0x5a4   : > { %9125 = vst [vmem:[%s11847_s20 + $0x28] sm:$0xff] %v10472_v21  ;;  %9042 = vmatpush1.bf16.msra.mxu1 %v10377_v28  ;;  %8871 = vmatprep.subr.bf16.mxu0 %v10384_v57  ;;  %v5822_v28 = vld [vmem:[#allocation13 + $0xff0] sm:$0xff]  ;;  %v5819_v57 = vld [vmem:[#allocation13 + $0xfd8] sm:$0xff]  ;;  %v10439_v9 = vcombine.low %v5810_v7, %v5814_v29 }
 0x5a5   : > { %9043 = vmatprep.subr.bf16.mxu1 %v10386_v54  ;;  %v10441_v54 = vcombine.low %v5811_v34, %v5815_v2  ;;  %v10448_v52 = vcombine.high %v5818_v36, %v5822_v28  ;;  %v10450_v63 = vcombine.high %v5819_v57, %v5823_v17  ;;  %v10447_v21 = vcombine.low %v5818_v36, %v5822_v28 }
 0x5a6   : > { %v10449_v39 = vcombine.low %v5819_v57, %v5823_v17 }
 0x5a7   : > { %8872 = vmatpush1.bf16.msra.mxu0 %v10383_v56 }
 0x5a8   : > { %9044 = vmatpush1.bf16.msra.mxu1 %v10385_v45  ;;  %8873 = vmatprep.subr.bf16.mxu0 %v10392_v38 }
 0x5a9   : > { %9045 = vmatprep.subr.bf16.mxu1 %v10394_v5 }
 0x5ab   : > { %8874 = vmatpush1.bf16.msra.mxu0 %v10391_v33 }
 0x5ac   : > { %9046 = vmatpush1.bf16.msra.mxu1 %v10393_v1  ;;  %8875 = vmatprep.subr.bf16.mxu0 %v10400_v51 }
 0x5ad   : > { %9047 = vmatprep.subr.bf16.mxu1 %v10402_v11 }
 0x5af   : > { %8876 = vmatpush1.bf16.msra.mxu0 %v10399_v18 }
 0x5b0   : > { %9048 = vmatpush1.bf16.msra.mxu1 %v10401_v27  ;;  %8877 = vmatprep.subr.bf16.mxu0 %v10408_v32 }
 0x5b1   : > { %9049 = vmatprep.subr.bf16.mxu1 %v10410_v46 }
 0x5b3   : > { %8878 = vmatpush1.bf16.msra.mxu0 %v10407_v60 }
 0x5b4   : > { %9050 = vmatpush1.bf16.msra.mxu1 %v10409_v50  ;;  %8879 = vmatprep.subr.bf16.mxu0 %v10416_v44 }
 0x5b5   : > { %9051 = vmatprep.subr.bf16.mxu1 %v10418_v4 }
 0x5b7   : > { %8880 = vmatpush1.bf16.msra.mxu0 %v10415_v35 }
 0x5b8   : > { %9052 = vmatpush1.bf16.msra.mxu1 %v10417_v23  ;;  %8881 = vmatprep.subr.bf16.mxu0 %v10424_v19 }
 0x5b9   : > { %9053 = vmatprep.subr.bf16.mxu1 %v10426_v62 }
 0x5bb   : > { %8882 = vmatpush1.bf16.msra.mxu0 %v10423_v42 }
 0x5bc   : > { %9054 = vmatpush1.bf16.msra.mxu1 %v10425_v47  ;;  %8883 = vmatprep.subr.bf16.mxu0 %v10432_v12 }
 0x5bd   : > { %9055 = vmatprep.subr.bf16.mxu1 %v10434_v48 }
 0x5bf   : > { %8884 = vmatpush1.bf16.msra.mxu0 %v10431_v49 }
 0x5c0   : > { %9056 = vmatpush1.bf16.msra.mxu1 %v10433_v8  ;;  %8885 = vmatprep.subr.bf16.mxu0 %v10440_v10 }
 0x5c1   : > { %9057 = vmatprep.subr.bf16.mxu1 %v10442_v0 }
 0x5c3   : > { %8886 = vmatpush1.bf16.msra.mxu0 %v10439_v9 }
 0x5c4   : > { %9058 = vmatpush1.bf16.msra.mxu1 %v10441_v54  ;;  %8887 = vmatprep.subr.bf16.mxu0 %v10448_v52 }
 0x5c5   : > { %9059 = vmatprep.subr.bf16.mxu1 %v10450_v63 }
 0x5c7   : > { %8888 = vmatpush1.bf16.msra.mxu0 %v10447_v21 }
 0x5c8   : > { %9060 = vmatpush1.bf16.msra.mxu1 %v10449_v39 }
 0x5ca   : > { %8890 = vmatmul.mubr.bf16.vlgmr.msra.gmra.mrb[36].mxu0 %v11816_v59 }
 0x5cb   : > { %9062 = vmatmul.mubr.bf16.vlgmr.msra.gmra.mrb[36].mxu1 %v11816_v59 }
 0x69d   : > { %v8891_v13 = vpop.f32.mrb[36].mxu0 }
 0x69e   : > { %v9063_v56 = vpop.f32.mrb[36].mxu1  ;;  %v8893_v45 = vpop.f32.mrb[37].mxu0 }
 0x69f   : > { %v10469_v38 = vpack.c.bf16 %v8893_v45, %v8891_v13  ;;  %v9065_v5 = vpop.f32.mrb[37].mxu1  ;;  %v8895_v14 = vpop.f32.mrb[38].mxu0 }
 0x6a0   : > { %v10470_v24 = vpack.c.bf16 %v9065_v5, %v9063_v56  ;;  %v9067_v20 = vpop.f32.mrb[38].mxu1  ;;  %v8897_v59 = vpop.f32.mrb[39].mxu0 }
 0x6a1   : > { %9122 = vst [vmem:[%s11847_s20 + $0x10] sm:$0xff] %v10469_v38  ;;  %v10473_v26 = vpack.c.bf16 %v8897_v59, %v8895_v14  ;;  %v9069_v33 = vpop.f32.mrb[39].mxu1 }
 0x6a2   : > { %9123 = vst [vmem:[%s11847_s20 + $0x18] sm:$0xff] %v10470_v24  ;;  %v10474_v1 = vpack.c.bf16 %v9069_v33, %v9067_v20 }
 0x6a3   : > { %9126 = vst [vmem:[%s11847_s20 + $0x30] sm:$0xff] %v10473_v26 }
 0x6a4   : > { %9127 = vst [vmem:[%s11847_s20 + $0x38] sm:$0xff] %v10474_v1 }
 0x6a5   : > { %10960 = shalt.err (!%p10957_p10)
}
 0x6a6   : > { %s10961_s3 = scalar_lea.hbm %s11863_s30, 1024  ;;  %s10965_s21 = scalar_lea.hbm %s11964_s4, 2048 }
 0x6a7   : > { %p10962_p11 = scmp.ne.s32.totalorder %s11863_s30, %s10961_s3  ;;  %p10966_p12 = scmp.lt.u32.totalorder %s11863_s30, %s11964_s4 }
 0x6a8   : > { %p10967_p13 = scmp.lt.u32.totalorder %s10965_s21, %s10961_s3  ;;  %p10969_p0 = scmp.lt.u32.totalorder %s10961_s3, %s11863_s30 }
 0x6a9   : > { %p10963_p8 = pnand %p10962_p11, %p11965_p7 }
 0x6aa   : > { %p10968_p6 = por %p10967_p13, %p10966_p12 }
 0x6ab   : > { %p10964_p3 = pneg %p10963_p8 }
 0x6ac   : > { %p10970_p5 = por %p10969_p0, %p10968_p6 }
 0x6ae   : > { %p10971_p2 = pnand %p10970_p5, %p10964_p3 }
 0x6b0   : > { %10974 = shalt.err (!%p10971_p2)
}
 0x6b1   : > { %s11060_s14 = smov 512   ;;  %s11061_s5 = smov 32  }
 0x6b2   : > { %10644 = dma.vmem_to_hbm [thread:$0]  (%p11965_p7), %s11857_s8, 1024, %s11863_s30, %s9129_s19, %s11060_s14, %s11060_s14, %s11061_s5  }
 0x6b3 PF: > { %s9160_s20 = sand.u32 1, %s11025_s27   ;;  %p11966_p4 = scmp.ne.s32.totalorder %s11950_s26, 0 }
 0x6b4   : > { %p11967_p9 = scmp.ge.s32.totalorder %s11045_s10, 2  ;;  %s9161_s15 = scalar_lea.sflag [#allocation4], %s9160_s20 }
 0x6b6   : > { %p10670_p1 = pnand %p11967_p9, %p11966_p4 }
 0x6b8   : > { %11020 = dma.done.wait (!%p10670_p1), %s9161_s15, 1024  }
 0x6b9   : > { %11022 = vsyncadd (!%p10670_p1), %s9161_s15, 4294966272  ;;  %s29_s10 = sadd.s32 1, %s11045_s10   ;;  %s11968_s27 = smov %s11029_s28 }
 0x6ba   : > { %p26_p10 = scmp.ge.s32.totalorder %s29_s10, 4   ;;  %s11969_s28 = smov %s11033_s29 }
 0x6bb   : > { %s11970_s29 = smov %s11310_s24  ;;  %s11971_s30 = smov %s11041_s9 }
 0x6bc   : > { %s11972_s9 = smov %s11974_s25  ;;  %28 = sbr.rel (!%p26_p10) target bundleno = 19 (0x13), region = 133 }
 0x6c3   :  { %9166 = vsyncpa [#allocation3], 1 }
 0x6c4   :  { %9168 = vsyncpa [#allocation3 + $0x1], 1 }
 0x6c5   :  { %9169 = vsyncpa [#allocation6], 1 }
 0x6c6   :  { %9171 = vsyncpa [#allocation6 + $0x1], 1 }
 0x6c7   :  { %9172 = vsyncpa [#allocation9], 1 }
 0x6c8   :  { %9173 = vsyncpa [#allocation12], 1 }
 0x6c9   :  { %9174 = vsyncpa [#allocation4], 1 }
 0x6ca   :  { %9176 = vsyncpa [#allocation4 + $0x1], 1 }

</bundles_post_ra>
